<compile_context>
chip_gen: v5e
topology: v5e:2x2
jax: 0.10.0
libtpu: 0.0.40
codegen_flags: <defaults>
</compile_context>

<pallas_src>
import math
import functools

import jax
import jax.numpy as jnp
from jax import lax
from jax.experimental import pallas as pl
from jax.experimental.pallas import tpu as pltpu


def _layernorm(x, w, b, eps=1e-5):
    mu = jnp.mean(x, axis=-1, keepdims=True)
    var = jnp.mean((x - mu) ** 2, axis=-1, keepdims=True)
    return (x - mu) * lax.rsqrt(var + eps) * w + b


def clip_layer_kernel(x_ref, mask_ref,
                      ln1_w_ref, ln1_b_ref,
                      qkv_wT_ref, qkv_b_ref,
                      out_w3_ref, out_b_ref,
                      ln2_w_ref, ln2_b_ref,
                      l1_wT_ref, l1_b_ref,
                      l2_wT_ref, l2_b_ref,
                      o_ref,
                      *, n_head: int, batch_block: int, compute_dtype):
    cd = compute_dtype
    f32 = jnp.float32
    Bb, S, D = x_ref.shape
    H = n_head
    dh = D // H
    M = Bb * S

    x = x_ref[...].astype(f32).reshape(M, D)                          # (M, D) f32

    # ---------------- self-attention block ----------------
    residual = x
    h1 = _layernorm(x, ln1_w_ref[0], ln1_b_ref[0])

    # Fused QKV projection. Columns are host-reordered to head-major (H, 3, dh) and the
    # 1/sqrt(dh) scale is folded into the q columns + bias (no in-kernel q scaling).
    qkv = jnp.dot(h1.astype(cd), qkv_wT_ref[...],
                  preferred_element_type=f32) + qkv_b_ref[0]          # (M, 3D) f32
    qkv_cd = qkv.astype(cd)

    mask = mask_ref[...]                                              # (S, S) additive causal bias

    attn_rows = []
    for b in range(Bb):                                               # static, small (Bb)
        rows = qkv_cd[b * S:(b + 1) * S, :]                           # (S, 3D)
        # Head split: one stack of H wide (3*dh)-lane slices -> (H, S, 3*dh).
        per_head = jnp.stack(
            [rows[:, hd * 3 * dh:(hd + 1) * 3 * dh] for hd in range(H)], axis=0)
        qh = per_head[:, :, 0 * dh:1 * dh]                            # (H, S, dh), pre-scaled
        kh = per_head[:, :, 1 * dh:2 * dh]
        vh = per_head[:, :, 2 * dh:3 * dh]

        s = jnp.einsum("hqd,hkd->hqk", qh, kh,
                       preferred_element_type=f32)                    # (H, S, S) f32
        s = s + mask
        s = s - jnp.max(s, axis=-1, keepdims=True)

        if cd == jnp.float32:
            # exact softmax for the f32 verification path
            p_mm = jnp.exp(s)
            inv = 1.0 / jnp.sum(p_mm, axis=-1, keepdims=True)
        else:
            p_mm = jnp.exp(s.astype(cd))                              # bf16 exp (EUP) on v6e/v7x
            inv = pl.reciprocal(
                jnp.sum(p_mm.astype(f32), axis=-1, keepdims=True), approx=True)

        pv = jnp.einsum("hqk,hkd->hqd", p_mm, vh,
                        preferred_element_type=f32)                   # (H, S, dh) f32
        pv_cd = (pv * inv).astype(cd)                                 # normalize after PV

        # out_proj: accumulate heads on the MXU; no (S, D) scratch slab / masked column stores.
        acc = jnp.zeros((S, D), f32)
        for hd in range(H):
            acc = acc + jnp.dot(pv_cd[hd], out_w3_ref[hd],
                                preferred_element_type=f32)
        attn_rows.append(acc)

    attn = attn_rows[0] if Bb == 1 else jnp.concatenate(attn_rows, axis=0)   # (M, D)
    x2 = attn + out_b_ref[0] + residual

    # ---------------- feed-forward block (QuickGELU) ----------------
    h2 = _layernorm(x2, ln2_w_ref[0], ln2_b_ref[0])
    h2 = jnp.dot(h2.astype(cd), l1_wT_ref[...],
                 preferred_element_type=f32) + l1_b_ref[0]            # (M, 4D)
    h2 = h2 * jax.nn.sigmoid(1.702 * h2)                              # QuickGELU in f32
    h2 = jnp.dot(h2.astype(cd), l2_wT_ref[...],
                 preferred_element_type=f32) + l2_b_ref[0]            # (M, D)
    out = h2 + x2

    o_ref[...] = out.reshape(Bb, S, D).astype(o_ref.dtype)


def _const_spec(shape, single_buffer):
    """Grid-invariant full-array block; single-buffered when supported (index never changes)."""
    index_map = lambda g: (0,) * len(shape)
    if single_buffer and hasattr(pl, "Buffered"):
        try:
            return pl.BlockSpec(shape, index_map, pipeline_mode=pl.Buffered(1))
        except TypeError:       # older BlockSpec without pipeline_mode
            pass
    return pl.BlockSpec(shape, index_map)


def _pick_batch_block(batch, seq, target_rows=256, max_rows=1024):
    """Smallest divisor of `batch` whose block reaches ~target_rows MXU rows, capped at max_rows."""
    best = 1
    for cand in range(1, batch + 1):
        if batch % cand:
            continue
        if cand * seq <= max_rows:
            best = cand
        if cand * seq >= target_rows:
            break
    return best


def clip_layer(x, params, n_head, compute_dtype=jnp.bfloat16):
    B, S, D = x.shape
    assert D % n_head == 0
    # -1e30 mask bias / numerics assume f32 or bf16 only (fp16 would overflow the mask).
    assert compute_dtype in (jnp.float32, jnp.bfloat16)
    cd = compute_dtype
    f32 = jnp.float32
    H = n_head
    dh = D // H
    scale = 1.0 / math.sqrt(dh)

    # ---- host-side (one-time) weight prep: transpose to (in, out), regroup QKV columns
    #      head-major (H, 3, dh), fold 1/sqrt(dh) into q, reshape out_proj to (H, dh, D). ----
    w_qkv = params["in_w"].T.astype(f32).reshape(D, 3, H, dh)
    w_qkv = w_qkv.at[:, 0].multiply(scale)
    qkv_wT = jnp.transpose(w_qkv, (0, 2, 1, 3)).reshape(D, 3 * D).astype(cd)

    b_qkv = params["in_b"].astype(f32).reshape(3, H, dh)
    b_qkv = b_qkv.at[0].multiply(scale)
    qkv_b = jnp.transpose(b_qkv, (1, 0, 2)).reshape(1, 3 * D)

    out_w3 = params["out_w"].T.astype(f32).reshape(H, dh, D).astype(cd)
    l1_wT = params["l1_w"].T.astype(cd)
    l2_wT = params["l2_w"].T.astype(cd)

    # Additive causal mask built once on the host (grid-invariant input).
    mask = jnp.where(jnp.triu(jnp.ones((S, S), dtype=bool), k=1),
                     jnp.float32(-1e30), jnp.float32(0.0))

    const_arrays = [
        mask,
        params["ln1_w"].astype(f32), params["ln1_b"].astype(f32),
        qkv_wT, qkv_b,
        out_w3, params["out_b"].astype(f32),
        params["ln2_w"].astype(f32), params["ln2_b"].astype(f32),
        l1_wT, params["l1_b"].astype(f32),
        l2_wT, params["l2_b"].astype(f32),
    ]

    Bb = _pick_batch_block(B, S)
    grid = (B // Bb,)
    rows = Bb * S

    # ---- generation-aware VMEM budget ----
    weight_bytes = sum(int(a.size) * a.dtype.itemsize for a in const_arrays)
    io_bytes = 2 * 2 * rows * D * x.dtype.itemsize                    # double-buffered x/o blocks
    act_bytes = 4 * (rows * D * 20 + rows * 4 * D * 2
                     + Bb * H * S * (4 * S + 4 * dh))                 # rough f32/bf16 working set
    try:
        vmem_cap = int(pltpu.get_tpu_info().vmem_capacity_bytes)
    except Exception:
        vmem_cap = 64 << 20                                           # conservative (v7x per-TC)
    ceiling = max(32 << 20, vmem_cap - (12 << 20))                    # leave compiler headroom
    vmem_limit = max(32 << 20,
                     min(int(1.5 * (2 * weight_bytes + io_bytes + act_bytes)), ceiling))

    kernel = functools.partial(clip_layer_kernel, n_head=n_head,
                               batch_block=Bb, compute_dtype=cd)

    def _call(single_buffer_weights):
        in_specs = [pl.BlockSpec((Bb, S, D), lambda g: (g, 0, 0))]
        in_specs += [_const_spec(tuple(a.shape), single_buffer_weights)
                     for a in const_arrays]
        return pl.pallas_call(
            kernel,
            out_shape=jax.ShapeDtypeStruct((B, S, D), x.dtype),
            grid_spec=pltpu.PrefetchScalarGridSpec(
                num_scalar_prefetch=0,
                grid=grid,
                in_specs=in_specs,
                out_specs=pl.BlockSpec((Bb, S, D), lambda g: (g, 0, 0))),
            compiler_params=pltpu.CompilerParams(
                dimension_semantics=("parallel",),
                vmem_limit_bytes=vmem_limit),
        )(x, *const_arrays)

    try:
        out = _call(True)                  # grid-invariant weights single-buffered
        jax.block_until_ready(out)
        return out
    except Exception:                      # fallback for JAX builds without single-buffering
        return _call(False)


# ---------------- pure-JAX reference (for correctness check) ----------------
def clip_layer_ref(x, p, n_head):
    B, S, D = x.shape
    dh = D // n_head

    def ln(z, w, b):
        mu = jnp.mean(z, axis=-1, keepdims=True)
        var = jnp.mean((z - mu) ** 2, axis=-1, keepdims=True)
        return (z - mu) / jnp.sqrt(var + 1e-5) * w + b

    residual = x
    h = ln(x, p["ln1_w"][0], p["ln1_b"][0])
    qkv = h @ p["in_w"].T + p["in_b"][0]
    q, k, v = jnp.split(qkv, 3, axis=-1)
    q = q.reshape(B, S, n_head, dh).transpose(0, 2, 1, 3)
    k = k.reshape(B, S, n_head, dh).transpose(0, 2, 1, 3)
    v = v.reshape(B, S, n_head, dh).transpose(0, 2, 1, 3)
    w = jnp.einsum("bhqd,bhkd->bhqk", q, k)
    mask = jnp.triu(jnp.ones((S, S), dtype=bool), k=1)
    w = jnp.where(mask, -1e30, w) / math.sqrt(dh)
    w = jax.nn.softmax(w, axis=-1)
    o = jnp.einsum("bhqk,bhkd->bhqd", w, v).transpose(0, 2, 1, 3).reshape(B, S, D)
    o = o @ p["out_w"].T + p["out_b"][0]
    x = o + residual

    residual = x
    h = ln(x, p["ln2_w"][0], p["ln2_b"][0])
    h = h @ p["l1_w"].T + p["l1_b"][0]
    h = h * jax.nn.sigmoid(1.702 * h)
    h = h @ p["l2_w"].T + p["l2_b"][0]
    return h + residual


if __name__ == "__main__":
    n_head, n_embed = 4, 32
    B, S = 2, 8

    key = jax.random.PRNGKey(0)
    keys = jax.random.split(key, 10)
    init = 0.05

    x = jax.random.normal(keys[0], (B, S, n_embed), jnp.float32)

    params = {
        # LayerNorm params (PyTorch default init: weight=1, bias=0), stored as (1, D)
        "ln1_w": jnp.ones((1, n_embed), jnp.float32),
        "ln1_b": jnp.zeros((1, n_embed), jnp.float32),
        "ln2_w": jnp.ones((1, n_embed), jnp.float32),
        "ln2_b": jnp.zeros((1, n_embed), jnp.float32),
        # SelfAttention: in_proj (3D, D), out_proj (D, D) in PyTorch (out, in) layout
        "in_w": init * jax.random.normal(keys[1], (3 * n_embed, n_embed), jnp.float32),
        "in_b": init * jax.random.normal(keys[2], (1, 3 * n_embed), jnp.float32),
        "out_w": init * jax.random.normal(keys[3], (n_embed, n_embed), jnp.float32),
        "out_b": init * jax.random.normal(keys[4], (1, n_embed), jnp.float32),
        # MLP: linear_1 (4D, D), linear_2 (D, 4D)
        "l1_w": init * jax.random.normal(keys[5], (4 * n_embed, n_embed), jnp.float32),
        "l1_b": init * jax.random.normal(keys[6], (1, 4 * n_embed), jnp.float32),
        "l2_w": init * jax.random.normal(keys[7], (n_embed, 4 * n_embed), jnp.float32),
        "l2_b": init * jax.random.normal(keys[8], (1, n_embed), jnp.float32),
    }

    ref = clip_layer_ref(x, params, n_head)

    # f32 matmul path: tight structural / numerical verification (exact softmax divide).
    out_f32 = jax.block_until_ready(clip_layer(x, params, n_head, compute_dtype=jnp.float32))
    assert out_f32.shape == (B, S, n_embed)
    assert jnp.allclose(out_f32, ref, rtol=2e-3, atol=2e-3), "f32 kernel mismatch vs JAX reference"

    # bf16 matmul path (default / performance configuration).
    out_bf16 = jax.block_until_ready(clip_layer(x, params, n_head))
    assert out_bf16.shape == (B, S, n_embed)
    assert jnp.allclose(out_bf16, ref, rtol=3e-2, atol=3e-2), "bf16 kernel mismatch vs JAX reference"

    print("KERNEL_OK")
</pallas_src>

<mosaic_0001>
module attributes {stable_mosaic.version = 11 : i64} {
  func.func @clip_layer_kernel(%arg0: i32, %arg1: memref<2x8x32xf32, #tpu.memory_space<vmem>>, %arg2: memref<8x8xf32, #tpu.memory_space<vmem>>, %arg3: memref<1x32xf32, #tpu.memory_space<vmem>>, %arg4: memref<1x32xf32, #tpu.memory_space<vmem>>, %arg5: memref<32x96xf32, #tpu.memory_space<vmem>>, %arg6: memref<1x96xf32, #tpu.memory_space<vmem>>, %arg7: memref<4x8x32xf32, #tpu.memory_space<vmem>>, %arg8: memref<1x32xf32, #tpu.memory_space<vmem>>, %arg9: memref<1x32xf32, #tpu.memory_space<vmem>>, %arg10: memref<1x32xf32, #tpu.memory_space<vmem>>, %arg11: memref<32x128xf32, #tpu.memory_space<vmem>>, %arg12: memref<1x128xf32, #tpu.memory_space<vmem>>, %arg13: memref<128x32xf32, #tpu.memory_space<vmem>>, %arg14: memref<1x32xf32, #tpu.memory_space<vmem>>, %arg15: memref<2x8x32xf32, #tpu.memory_space<vmem>>) attributes {dimension_semantics = [#tpu.dimension_semantics<parallel>], iteration_bounds = array<i64: 1>, scalar_prefetch = 0 : i64, scratch_operands = 0 : i64, tpu.core_type = #tpu.core_type<tc>, window_params = [{transform_indices = @transform_0, window_bounds = array<i64: 2, 8, 32>}, {pipeline_mode = #tpu.pipeline_mode<synchronous>, transform_indices = @transform_1, window_bounds = array<i64: 8, 8>}, {pipeline_mode = #tpu.pipeline_mode<synchronous>, transform_indices = @transform_2, window_bounds = array<i64: 1, 32>}, {pipeline_mode = #tpu.pipeline_mode<synchronous>, transform_indices = @transform_3, window_bounds = array<i64: 1, 32>}, {pipeline_mode = #tpu.pipeline_mode<synchronous>, transform_indices = @transform_4, window_bounds = array<i64: 32, 96>}, {pipeline_mode = #tpu.pipeline_mode<synchronous>, transform_indices = @transform_5, window_bounds = array<i64: 1, 96>}, {pipeline_mode = #tpu.pipeline_mode<synchronous>, transform_indices = @transform_6, window_bounds = array<i64: 4, 8, 32>}, {pipeline_mode = #tpu.pipeline_mode<synchronous>, transform_indices = @transform_7, window_bounds = array<i64: 1, 32>}, {pipeline_mode = #tpu.pipeline_mode<synchronous>, transform_indices = @transform_8, window_bounds = array<i64: 1, 32>}, {pipeline_mode = #tpu.pipeline_mode<synchronous>, transform_indices = @transform_9, window_bounds = array<i64: 1, 32>}, {pipeline_mode = #tpu.pipeline_mode<synchronous>, transform_indices = @transform_10, window_bounds = array<i64: 32, 128>}, {pipeline_mode = #tpu.pipeline_mode<synchronous>, transform_indices = @transform_11, window_bounds = array<i64: 1, 128>}, {pipeline_mode = #tpu.pipeline_mode<synchronous>, transform_indices = @transform_12, window_bounds = array<i64: 128, 32>}, {pipeline_mode = #tpu.pipeline_mode<synchronous>, transform_indices = @transform_13, window_bounds = array<i64: 1, 32>}, {transform_indices = @transform_14, window_bounds = array<i64: 2, 8, 32>}]} {
    %c0 = arith.constant 0 : index
    %c0_0 = arith.constant 0 : index
    %c0_1 = arith.constant 0 : index
    %0 = vector.load %arg1[%c0, %c0_0, %c0_1] : memref<2x8x32xf32, #tpu.memory_space<vmem>>, vector<2x8x32xf32>
    %1 = vector.shape_cast %0 : vector<2x8x32xf32> to vector<16x32xf32>
    %c0_2 = arith.constant 0 : index
    %c0_3 = arith.constant 0 : index
    %2 = vector.load %arg3[%c0_2, %c0_3] : memref<1x32xf32, #tpu.memory_space<vmem>>, vector<1x32xf32>
    %3 = vector.shape_cast %2 : vector<1x32xf32> to vector<32xf32>
    %c0_4 = arith.constant 0 : index
    %c0_5 = arith.constant 0 : index
    %4 = vector.load %arg4[%c0_4, %c0_5] : memref<1x32xf32, #tpu.memory_space<vmem>>, vector<1x32xf32>
    %5 = vector.shape_cast %4 : vector<1x32xf32> to vector<32xf32>
    %cst = arith.constant dense<0.000000e+00> : vector<16xf32>
    %6 = vector.multi_reduction <add>, %1, %cst [1] : vector<16x32xf32> to vector<16xf32>
    %7 = vector.shape_cast %6 : vector<16xf32> to vector<16x1xf32>
    %cst_6 = arith.constant 3.200000e+01 : f32
    %8 = vector.broadcast %cst_6 : f32 to vector<16x1xf32>
    %9 = arith.divf %7, %8 : vector<16x1xf32>
    %10 = vector.broadcast %9 : vector<16x1xf32> to vector<16x32xf32>
    %11 = arith.subf %1, %10 : vector<16x32xf32>
    %12 = arith.mulf %11, %11 : vector<16x32xf32>
    %cst_7 = arith.constant dense<0.000000e+00> : vector<16xf32>
    %13 = vector.multi_reduction <add>, %12, %cst_7 [1] : vector<16x32xf32> to vector<16xf32>
    %14 = vector.shape_cast %13 : vector<16xf32> to vector<16x1xf32>
    %cst_8 = arith.constant 3.200000e+01 : f32
    %15 = vector.broadcast %cst_8 : f32 to vector<16x1xf32>
    %16 = arith.divf %14, %15 : vector<16x1xf32>
    %17 = vector.broadcast %9 : vector<16x1xf32> to vector<16x32xf32>
    %18 = arith.subf %1, %17 : vector<16x32xf32>
    %cst_9 = arith.constant 9.99999974E-6 : f32
    %19 = vector.broadcast %cst_9 : f32 to vector<16x1xf32>
    %20 = arith.addf %16, %19 : vector<16x1xf32>
    %21 = math.rsqrt %20 : vector<16x1xf32>
    %22 = vector.broadcast %21 : vector<16x1xf32> to vector<16x32xf32>
    %23 = arith.mulf %18, %22 : vector<16x32xf32>
    %24 = vector.shape_cast %3 : vector<32xf32> to vector<1x32xf32>
    %25 = vector.broadcast %24 : vector<1x32xf32> to vector<16x32xf32>
    %26 = arith.mulf %23, %25 : vector<16x32xf32>
    %27 = vector.shape_cast %5 : vector<32xf32> to vector<1x32xf32>
    %28 = vector.broadcast %27 : vector<1x32xf32> to vector<16x32xf32>
    %29 = arith.addf %26, %28 : vector<16x32xf32>
    %c0_10 = arith.constant 0 : index
    %c0_11 = arith.constant 0 : index
    %30 = vector.load %arg5[%c0_10, %c0_11] : memref<32x96xf32, #tpu.memory_space<vmem>>, vector<32x96xf32>
    %cst_12 = arith.constant dense<0.000000e+00> : vector<16x96xf32>
    %31 = tpu.matmul %29, %30, %cst_12 {dimension_numbers = #tpu.dot_dimension_numbers<[1], [0], [0], [1], [0, 0, 1, 1], [], []>} : vector<16x32xf32>, vector<32x96xf32>, vector<16x96xf32> -> vector<16x96xf32>
    %c0_13 = arith.constant 0 : index
    %c0_14 = arith.constant 0 : index
    %32 = vector.load %arg6[%c0_13, %c0_14] : memref<1x96xf32, #tpu.memory_space<vmem>>, vector<1x96xf32>
    %33 = vector.shape_cast %32 : vector<1x96xf32> to vector<96xf32>
    %34 = vector.shape_cast %33 : vector<96xf32> to vector<1x96xf32>
    %35 = vector.broadcast %34 : vector<1x96xf32> to vector<16x96xf32>
    %36 = arith.addf %31, %35 : vector<16x96xf32>
    %c0_15 = arith.constant 0 : index
    %c0_16 = arith.constant 0 : index
    %37 = vector.load %arg2[%c0_15, %c0_16] : memref<8x8xf32, #tpu.memory_space<vmem>>, vector<8x8xf32>
    %38 = vector.extract_strided_slice %36 {offsets = [0, 0], sizes = [8, 96], strides = [1, 1]} : vector<16x96xf32> to vector<8x96xf32>
    %39 = vector.extract_strided_slice %38 {offsets = [0, 0], sizes = [8, 24], strides = [1, 1]} : vector<8x96xf32> to vector<8x24xf32>
    %40 = vector.extract_strided_slice %38 {offsets = [0, 24], sizes = [8, 24], strides = [1, 1]} : vector<8x96xf32> to vector<8x24xf32>
    %41 = vector.extract_strided_slice %38 {offsets = [0, 48], sizes = [8, 24], strides = [1, 1]} : vector<8x96xf32> to vector<8x24xf32>
    %42 = vector.extract_strided_slice %38 {offsets = [0, 72], sizes = [8, 24], strides = [1, 1]} : vector<8x96xf32> to vector<8x24xf32>
    %43 = vector.shape_cast %39 : vector<8x24xf32> to vector<1x8x24xf32>
    %44 = vector.shape_cast %40 : vector<8x24xf32> to vector<1x8x24xf32>
    %45 = vector.shape_cast %41 : vector<8x24xf32> to vector<1x8x24xf32>
    %46 = vector.shape_cast %42 : vector<8x24xf32> to vector<1x8x24xf32>
    %47 = tpu.concatenate %43, %44, %45, %46 in 0 : vector<1x8x24xf32>, vector<1x8x24xf32>, vector<1x8x24xf32>, vector<1x8x24xf32> -> vector<4x8x24xf32>
    %48 = vector.extract_strided_slice %47 {offsets = [0, 0, 0], sizes = [4, 8, 8], strides = [1, 1, 1]} : vector<4x8x24xf32> to vector<4x8x8xf32>
    %49 = vector.extract_strided_slice %47 {offsets = [0, 0, 8], sizes = [4, 8, 8], strides = [1, 1, 1]} : vector<4x8x24xf32> to vector<4x8x8xf32>
    %50 = vector.extract_strided_slice %47 {offsets = [0, 0, 16], sizes = [4, 8, 8], strides = [1, 1, 1]} : vector<4x8x24xf32> to vector<4x8x8xf32>
    "tpu.trace_start"() <{level = 10 : i32, message = "hqd,hkd->hqk"}> : () -> ()
    %cst_17 = arith.constant dense<0.000000e+00> : vector<4x8x8xf32>
    %51 = tpu.matmul %48, %49, %cst_17 {dimension_numbers = #tpu.dot_dimension_numbers<[2], [2], [1], [1], [0, 0, 0, 1, 1, 1], [0], [0]>} : vector<4x8x8xf32>, vector<4x8x8xf32>, vector<4x8x8xf32> -> vector<4x8x8xf32>
    "tpu.trace_stop"() : () -> ()
    %52 = vector.shape_cast %37 : vector<8x8xf32> to vector<1x8x8xf32>
    %53 = vector.broadcast %52 : vector<1x8x8xf32> to vector<4x8x8xf32>
    %54 = arith.addf %51, %53 : vector<4x8x8xf32>
    %cst_18 = arith.constant dense<0xFF800000> : vector<4x8xf32>
    %55 = vector.multi_reduction <maximumf>, %54, %cst_18 [2] : vector<4x8x8xf32> to vector<4x8xf32>
    %56 = vector.shape_cast %55 : vector<4x8xf32> to vector<4x8x1xf32>
    %57 = vector.broadcast %56 : vector<4x8x1xf32> to vector<4x8x8xf32>
    %58 = arith.subf %54, %57 : vector<4x8x8xf32>
    %59 = math.exp %58 : vector<4x8x8xf32>
    %cst_19 = arith.constant dense<0.000000e+00> : vector<4x8xf32>
    %60 = vector.multi_reduction <add>, %59, %cst_19 [2] : vector<4x8x8xf32> to vector<4x8xf32>
    %61 = vector.shape_cast %60 : vector<4x8xf32> to vector<4x8x1xf32>
    %cst_20 = arith.constant 1.000000e+00 : f32
    %62 = vector.broadcast %cst_20 : f32 to vector<4x8x1xf32>
    %63 = arith.divf %62, %61 : vector<4x8x1xf32>
    "tpu.trace_start"() <{level = 10 : i32, message = "hqk,hkd->hqd"}> : () -> ()
    %cst_21 = arith.constant dense<0.000000e+00> : vector<4x8x8xf32>
    %64 = tpu.matmul %59, %50, %cst_21 {dimension_numbers = #tpu.dot_dimension_numbers<[2], [1], [1], [2], [0, 0, 0, 1, 1, 2], [0], [0]>} : vector<4x8x8xf32>, vector<4x8x8xf32>, vector<4x8x8xf32> -> vector<4x8x8xf32>
    "tpu.trace_stop"() : () -> ()
    %65 = vector.broadcast %63 : vector<4x8x1xf32> to vector<4x8x8xf32>
    %66 = arith.mulf %64, %65 : vector<4x8x8xf32>
    %cst_22 = arith.constant 0.000000e+00 : f32
    %67 = vector.broadcast %cst_22 : f32 to vector<8x32xf32>
    %68 = vector.extract_strided_slice %66 {offsets = [0, 0, 0], sizes = [1, 8, 8], strides = [1, 1, 1]} : vector<4x8x8xf32> to vector<1x8x8xf32>
    %69 = vector.shape_cast %68 : vector<1x8x8xf32> to vector<8x8xf32>
    %c0_23 = arith.constant 0 : index
    %c0_24 = arith.constant 0 : index
    %c0_25 = arith.constant 0 : index
    %70 = vector.load %arg7[%c0_23, %c0_24, %c0_25] : memref<4x8x32xf32, #tpu.memory_space<vmem>>, vector<1x8x32xf32>
    %71 = vector.shape_cast %70 : vector<1x8x32xf32> to vector<8x32xf32>
    %cst_26 = arith.constant dense<0.000000e+00> : vector<8x32xf32>
    %72 = tpu.matmul %69, %71, %cst_26 {dimension_numbers = #tpu.dot_dimension_numbers<[1], [0], [0], [1], [0, 0, 1, 1], [], []>} : vector<8x8xf32>, vector<8x32xf32>, vector<8x32xf32> -> vector<8x32xf32>
    %73 = arith.addf %67, %72 : vector<8x32xf32>
    %74 = vector.extract_strided_slice %66 {offsets = [1, 0, 0], sizes = [1, 8, 8], strides = [1, 1, 1]} : vector<4x8x8xf32> to vector<1x8x8xf32>
    %75 = vector.shape_cast %74 : vector<1x8x8xf32> to vector<8x8xf32>
    %c1 = arith.constant 1 : index
    %c0_27 = arith.constant 0 : index
    %c0_28 = arith.constant 0 : index
    %76 = vector.load %arg7[%c1, %c0_27, %c0_28] : memref<4x8x32xf32, #tpu.memory_space<vmem>>, vector<1x8x32xf32>
    %77 = vector.shape_cast %76 : vector<1x8x32xf32> to vector<8x32xf32>
    %cst_29 = arith.constant dense<0.000000e+00> : vector<8x32xf32>
    %78 = tpu.matmul %75, %77, %cst_29 {dimension_numbers = #tpu.dot_dimension_numbers<[1], [0], [0], [1], [0, 0, 1, 1], [], []>} : vector<8x8xf32>, vector<8x32xf32>, vector<8x32xf32> -> vector<8x32xf32>
    %79 = arith.addf %73, %78 : vector<8x32xf32>
    %80 = vector.extract_strided_slice %66 {offsets = [2, 0, 0], sizes = [1, 8, 8], strides = [1, 1, 1]} : vector<4x8x8xf32> to vector<1x8x8xf32>
    %81 = vector.shape_cast %80 : vector<1x8x8xf32> to vector<8x8xf32>
    %c2 = arith.constant 2 : index
    %c0_30 = arith.constant 0 : index
    %c0_31 = arith.constant 0 : index
    %82 = vector.load %arg7[%c2, %c0_30, %c0_31] : memref<4x8x32xf32, #tpu.memory_space<vmem>>, vector<1x8x32xf32>
    %83 = vector.shape_cast %82 : vector<1x8x32xf32> to vector<8x32xf32>
    %cst_32 = arith.constant dense<0.000000e+00> : vector<8x32xf32>
    %84 = tpu.matmul %81, %83, %cst_32 {dimension_numbers = #tpu.dot_dimension_numbers<[1], [0], [0], [1], [0, 0, 1, 1], [], []>} : vector<8x8xf32>, vector<8x32xf32>, vector<8x32xf32> -> vector<8x32xf32>
    %85 = arith.addf %79, %84 : vector<8x32xf32>
    %86 = vector.extract_strided_slice %66 {offsets = [3, 0, 0], sizes = [1, 8, 8], strides = [1, 1, 1]} : vector<4x8x8xf32> to vector<1x8x8xf32>
    %87 = vector.shape_cast %86 : vector<1x8x8xf32> to vector<8x8xf32>
    %c3 = arith.constant 3 : index
    %c0_33 = arith.constant 0 : index
    %c0_34 = arith.constant 0 : index
    %88 = vector.load %arg7[%c3, %c0_33, %c0_34] : memref<4x8x32xf32, #tpu.memory_space<vmem>>, vector<1x8x32xf32>
    %89 = vector.shape_cast %88 : vector<1x8x32xf32> to vector<8x32xf32>
    %cst_35 = arith.constant dense<0.000000e+00> : vector<8x32xf32>
    %90 = tpu.matmul %87, %89, %cst_35 {dimension_numbers = #tpu.dot_dimension_numbers<[1], [0], [0], [1], [0, 0, 1, 1], [], []>} : vector<8x8xf32>, vector<8x32xf32>, vector<8x32xf32> -> vector<8x32xf32>
    %91 = arith.addf %85, %90 : vector<8x32xf32>
    %92 = vector.extract_strided_slice %36 {offsets = [8, 0], sizes = [8, 96], strides = [1, 1]} : vector<16x96xf32> to vector<8x96xf32>
    %93 = vector.extract_strided_slice %92 {offsets = [0, 0], sizes = [8, 24], strides = [1, 1]} : vector<8x96xf32> to vector<8x24xf32>
    %94 = vector.extract_strided_slice %92 {offsets = [0, 24], sizes = [8, 24], strides = [1, 1]} : vector<8x96xf32> to vector<8x24xf32>
    %95 = vector.extract_strided_slice %92 {offsets = [0, 48], sizes = [8, 24], strides = [1, 1]} : vector<8x96xf32> to vector<8x24xf32>
    %96 = vector.extract_strided_slice %92 {offsets = [0, 72], sizes = [8, 24], strides = [1, 1]} : vector<8x96xf32> to vector<8x24xf32>
    %97 = vector.shape_cast %93 : vector<8x24xf32> to vector<1x8x24xf32>
    %98 = vector.shape_cast %94 : vector<8x24xf32> to vector<1x8x24xf32>
    %99 = vector.shape_cast %95 : vector<8x24xf32> to vector<1x8x24xf32>
    %100 = vector.shape_cast %96 : vector<8x24xf32> to vector<1x8x24xf32>
    %101 = tpu.concatenate %97, %98, %99, %100 in 0 : vector<1x8x24xf32>, vector<1x8x24xf32>, vector<1x8x24xf32>, vector<1x8x24xf32> -> vector<4x8x24xf32>
    %102 = vector.extract_strided_slice %101 {offsets = [0, 0, 0], sizes = [4, 8, 8], strides = [1, 1, 1]} : vector<4x8x24xf32> to vector<4x8x8xf32>
    %103 = vector.extract_strided_slice %101 {offsets = [0, 0, 8], sizes = [4, 8, 8], strides = [1, 1, 1]} : vector<4x8x24xf32> to vector<4x8x8xf32>
    %104 = vector.extract_strided_slice %101 {offsets = [0, 0, 16], sizes = [4, 8, 8], strides = [1, 1, 1]} : vector<4x8x24xf32> to vector<4x8x8xf32>
    "tpu.trace_start"() <{level = 10 : i32, message = "hqd,hkd->hqk"}> : () -> ()
    %cst_36 = arith.constant dense<0.000000e+00> : vector<4x8x8xf32>
    %105 = tpu.matmul %102, %103, %cst_36 {dimension_numbers = #tpu.dot_dimension_numbers<[2], [2], [1], [1], [0, 0, 0, 1, 1, 1], [0], [0]>} : vector<4x8x8xf32>, vector<4x8x8xf32>, vector<4x8x8xf32> -> vector<4x8x8xf32>
    "tpu.trace_stop"() : () -> ()
    %106 = vector.shape_cast %37 : vector<8x8xf32> to vector<1x8x8xf32>
    %107 = vector.broadcast %106 : vector<1x8x8xf32> to vector<4x8x8xf32>
    %108 = arith.addf %105, %107 : vector<4x8x8xf32>
    %cst_37 = arith.constant dense<0xFF800000> : vector<4x8xf32>
    %109 = vector.multi_reduction <maximumf>, %108, %cst_37 [2] : vector<4x8x8xf32> to vector<4x8xf32>
    %110 = vector.shape_cast %109 : vector<4x8xf32> to vector<4x8x1xf32>
    %111 = vector.broadcast %110 : vector<4x8x1xf32> to vector<4x8x8xf32>
    %112 = arith.subf %108, %111 : vector<4x8x8xf32>
    %113 = math.exp %112 : vector<4x8x8xf32>
    %cst_38 = arith.constant dense<0.000000e+00> : vector<4x8xf32>
    %114 = vector.multi_reduction <add>, %113, %cst_38 [2] : vector<4x8x8xf32> to vector<4x8xf32>
    %115 = vector.shape_cast %114 : vector<4x8xf32> to vector<4x8x1xf32>
    %cst_39 = arith.constant 1.000000e+00 : f32
    %116 = vector.broadcast %cst_39 : f32 to vector<4x8x1xf32>
    %117 = arith.divf %116, %115 : vector<4x8x1xf32>
    "tpu.trace_start"() <{level = 10 : i32, message = "hqk,hkd->hqd"}> : () -> ()
    %cst_40 = arith.constant dense<0.000000e+00> : vector<4x8x8xf32>
    %118 = tpu.matmul %113, %104, %cst_40 {dimension_numbers = #tpu.dot_dimension_numbers<[2], [1], [1], [2], [0, 0, 0, 1, 1, 2], [0], [0]>} : vector<4x8x8xf32>, vector<4x8x8xf32>, vector<4x8x8xf32> -> vector<4x8x8xf32>
    "tpu.trace_stop"() : () -> ()
    %119 = vector.broadcast %117 : vector<4x8x1xf32> to vector<4x8x8xf32>
    %120 = arith.mulf %118, %119 : vector<4x8x8xf32>
    %cst_41 = arith.constant 0.000000e+00 : f32
    %121 = vector.broadcast %cst_41 : f32 to vector<8x32xf32>
    %122 = vector.extract_strided_slice %120 {offsets = [0, 0, 0], sizes = [1, 8, 8], strides = [1, 1, 1]} : vector<4x8x8xf32> to vector<1x8x8xf32>
    %123 = vector.shape_cast %122 : vector<1x8x8xf32> to vector<8x8xf32>
    %c0_42 = arith.constant 0 : index
    %c0_43 = arith.constant 0 : index
    %c0_44 = arith.constant 0 : index
    %124 = vector.load %arg7[%c0_42, %c0_43, %c0_44] : memref<4x8x32xf32, #tpu.memory_space<vmem>>, vector<1x8x32xf32>
    %125 = vector.shape_cast %124 : vector<1x8x32xf32> to vector<8x32xf32>
    %cst_45 = arith.constant dense<0.000000e+00> : vector<8x32xf32>
    %126 = tpu.matmul %123, %125, %cst_45 {dimension_numbers = #tpu.dot_dimension_numbers<[1], [0], [0], [1], [0, 0, 1, 1], [], []>} : vector<8x8xf32>, vector<8x32xf32>, vector<8x32xf32> -> vector<8x32xf32>
    %127 = arith.addf %121, %126 : vector<8x32xf32>
    %128 = vector.extract_strided_slice %120 {offsets = [1, 0, 0], sizes = [1, 8, 8], strides = [1, 1, 1]} : vector<4x8x8xf32> to vector<1x8x8xf32>
    %129 = vector.shape_cast %128 : vector<1x8x8xf32> to vector<8x8xf32>
    %c1_46 = arith.constant 1 : index
    %c0_47 = arith.constant 0 : index
    %c0_48 = arith.constant 0 : index
    %130 = vector.load %arg7[%c1_46, %c0_47, %c0_48] : memref<4x8x32xf32, #tpu.memory_space<vmem>>, vector<1x8x32xf32>
    %131 = vector.shape_cast %130 : vector<1x8x32xf32> to vector<8x32xf32>
    %cst_49 = arith.constant dense<0.000000e+00> : vector<8x32xf32>
    %132 = tpu.matmul %129, %131, %cst_49 {dimension_numbers = #tpu.dot_dimension_numbers<[1], [0], [0], [1], [0, 0, 1, 1], [], []>} : vector<8x8xf32>, vector<8x32xf32>, vector<8x32xf32> -> vector<8x32xf32>
    %133 = arith.addf %127, %132 : vector<8x32xf32>
    %134 = vector.extract_strided_slice %120 {offsets = [2, 0, 0], sizes = [1, 8, 8], strides = [1, 1, 1]} : vector<4x8x8xf32> to vector<1x8x8xf32>
    %135 = vector.shape_cast %134 : vector<1x8x8xf32> to vector<8x8xf32>
    %c2_50 = arith.constant 2 : index
    %c0_51 = arith.constant 0 : index
    %c0_52 = arith.constant 0 : index
    %136 = vector.load %arg7[%c2_50, %c0_51, %c0_52] : memref<4x8x32xf32, #tpu.memory_space<vmem>>, vector<1x8x32xf32>
    %137 = vector.shape_cast %136 : vector<1x8x32xf32> to vector<8x32xf32>
    %cst_53 = arith.constant dense<0.000000e+00> : vector<8x32xf32>
    %138 = tpu.matmul %135, %137, %cst_53 {dimension_numbers = #tpu.dot_dimension_numbers<[1], [0], [0], [1], [0, 0, 1, 1], [], []>} : vector<8x8xf32>, vector<8x32xf32>, vector<8x32xf32> -> vector<8x32xf32>
    %139 = arith.addf %133, %138 : vector<8x32xf32>
    %140 = vector.extract_strided_slice %120 {offsets = [3, 0, 0], sizes = [1, 8, 8], strides = [1, 1, 1]} : vector<4x8x8xf32> to vector<1x8x8xf32>
    %141 = vector.shape_cast %140 : vector<1x8x8xf32> to vector<8x8xf32>
    %c3_54 = arith.constant 3 : index
    %c0_55 = arith.constant 0 : index
    %c0_56 = arith.constant 0 : index
    %142 = vector.load %arg7[%c3_54, %c0_55, %c0_56] : memref<4x8x32xf32, #tpu.memory_space<vmem>>, vector<1x8x32xf32>
    %143 = vector.shape_cast %142 : vector<1x8x32xf32> to vector<8x32xf32>
    %cst_57 = arith.constant dense<0.000000e+00> : vector<8x32xf32>
    %144 = tpu.matmul %141, %143, %cst_57 {dimension_numbers = #tpu.dot_dimension_numbers<[1], [0], [0], [1], [0, 0, 1, 1], [], []>} : vector<8x8xf32>, vector<8x32xf32>, vector<8x32xf32> -> vector<8x32xf32>
    %145 = arith.addf %139, %144 : vector<8x32xf32>
    %146 = tpu.concatenate %91, %145 in 0 : vector<8x32xf32>, vector<8x32xf32> -> vector<16x32xf32>
    %c0_58 = arith.constant 0 : index
    %c0_59 = arith.constant 0 : index
    %147 = vector.load %arg8[%c0_58, %c0_59] : memref<1x32xf32, #tpu.memory_space<vmem>>, vector<1x32xf32>
    %148 = vector.shape_cast %147 : vector<1x32xf32> to vector<32xf32>
    %149 = vector.shape_cast %148 : vector<32xf32> to vector<1x32xf32>
    %150 = vector.broadcast %149 : vector<1x32xf32> to vector<16x32xf32>
    %151 = arith.addf %146, %150 : vector<16x32xf32>
    %152 = arith.addf %151, %1 : vector<16x32xf32>
    %c0_60 = arith.constant 0 : index
    %c0_61 = arith.constant 0 : index
    %153 = vector.load %arg9[%c0_60, %c0_61] : memref<1x32xf32, #tpu.memory_space<vmem>>, vector<1x32xf32>
    %154 = vector.shape_cast %153 : vector<1x32xf32> to vector<32xf32>
    %c0_62 = arith.constant 0 : index
    %c0_63 = arith.constant 0 : index
    %155 = vector.load %arg10[%c0_62, %c0_63] : memref<1x32xf32, #tpu.memory_space<vmem>>, vector<1x32xf32>
    %156 = vector.shape_cast %155 : vector<1x32xf32> to vector<32xf32>
    %cst_64 = arith.constant dense<0.000000e+00> : vector<16xf32>
    %157 = vector.multi_reduction <add>, %152, %cst_64 [1] : vector<16x32xf32> to vector<16xf32>
    %158 = vector.shape_cast %157 : vector<16xf32> to vector<16x1xf32>
    %cst_65 = arith.constant 3.200000e+01 : f32
    %159 = vector.broadcast %cst_65 : f32 to vector<16x1xf32>
    %160 = arith.divf %158, %159 : vector<16x1xf32>
    %161 = vector.broadcast %160 : vector<16x1xf32> to vector<16x32xf32>
    %162 = arith.subf %152, %161 : vector<16x32xf32>
    %163 = arith.mulf %162, %162 : vector<16x32xf32>
    %cst_66 = arith.constant dense<0.000000e+00> : vector<16xf32>
    %164 = vector.multi_reduction <add>, %163, %cst_66 [1] : vector<16x32xf32> to vector<16xf32>
    %165 = vector.shape_cast %164 : vector<16xf32> to vector<16x1xf32>
    %cst_67 = arith.constant 3.200000e+01 : f32
    %166 = vector.broadcast %cst_67 : f32 to vector<16x1xf32>
    %167 = arith.divf %165, %166 : vector<16x1xf32>
    %168 = vector.broadcast %160 : vector<16x1xf32> to vector<16x32xf32>
    %169 = arith.subf %152, %168 : vector<16x32xf32>
    %cst_68 = arith.constant 9.99999974E-6 : f32
    %170 = vector.broadcast %cst_68 : f32 to vector<16x1xf32>
    %171 = arith.addf %167, %170 : vector<16x1xf32>
    %172 = math.rsqrt %171 : vector<16x1xf32>
    %173 = vector.broadcast %172 : vector<16x1xf32> to vector<16x32xf32>
    %174 = arith.mulf %169, %173 : vector<16x32xf32>
    %175 = vector.shape_cast %154 : vector<32xf32> to vector<1x32xf32>
    %176 = vector.broadcast %175 : vector<1x32xf32> to vector<16x32xf32>
    %177 = arith.mulf %174, %176 : vector<16x32xf32>
    %178 = vector.shape_cast %156 : vector<32xf32> to vector<1x32xf32>
    %179 = vector.broadcast %178 : vector<1x32xf32> to vector<16x32xf32>
    %180 = arith.addf %177, %179 : vector<16x32xf32>
    %c0_69 = arith.constant 0 : index
    %c0_70 = arith.constant 0 : index
    %181 = vector.load %arg11[%c0_69, %c0_70] : memref<32x128xf32, #tpu.memory_space<vmem>>, vector<32x128xf32>
    %cst_71 = arith.constant dense<0.000000e+00> : vector<16x128xf32>
    %182 = tpu.matmul %180, %181, %cst_71 {dimension_numbers = #tpu.dot_dimension_numbers<[1], [0], [0], [1], [0, 0, 1, 1], [], []>} : vector<16x32xf32>, vector<32x128xf32>, vector<16x128xf32> -> vector<16x128xf32>
    %c0_72 = arith.constant 0 : index
    %c0_73 = arith.constant 0 : index
    %183 = vector.load %arg12[%c0_72, %c0_73] : memref<1x128xf32, #tpu.memory_space<vmem>>, vector<1x128xf32>
    %184 = vector.shape_cast %183 : vector<1x128xf32> to vector<128xf32>
    %185 = vector.shape_cast %184 : vector<128xf32> to vector<1x128xf32>
    %186 = vector.broadcast %185 : vector<1x128xf32> to vector<16x128xf32>
    %187 = arith.addf %182, %186 : vector<16x128xf32>
    %cst_74 = arith.constant 1.702000e+00 : f32
    %188 = vector.broadcast %cst_74 : f32 to vector<16x128xf32>
    %189 = arith.mulf %188, %187 : vector<16x128xf32>
    %190 = arith.negf %189 : vector<16x128xf32>
    %191 = math.exp %190 : vector<16x128xf32>
    %cst_75 = arith.constant 1.000000e+00 : f32
    %192 = vector.broadcast %cst_75 : f32 to vector<16x128xf32>
    %193 = arith.addf %192, %191 : vector<16x128xf32>
    %194 = arith.divf %192, %193 : vector<16x128xf32>
    %195 = arith.mulf %187, %194 : vector<16x128xf32>
    %c0_76 = arith.constant 0 : index
    %c0_77 = arith.constant 0 : index
    %196 = vector.load %arg13[%c0_76, %c0_77] : memref<128x32xf32, #tpu.memory_space<vmem>>, vector<128x32xf32>
    %cst_78 = arith.constant dense<0.000000e+00> : vector<16x32xf32>
    %197 = tpu.matmul %195, %196, %cst_78 {dimension_numbers = #tpu.dot_dimension_numbers<[1], [0], [0], [1], [0, 0, 1, 1], [], []>} : vector<16x128xf32>, vector<128x32xf32>, vector<16x32xf32> -> vector<16x32xf32>
    %c0_79 = arith.constant 0 : index
    %c0_80 = arith.constant 0 : index
    %198 = vector.load %arg14[%c0_79, %c0_80] : memref<1x32xf32, #tpu.memory_space<vmem>>, vector<1x32xf32>
    %199 = vector.shape_cast %198 : vector<1x32xf32> to vector<32xf32>
    %200 = vector.shape_cast %199 : vector<32xf32> to vector<1x32xf32>
    %201 = vector.broadcast %200 : vector<1x32xf32> to vector<16x32xf32>
    %202 = arith.addf %197, %201 : vector<16x32xf32>
    %203 = arith.addf %202, %152 : vector<16x32xf32>
    %204 = vector.shape_cast %203 : vector<16x32xf32> to vector<2x8x32xf32>
    %c0_81 = arith.constant 0 : index
    %c0_82 = arith.constant 0 : index
    %c0_83 = arith.constant 0 : index
    %205 = vector.load %arg15[%c0_81, %c0_82, %c0_83] : memref<2x8x32xf32, #tpu.memory_space<vmem>>, vector<2x8x32xf32>
    tpu.vector_store %arg15[%c0_81, %c0_82, %c0_83], %204 {strides = array<i32>} : memref<2x8x32xf32, #tpu.memory_space<vmem>>, vector<2x8x32xf32>,
    return
  }
  func.func @transform_0(%arg0: i32) -> (i32, i32, i32) {
    %c0_i32 = arith.constant 0 : i32
    %c0_i32_0 = arith.constant 0 : i32
    %c0_i32_1 = arith.constant 0 : i32
    return %arg0, %c0_i32, %c0_i32_0 : i32, i32, i32
  }
  func.func @transform_1(%arg0: i32) -> (i32, i32) {
    %c0_i32 = arith.constant 0 : i32
    %c0_i32_0 = arith.constant 0 : i32
    %c0_i32_1 = arith.constant 0 : i32
    return %c0_i32, %c0_i32_0 : i32, i32
  }
  func.func @transform_2(%arg0: i32) -> (i32, i32) {
    %c0_i32 = arith.constant 0 : i32
    %c0_i32_0 = arith.constant 0 : i32
    %c0_i32_1 = arith.constant 0 : i32
    return %c0_i32, %c0_i32_0 : i32, i32
  }
  func.func @transform_3(%arg0: i32) -> (i32, i32) {
    %c0_i32 = arith.constant 0 : i32
    %c0_i32_0 = arith.constant 0 : i32
    %c0_i32_1 = arith.constant 0 : i32
    return %c0_i32, %c0_i32_0 : i32, i32
  }
  func.func @transform_4(%arg0: i32) -> (i32, i32) {
    %c0_i32 = arith.constant 0 : i32
    %c0_i32_0 = arith.constant 0 : i32
    %c0_i32_1 = arith.constant 0 : i32
    return %c0_i32, %c0_i32_0 : i32, i32
  }
  func.func @transform_5(%arg0: i32) -> (i32, i32) {
    %c0_i32 = arith.constant 0 : i32
    %c0_i32_0 = arith.constant 0 : i32
    %c0_i32_1 = arith.constant 0 : i32
    return %c0_i32, %c0_i32_0 : i32, i32
  }
  func.func @transform_6(%arg0: i32) -> (i32, i32, i32) {
    %c0_i32 = arith.constant 0 : i32
    %c0_i32_0 = arith.constant 0 : i32
    %c0_i32_1 = arith.constant 0 : i32
    %c0_i32_2 = arith.constant 0 : i32
    return %c0_i32, %c0_i32_0, %c0_i32_1 : i32, i32, i32
  }
  func.func @transform_7(%arg0: i32) -> (i32, i32) {
    %c0_i32 = arith.constant 0 : i32
    %c0_i32_0 = arith.constant 0 : i32
    %c0_i32_1 = arith.constant 0 : i32
    return %c0_i32, %c0_i32_0 : i32, i32
  }
  func.func @transform_8(%arg0: i32) -> (i32, i32) {
    %c0_i32 = arith.constant 0 : i32
    %c0_i32_0 = arith.constant 0 : i32
    %c0_i32_1 = arith.constant 0 : i32
    return %c0_i32, %c0_i32_0 : i32, i32
  }
  func.func @transform_9(%arg0: i32) -> (i32, i32) {
    %c0_i32 = arith.constant 0 : i32
    %c0_i32_0 = arith.constant 0 : i32
    %c0_i32_1 = arith.constant 0 : i32
    return %c0_i32, %c0_i32_0 : i32, i32
  }
  func.func @transform_10(%arg0: i32) -> (i32, i32) {
    %c0_i32 = arith.constant 0 : i32
    %c0_i32_0 = arith.constant 0 : i32
    %c0_i32_1 = arith.constant 0 : i32
    return %c0_i32, %c0_i32_0 : i32, i32
  }
  func.func @transform_11(%arg0: i32) -> (i32, i32) {
    %c0_i32 = arith.constant 0 : i32
    %c0_i32_0 = arith.constant 0 : i32
    %c0_i32_1 = arith.constant 0 : i32
    return %c0_i32, %c0_i32_0 : i32, i32
  }
  func.func @transform_12(%arg0: i32) -> (i32, i32) {
    %c0_i32 = arith.constant 0 : i32
    %c0_i32_0 = arith.constant 0 : i32
    %c0_i32_1 = arith.constant 0 : i32
    return %c0_i32, %c0_i32_0 : i32, i32
  }
  func.func @transform_13(%arg0: i32) -> (i32, i32) {
    %c0_i32 = arith.constant 0 : i32
    %c0_i32_0 = arith.constant 0 : i32
    %c0_i32_1 = arith.constant 0 : i32
    return %c0_i32, %c0_i32_0 : i32, i32
  }
  func.func @transform_14(%arg0: i32) -> (i32, i32, i32) {
    %c0_i32 = arith.constant 0 : i32
    %c0_i32_0 = arith.constant 0 : i32
    %c0_i32_1 = arith.constant 0 : i32
    return %arg0, %c0_i32, %c0_i32_0 : i32, i32, i32
  }
}

module attributes {stable_mosaic.version = 11 : i64} {
  func.func @clip_layer_kernel(%arg0: i32, %arg1: memref<2x8x32xf32, #tpu.memory_space<vmem>>, %arg2: memref<8x8xf32, #tpu.memory_space<vmem>>, %arg3: memref<1x32xf32, #tpu.memory_space<vmem>>, %arg4: memref<1x32xf32, #tpu.memory_space<vmem>>, %arg5: memref<32x96xf32, #tpu.memory_space<vmem>>, %arg6: memref<1x96xf32, #tpu.memory_space<vmem>>, %arg7: memref<4x8x32xf32, #tpu.memory_space<vmem>>, %arg8: memref<1x32xf32, #tpu.memory_space<vmem>>, %arg9: memref<1x32xf32, #tpu.memory_space<vmem>>, %arg10: memref<1x32xf32, #tpu.memory_space<vmem>>, %arg11: memref<32x128xf32, #tpu.memory_space<vmem>>, %arg12: memref<1x128xf32, #tpu.memory_space<vmem>>, %arg13: memref<128x32xf32, #tpu.memory_space<vmem>>, %arg14: memref<1x32xf32, #tpu.memory_space<vmem>>, %arg15: memref<2x8x32xf32, #tpu.memory_space<vmem>>) attributes {dimension_semantics = [#tpu.dimension_semantics<parallel>], iteration_bounds = array<i64: 1>, scalar_prefetch = 0 : i64, scratch_operands = 0 : i64, tpu.core_type = #tpu.core_type<tc>, window_params = [{transform_indices = @transform_0, window_bounds = array<i64: 2, 8, 32>}, {pipeline_mode = #tpu.pipeline_mode<synchronous>, transform_indices = @transform_1, window_bounds = array<i64: 8, 8>}, {pipeline_mode = #tpu.pipeline_mode<synchronous>, transform_indices = @transform_2, window_bounds = array<i64: 1, 32>}, {pipeline_mode = #tpu.pipeline_mode<synchronous>, transform_indices = @transform_3, window_bounds = array<i64: 1, 32>}, {pipeline_mode = #tpu.pipeline_mode<synchronous>, transform_indices = @transform_4, window_bounds = array<i64: 32, 96>}, {pipeline_mode = #tpu.pipeline_mode<synchronous>, transform_indices = @transform_5, window_bounds = array<i64: 1, 96>}, {pipeline_mode = #tpu.pipeline_mode<synchronous>, transform_indices = @transform_6, window_bounds = array<i64: 4, 8, 32>}, {pipeline_mode = #tpu.pipeline_mode<synchronous>, transform_indices = @transform_7, window_bounds = array<i64: 1, 32>}, {pipeline_mode = #tpu.pipeline_mode<synchronous>, transform_indices = @transform_8, window_bounds = array<i64: 1, 32>}, {pipeline_mode = #tpu.pipeline_mode<synchronous>, transform_indices = @transform_9, window_bounds = array<i64: 1, 32>}, {pipeline_mode = #tpu.pipeline_mode<synchronous>, transform_indices = @transform_10, window_bounds = array<i64: 32, 128>}, {pipeline_mode = #tpu.pipeline_mode<synchronous>, transform_indices = @transform_11, window_bounds = array<i64: 1, 128>}, {pipeline_mode = #tpu.pipeline_mode<synchronous>, transform_indices = @transform_12, window_bounds = array<i64: 128, 32>}, {pipeline_mode = #tpu.pipeline_mode<synchronous>, transform_indices = @transform_13, window_bounds = array<i64: 1, 32>}, {transform_indices = @transform_14, window_bounds = array<i64: 2, 8, 32>}]} {
    %c0 = arith.constant 0 : index
    %c0_0 = arith.constant 0 : index
    %c0_1 = arith.constant 0 : index
    %0 = vector.load %arg1[%c0, %c0_0, %c0_1] : memref<2x8x32xf32, #tpu.memory_space<vmem>>, vector<2x8x32xf32>
    %1 = vector.shape_cast %0 : vector<2x8x32xf32> to vector<16x32xf32>
    %c0_2 = arith.constant 0 : index
    %c0_3 = arith.constant 0 : index
    %2 = vector.load %arg3[%c0_2, %c0_3] : memref<1x32xf32, #tpu.memory_space<vmem>>, vector<1x32xf32>
    %3 = vector.shape_cast %2 : vector<1x32xf32> to vector<32xf32>
    %c0_4 = arith.constant 0 : index
    %c0_5 = arith.constant 0 : index
    %4 = vector.load %arg4[%c0_4, %c0_5] : memref<1x32xf32, #tpu.memory_space<vmem>>, vector<1x32xf32>
    %5 = vector.shape_cast %4 : vector<1x32xf32> to vector<32xf32>
    %cst = arith.constant dense<0.000000e+00> : vector<16xf32>
    %6 = vector.multi_reduction <add>, %1, %cst [1] : vector<16x32xf32> to vector<16xf32>
    %7 = vector.shape_cast %6 : vector<16xf32> to vector<16x1xf32>
    %cst_6 = arith.constant 3.200000e+01 : f32
    %8 = vector.broadcast %cst_6 : f32 to vector<16x1xf32>
    %9 = arith.divf %7, %8 : vector<16x1xf32>
    %10 = vector.broadcast %9 : vector<16x1xf32> to vector<16x32xf32>
    %11 = arith.subf %1, %10 : vector<16x32xf32>
    %12 = arith.mulf %11, %11 : vector<16x32xf32>
    %cst_7 = arith.constant dense<0.000000e+00> : vector<16xf32>
    %13 = vector.multi_reduction <add>, %12, %cst_7 [1] : vector<16x32xf32> to vector<16xf32>
    %14 = vector.shape_cast %13 : vector<16xf32> to vector<16x1xf32>
    %cst_8 = arith.constant 3.200000e+01 : f32
    %15 = vector.broadcast %cst_8 : f32 to vector<16x1xf32>
    %16 = arith.divf %14, %15 : vector<16x1xf32>
    %17 = vector.broadcast %9 : vector<16x1xf32> to vector<16x32xf32>
    %18 = arith.subf %1, %17 : vector<16x32xf32>
    %cst_9 = arith.constant 9.99999974E-6 : f32
    %19 = vector.broadcast %cst_9 : f32 to vector<16x1xf32>
    %20 = arith.addf %16, %19 : vector<16x1xf32>
    %21 = math.rsqrt %20 : vector<16x1xf32>
    %22 = vector.broadcast %21 : vector<16x1xf32> to vector<16x32xf32>
    %23 = arith.mulf %18, %22 : vector<16x32xf32>
    %24 = vector.shape_cast %3 : vector<32xf32> to vector<1x32xf32>
    %25 = vector.broadcast %24 : vector<1x32xf32> to vector<16x32xf32>
    %26 = arith.mulf %23, %25 : vector<16x32xf32>
    %27 = vector.shape_cast %5 : vector<32xf32> to vector<1x32xf32>
    %28 = vector.broadcast %27 : vector<1x32xf32> to vector<16x32xf32>
    %29 = arith.addf %26, %28 : vector<16x32xf32>
    %c0_10 = arith.constant 0 : index
    %c0_11 = arith.constant 0 : index
    %30 = vector.load %arg5[%c0_10, %c0_11] : memref<32x96xf32, #tpu.memory_space<vmem>>, vector<32x96xf32>
    %cst_12 = arith.constant dense<0.000000e+00> : vector<16x96xf32>
    %31 = tpu.matmul %29, %30, %cst_12 {dimension_numbers = #tpu.dot_dimension_numbers<[1], [0], [0], [1], [0, 0, 1, 1], [], []>} : vector<16x32xf32>, vector<32x96xf32>, vector<16x96xf32> -> vector<16x96xf32>
    %c0_13 = arith.constant 0 : index
    %c0_14 = arith.constant 0 : index
    %32 = vector.load %arg6[%c0_13, %c0_14] : memref<1x96xf32, #tpu.memory_space<vmem>>, vector<1x96xf32>
    %33 = vector.shape_cast %32 : vector<1x96xf32> to vector<96xf32>
    %34 = vector.shape_cast %33 : vector<96xf32> to vector<1x96xf32>
    %35 = vector.broadcast %34 : vector<1x96xf32> to vector<16x96xf32>
    %36 = arith.addf %31, %35 : vector<16x96xf32>
    %c0_15 = arith.constant 0 : index
    %c0_16 = arith.constant 0 : index
    %37 = vector.load %arg2[%c0_15, %c0_16] : memref<8x8xf32, #tpu.memory_space<vmem>>, vector<8x8xf32>
    %38 = vector.extract_strided_slice %36 {offsets = [0, 0], sizes = [8, 96], strides = [1, 1]} : vector<16x96xf32> to vector<8x96xf32>
    %39 = vector.extract_strided_slice %38 {offsets = [0, 0], sizes = [8, 24], strides = [1, 1]} : vector<8x96xf32> to vector<8x24xf32>
    %40 = vector.extract_strided_slice %38 {offsets = [0, 24], sizes = [8, 24], strides = [1, 1]} : vector<8x96xf32> to vector<8x24xf32>
    %41 = vector.extract_strided_slice %38 {offsets = [0, 48], sizes = [8, 24], strides = [1, 1]} : vector<8x96xf32> to vector<8x24xf32>
    %42 = vector.extract_strided_slice %38 {offsets = [0, 72], sizes = [8, 24], strides = [1, 1]} : vector<8x96xf32> to vector<8x24xf32>
    %43 = vector.shape_cast %39 : vector<8x24xf32> to vector<1x8x24xf32>
    %44 = vector.shape_cast %40 : vector<8x24xf32> to vector<1x8x24xf32>
    %45 = vector.shape_cast %41 : vector<8x24xf32> to vector<1x8x24xf32>
    %46 = vector.shape_cast %42 : vector<8x24xf32> to vector<1x8x24xf32>
    %47 = tpu.concatenate %43, %44, %45, %46 in 0 : vector<1x8x24xf32>, vector<1x8x24xf32>, vector<1x8x24xf32>, vector<1x8x24xf32> -> vector<4x8x24xf32>
    %48 = vector.extract_strided_slice %47 {offsets = [0, 0, 0], sizes = [4, 8, 8], strides = [1, 1, 1]} : vector<4x8x24xf32> to vector<4x8x8xf32>
    %49 = vector.extract_strided_slice %47 {offsets = [0, 0, 8], sizes = [4, 8, 8], strides = [1, 1, 1]} : vector<4x8x24xf32> to vector<4x8x8xf32>
    %50 = vector.extract_strided_slice %47 {offsets = [0, 0, 16], sizes = [4, 8, 8], strides = [1, 1, 1]} : vector<4x8x24xf32> to vector<4x8x8xf32>
    "tpu.trace_start"() <{level = 10 : i32, message = "hqd,hkd->hqk"}> : () -> ()
    %cst_17 = arith.constant dense<0.000000e+00> : vector<4x8x8xf32>
    %51 = tpu.matmul %48, %49, %cst_17 {dimension_numbers = #tpu.dot_dimension_numbers<[2], [2], [1], [1], [0, 0, 0, 1, 1, 1], [0], [0]>} : vector<4x8x8xf32>, vector<4x8x8xf32>, vector<4x8x8xf32> -> vector<4x8x8xf32>
    "tpu.trace_stop"() : () -> ()
    %52 = vector.shape_cast %37 : vector<8x8xf32> to vector<1x8x8xf32>
    %53 = vector.broadcast %52 : vector<1x8x8xf32> to vector<4x8x8xf32>
    %54 = arith.addf %51, %53 : vector<4x8x8xf32>
    %cst_18 = arith.constant dense<0xFF800000> : vector<4x8xf32>
    %55 = vector.multi_reduction <maximumf>, %54, %cst_18 [2] : vector<4x8x8xf32> to vector<4x8xf32>
    %56 = vector.shape_cast %55 : vector<4x8xf32> to vector<4x8x1xf32>
    %57 = vector.broadcast %56 : vector<4x8x1xf32> to vector<4x8x8xf32>
    %58 = arith.subf %54, %57 : vector<4x8x8xf32>
    %59 = math.exp %58 : vector<4x8x8xf32>
    %cst_19 = arith.constant dense<0.000000e+00> : vector<4x8xf32>
    %60 = vector.multi_reduction <add>, %59, %cst_19 [2] : vector<4x8x8xf32> to vector<4x8xf32>
    %61 = vector.shape_cast %60 : vector<4x8xf32> to vector<4x8x1xf32>
    %cst_20 = arith.constant 1.000000e+00 : f32
    %62 = vector.broadcast %cst_20 : f32 to vector<4x8x1xf32>
    %63 = arith.divf %62, %61 : vector<4x8x1xf32>
    "tpu.trace_start"() <{level = 10 : i32, message = "hqk,hkd->hqd"}> : () -> ()
    %cst_21 = arith.constant dense<0.000000e+00> : vector<4x8x8xf32>
    %64 = tpu.matmul %59, %50, %cst_21 {dimension_numbers = #tpu.dot_dimension_numbers<[2], [1], [1], [2], [0, 0, 0, 1, 1, 2], [0], [0]>} : vector<4x8x8xf32>, vector<4x8x8xf32>, vector<4x8x8xf32> -> vector<4x8x8xf32>
    "tpu.trace_stop"() : () -> ()
    %65 = vector.broadcast %63 : vector<4x8x1xf32> to vector<4x8x8xf32>
    %66 = arith.mulf %64, %65 : vector<4x8x8xf32>
    %cst_22 = arith.constant 0.000000e+00 : f32
    %67 = vector.broadcast %cst_22 : f32 to vector<8x32xf32>
    %68 = vector.extract_strided_slice %66 {offsets = [0, 0, 0], sizes = [1, 8, 8], strides = [1, 1, 1]} : vector<4x8x8xf32> to vector<1x8x8xf32>
    %69 = vector.shape_cast %68 : vector<1x8x8xf32> to vector<8x8xf32>
    %c0_23 = arith.constant 0 : index
    %c0_24 = arith.constant 0 : index
    %c0_25 = arith.constant 0 : index
    %70 = vector.load %arg7[%c0_23, %c0_24, %c0_25] : memref<4x8x32xf32, #tpu.memory_space<vmem>>, vector<1x8x32xf32>
    %71 = vector.shape_cast %70 : vector<1x8x32xf32> to vector<8x32xf32>
    %cst_26 = arith.constant dense<0.000000e+00> : vector<8x32xf32>
    %72 = tpu.matmul %69, %71, %cst_26 {dimension_numbers = #tpu.dot_dimension_numbers<[1], [0], [0], [1], [0, 0, 1, 1], [], []>} : vector<8x8xf32>, vector<8x32xf32>, vector<8x32xf32> -> vector<8x32xf32>
    %73 = arith.addf %67, %72 : vector<8x32xf32>
    %74 = vector.extract_strided_slice %66 {offsets = [1, 0, 0], sizes = [1, 8, 8], strides = [1, 1, 1]} : vector<4x8x8xf32> to vector<1x8x8xf32>
    %75 = vector.shape_cast %74 : vector<1x8x8xf32> to vector<8x8xf32>
    %c1 = arith.constant 1 : index
    %c0_27 = arith.constant 0 : index
    %c0_28 = arith.constant 0 : index
    %76 = vector.load %arg7[%c1, %c0_27, %c0_28] : memref<4x8x32xf32, #tpu.memory_space<vmem>>, vector<1x8x32xf32>
    %77 = vector.shape_cast %76 : vector<1x8x32xf32> to vector<8x32xf32>
    %cst_29 = arith.constant dense<0.000000e+00> : vector<8x32xf32>
    %78 = tpu.matmul %75, %77, %cst_29 {dimension_numbers = #tpu.dot_dimension_numbers<[1], [0], [0], [1], [0, 0, 1, 1], [], []>} : vector<8x8xf32>, vector<8x32xf32>, vector<8x32xf32> -> vector<8x32xf32>
    %79 = arith.addf %73, %78 : vector<8x32xf32>
    %80 = vector.extract_strided_slice %66 {offsets = [2, 0, 0], sizes = [1, 8, 8], strides = [1, 1, 1]} : vector<4x8x8xf32> to vector<1x8x8xf32>
    %81 = vector.shape_cast %80 : vector<1x8x8xf32> to vector<8x8xf32>
    %c2 = arith.constant 2 : index
    %c0_30 = arith.constant 0 : index
    %c0_31 = arith.constant 0 : index
    %82 = vector.load %arg7[%c2, %c0_30, %c0_31] : memref<4x8x32xf32, #tpu.memory_space<vmem>>, vector<1x8x32xf32>
    %83 = vector.shape_cast %82 : vector<1x8x32xf32> to vector<8x32xf32>
    %cst_32 = arith.constant dense<0.000000e+00> : vector<8x32xf32>
    %84 = tpu.matmul %81, %83, %cst_32 {dimension_numbers = #tpu.dot_dimension_numbers<[1], [0], [0], [1], [0, 0, 1, 1], [], []>} : vector<8x8xf32>, vector<8x32xf32>, vector<8x32xf32> -> vector<8x32xf32>
    %85 = arith.addf %79, %84 : vector<8x32xf32>
    %86 = vector.extract_strided_slice %66 {offsets = [3, 0, 0], sizes = [1, 8, 8], strides = [1, 1, 1]} : vector<4x8x8xf32> to vector<1x8x8xf32>
    %87 = vector.shape_cast %86 : vector<1x8x8xf32> to vector<8x8xf32>
    %c3 = arith.constant 3 : index
    %c0_33 = arith.constant 0 : index
    %c0_34 = arith.constant 0 : index
    %88 = vector.load %arg7[%c3, %c0_33, %c0_34] : memref<4x8x32xf32, #tpu.memory_space<vmem>>, vector<1x8x32xf32>
    %89 = vector.shape_cast %88 : vector<1x8x32xf32> to vector<8x32xf32>
    %cst_35 = arith.constant dense<0.000000e+00> : vector<8x32xf32>
    %90 = tpu.matmul %87, %89, %cst_35 {dimension_numbers = #tpu.dot_dimension_numbers<[1], [0], [0], [1], [0, 0, 1, 1], [], []>} : vector<8x8xf32>, vector<8x32xf32>, vector<8x32xf32> -> vector<8x32xf32>
    %91 = arith.addf %85, %90 : vector<8x32xf32>
    %92 = vector.extract_strided_slice %36 {offsets = [8, 0], sizes = [8, 96], strides = [1, 1]} : vector<16x96xf32> to vector<8x96xf32>
    %93 = vector.extract_strided_slice %92 {offsets = [0, 0], sizes = [8, 24], strides = [1, 1]} : vector<8x96xf32> to vector<8x24xf32>
    %94 = vector.extract_strided_slice %92 {offsets = [0, 24], sizes = [8, 24], strides = [1, 1]} : vector<8x96xf32> to vector<8x24xf32>
    %95 = vector.extract_strided_slice %92 {offsets = [0, 48], sizes = [8, 24], strides = [1, 1]} : vector<8x96xf32> to vector<8x24xf32>
    %96 = vector.extract_strided_slice %92 {offsets = [0, 72], sizes = [8, 24], strides = [1, 1]} : vector<8x96xf32> to vector<8x24xf32>
    %97 = vector.shape_cast %93 : vector<8x24xf32> to vector<1x8x24xf32>
    %98 = vector.shape_cast %94 : vector<8x24xf32> to vector<1x8x24xf32>
    %99 = vector.shape_cast %95 : vector<8x24xf32> to vector<1x8x24xf32>
    %100 = vector.shape_cast %96 : vector<8x24xf32> to vector<1x8x24xf32>
    %101 = tpu.concatenate %97, %98, %99, %100 in 0 : vector<1x8x24xf32>, vector<1x8x24xf32>, vector<1x8x24xf32>, vector<1x8x24xf32> -> vector<4x8x24xf32>
    %102 = vector.extract_strided_slice %101 {offsets = [0, 0, 0], sizes = [4, 8, 8], strides = [1, 1, 1]} : vector<4x8x24xf32> to vector<4x8x8xf32>
    %103 = vector.extract_strided_slice %101 {offsets = [0, 0, 8], sizes = [4, 8, 8], strides = [1, 1, 1]} : vector<4x8x24xf32> to vector<4x8x8xf32>
    %104 = vector.extract_strided_slice %101 {offsets = [0, 0, 16], sizes = [4, 8, 8], strides = [1, 1, 1]} : vector<4x8x24xf32> to vector<4x8x8xf32>
    "tpu.trace_start"() <{level = 10 : i32, message = "hqd,hkd->hqk"}> : () -> ()
    %cst_36 = arith.constant dense<0.000000e+00> : vector<4x8x8xf32>
    %105 = tpu.matmul %102, %103, %cst_36 {dimension_numbers = #tpu.dot_dimension_numbers<[2], [2], [1], [1], [0, 0, 0, 1, 1, 1], [0], [0]>} : vector<4x8x8xf32>, vector<4x8x8xf32>, vector<4x8x8xf32> -> vector<4x8x8xf32>
    "tpu.trace_stop"() : () -> ()
    %106 = vector.shape_cast %37 : vector<8x8xf32> to vector<1x8x8xf32>
    %107 = vector.broadcast %106 : vector<1x8x8xf32> to vector<4x8x8xf32>
    %108 = arith.addf %105, %107 : vector<4x8x8xf32>
    %cst_37 = arith.constant dense<0xFF800000> : vector<4x8xf32>
    %109 = vector.multi_reduction <maximumf>, %108, %cst_37 [2] : vector<4x8x8xf32> to vector<4x8xf32>
    %110 = vector.shape_cast %109 : vector<4x8xf32> to vector<4x8x1xf32>
    %111 = vector.broadcast %110 : vector<4x8x1xf32> to vector<4x8x8xf32>
    %112 = arith.subf %108, %111 : vector<4x8x8xf32>
    %113 = math.exp %112 : vector<4x8x8xf32>
    %cst_38 = arith.constant dense<0.000000e+00> : vector<4x8xf32>
    %114 = vector.multi_reduction <add>, %113, %cst_38 [2] : vector<4x8x8xf32> to vector<4x8xf32>
    %115 = vector.shape_cast %114 : vector<4x8xf32> to vector<4x8x1xf32>
    %cst_39 = arith.constant 1.000000e+00 : f32
    %116 = vector.broadcast %cst_39 : f32 to vector<4x8x1xf32>
    %117 = arith.divf %116, %115 : vector<4x8x1xf32>
    "tpu.trace_start"() <{level = 10 : i32, message = "hqk,hkd->hqd"}> : () -> ()
    %cst_40 = arith.constant dense<0.000000e+00> : vector<4x8x8xf32>
    %118 = tpu.matmul %113, %104, %cst_40 {dimension_numbers = #tpu.dot_dimension_numbers<[2], [1], [1], [2], [0, 0, 0, 1, 1, 2], [0], [0]>} : vector<4x8x8xf32>, vector<4x8x8xf32>, vector<4x8x8xf32> -> vector<4x8x8xf32>
    "tpu.trace_stop"() : () -> ()
    %119 = vector.broadcast %117 : vector<4x8x1xf32> to vector<4x8x8xf32>
    %120 = arith.mulf %118, %119 : vector<4x8x8xf32>
    %cst_41 = arith.constant 0.000000e+00 : f32
    %121 = vector.broadcast %cst_41 : f32 to vector<8x32xf32>
    %122 = vector.extract_strided_slice %120 {offsets = [0, 0, 0], sizes = [1, 8, 8], strides = [1, 1, 1]} : vector<4x8x8xf32> to vector<1x8x8xf32>
    %123 = vector.shape_cast %122 : vector<1x8x8xf32> to vector<8x8xf32>
    %c0_42 = arith.constant 0 : index
    %c0_43 = arith.constant 0 : index
    %c0_44 = arith.constant 0 : index
    %124 = vector.load %arg7[%c0_42, %c0_43, %c0_44] : memref<4x8x32xf32, #tpu.memory_space<vmem>>, vector<1x8x32xf32>
    %125 = vector.shape_cast %124 : vector<1x8x32xf32> to vector<8x32xf32>
    %cst_45 = arith.constant dense<0.000000e+00> : vector<8x32xf32>
    %126 = tpu.matmul %123, %125, %cst_45 {dimension_numbers = #tpu.dot_dimension_numbers<[1], [0], [0], [1], [0, 0, 1, 1], [], []>} : vector<8x8xf32>, vector<8x32xf32>, vector<8x32xf32> -> vector<8x32xf32>
    %127 = arith.addf %121, %126 : vector<8x32xf32>
    %128 = vector.extract_strided_slice %120 {offsets = [1, 0, 0], sizes = [1, 8, 8], strides = [1, 1, 1]} : vector<4x8x8xf32> to vector<1x8x8xf32>
    %129 = vector.shape_cast %128 : vector<1x8x8xf32> to vector<8x8xf32>
    %c1_46 = arith.constant 1 : index
    %c0_47 = arith.constant 0 : index
    %c0_48 = arith.constant 0 : index
    %130 = vector.load %arg7[%c1_46, %c0_47, %c0_48] : memref<4x8x32xf32, #tpu.memory_space<vmem>>, vector<1x8x32xf32>
    %131 = vector.shape_cast %130 : vector<1x8x32xf32> to vector<8x32xf32>
    %cst_49 = arith.constant dense<0.000000e+00> : vector<8x32xf32>
    %132 = tpu.matmul %129, %131, %cst_49 {dimension_numbers = #tpu.dot_dimension_numbers<[1], [0], [0], [1], [0, 0, 1, 1], [], []>} : vector<8x8xf32>, vector<8x32xf32>, vector<8x32xf32> -> vector<8x32xf32>
    %133 = arith.addf %127, %132 : vector<8x32xf32>
    %134 = vector.extract_strided_slice %120 {offsets = [2, 0, 0], sizes = [1, 8, 8], strides = [1, 1, 1]} : vector<4x8x8xf32> to vector<1x8x8xf32>
    %135 = vector.shape_cast %134 : vector<1x8x8xf32> to vector<8x8xf32>
    %c2_50 = arith.constant 2 : index
    %c0_51 = arith.constant 0 : index
    %c0_52 = arith.constant 0 : index
    %136 = vector.load %arg7[%c2_50, %c0_51, %c0_52] : memref<4x8x32xf32, #tpu.memory_space<vmem>>, vector<1x8x32xf32>
    %137 = vector.shape_cast %136 : vector<1x8x32xf32> to vector<8x32xf32>
    %cst_53 = arith.constant dense<0.000000e+00> : vector<8x32xf32>
    %138 = tpu.matmul %135, %137, %cst_53 {dimension_numbers = #tpu.dot_dimension_numbers<[1], [0], [0], [1], [0, 0, 1, 1], [], []>} : vector<8x8xf32>, vector<8x32xf32>, vector<8x32xf32> -> vector<8x32xf32>
    %139 = arith.addf %133, %138 : vector<8x32xf32>
    %140 = vector.extract_strided_slice %120 {offsets = [3, 0, 0], sizes = [1, 8, 8], strides = [1, 1, 1]} : vector<4x8x8xf32> to vector<1x8x8xf32>
    %141 = vector.shape_cast %140 : vector<1x8x8xf32> to vector<8x8xf32>
    %c3_54 = arith.constant 3 : index
    %c0_55 = arith.constant 0 : index
    %c0_56 = arith.constant 0 : index
    %142 = vector.load %arg7[%c3_54, %c0_55, %c0_56] : memref<4x8x32xf32, #tpu.memory_space<vmem>>, vector<1x8x32xf32>
    %143 = vector.shape_cast %142 : vector<1x8x32xf32> to vector<8x32xf32>
    %cst_57 = arith.constant dense<0.000000e+00> : vector<8x32xf32>
    %144 = tpu.matmul %141, %143, %cst_57 {dimension_numbers = #tpu.dot_dimension_numbers<[1], [0], [0], [1], [0, 0, 1, 1], [], []>} : vector<8x8xf32>, vector<8x32xf32>, vector<8x32xf32> -> vector<8x32xf32>
    %145 = arith.addf %139, %144 : vector<8x32xf32>
    %146 = tpu.concatenate %91, %145 in 0 : vector<8x32xf32>, vector<8x32xf32> -> vector<16x32xf32>
    %c0_58 = arith.constant 0 : index
    %c0_59 = arith.constant 0 : index
    %147 = vector.load %arg8[%c0_58, %c0_59] : memref<1x32xf32, #tpu.memory_space<vmem>>, vector<1x32xf32>
    %148 = vector.shape_cast %147 : vector<1x32xf32> to vector<32xf32>
    %149 = vector.shape_cast %148 : vector<32xf32> to vector<1x32xf32>
    %150 = vector.broadcast %149 : vector<1x32xf32> to vector<16x32xf32>
    %151 = arith.addf %146, %150 : vector<16x32xf32>
    %152 = arith.addf %151, %1 : vector<16x32xf32>
    %c0_60 = arith.constant 0 : index
    %c0_61 = arith.constant 0 : index
    %153 = vector.load %arg9[%c0_60, %c0_61] : memref<1x32xf32, #tpu.memory_space<vmem>>, vector<1x32xf32>
    %154 = vector.shape_cast %153 : vector<1x32xf32> to vector<32xf32>
    %c0_62 = arith.constant 0 : index
    %c0_63 = arith.constant 0 : index
    %155 = vector.load %arg10[%c0_62, %c0_63] : memref<1x32xf32, #tpu.memory_space<vmem>>, vector<1x32xf32>
    %156 = vector.shape_cast %155 : vector<1x32xf32> to vector<32xf32>
    %cst_64 = arith.constant dense<0.000000e+00> : vector<16xf32>
    %157 = vector.multi_reduction <add>, %152, %cst_64 [1] : vector<16x32xf32> to vector<16xf32>
    %158 = vector.shape_cast %157 : vector<16xf32> to vector<16x1xf32>
    %cst_65 = arith.constant 3.200000e+01 : f32
    %159 = vector.broadcast %cst_65 : f32 to vector<16x1xf32>
    %160 = arith.divf %158, %159 : vector<16x1xf32>
    %161 = vector.broadcast %160 : vector<16x1xf32> to vector<16x32xf32>
    %162 = arith.subf %152, %161 : vector<16x32xf32>
    %163 = arith.mulf %162, %162 : vector<16x32xf32>
    %cst_66 = arith.constant dense<0.000000e+00> : vector<16xf32>
    %164 = vector.multi_reduction <add>, %163, %cst_66 [1] : vector<16x32xf32> to vector<16xf32>
    %165 = vector.shape_cast %164 : vector<16xf32> to vector<16x1xf32>
    %cst_67 = arith.constant 3.200000e+01 : f32
    %166 = vector.broadcast %cst_67 : f32 to vector<16x1xf32>
    %167 = arith.divf %165, %166 : vector<16x1xf32>
    %168 = vector.broadcast %160 : vector<16x1xf32> to vector<16x32xf32>
    %169 = arith.subf %152, %168 : vector<16x32xf32>
    %cst_68 = arith.constant 9.99999974E-6 : f32
    %170 = vector.broadcast %cst_68 : f32 to vector<16x1xf32>
    %171 = arith.addf %167, %170 : vector<16x1xf32>
    %172 = math.rsqrt %171 : vector<16x1xf32>
    %173 = vector.broadcast %172 : vector<16x1xf32> to vector<16x32xf32>
    %174 = arith.mulf %169, %173 : vector<16x32xf32>
    %175 = vector.shape_cast %154 : vector<32xf32> to vector<1x32xf32>
    %176 = vector.broadcast %175 : vector<1x32xf32> to vector<16x32xf32>
    %177 = arith.mulf %174, %176 : vector<16x32xf32>
    %178 = vector.shape_cast %156 : vector<32xf32> to vector<1x32xf32>
    %179 = vector.broadcast %178 : vector<1x32xf32> to vector<16x32xf32>
    %180 = arith.addf %177, %179 : vector<16x32xf32>
    %c0_69 = arith.constant 0 : index
    %c0_70 = arith.constant 0 : index
    %181 = vector.load %arg11[%c0_69, %c0_70] : memref<32x128xf32, #tpu.memory_space<vmem>>, vector<32x128xf32>
    %cst_71 = arith.constant dense<0.000000e+00> : vector<16x128xf32>
    %182 = tpu.matmul %180, %181, %cst_71 {dimension_numbers = #tpu.dot_dimension_numbers<[1], [0], [0], [1], [0, 0, 1, 1], [], []>} : vector<16x32xf32>, vector<32x128xf32>, vector<16x128xf32> -> vector<16x128xf32>
    %c0_72 = arith.constant 0 : index
    %c0_73 = arith.constant 0 : index
    %183 = vector.load %arg12[%c0_72, %c0_73] : memref<1x128xf32, #tpu.memory_space<vmem>>, vector<1x128xf32>
    %184 = vector.shape_cast %183 : vector<1x128xf32> to vector<128xf32>
    %185 = vector.shape_cast %184 : vector<128xf32> to vector<1x128xf32>
    %186 = vector.broadcast %185 : vector<1x128xf32> to vector<16x128xf32>
    %187 = arith.addf %182, %186 : vector<16x128xf32>
    %cst_74 = arith.constant 1.702000e+00 : f32
    %188 = vector.broadcast %cst_74 : f32 to vector<16x128xf32>
    %189 = arith.mulf %188, %187 : vector<16x128xf32>
    %190 = arith.negf %189 : vector<16x128xf32>
    %191 = math.exp %190 : vector<16x128xf32>
    %cst_75 = arith.constant 1.000000e+00 : f32
    %192 = vector.broadcast %cst_75 : f32 to vector<16x128xf32>
    %193 = arith.addf %192, %191 : vector<16x128xf32>
    %194 = arith.divf %192, %193 : vector<16x128xf32>
    %195 = arith.mulf %187, %194 : vector<16x128xf32>
    %c0_76 = arith.constant 0 : index
    %c0_77 = arith.constant 0 : index
    %196 = vector.load %arg13[%c0_76, %c0_77] : memref<128x32xf32, #tpu.memory_space<vmem>>, vector<128x32xf32>
    %cst_78 = arith.constant dense<0.000000e+00> : vector<16x32xf32>
    %197 = tpu.matmul %195, %196, %cst_78 {dimension_numbers = #tpu.dot_dimension_numbers<[1], [0], [0], [1], [0, 0, 1, 1], [], []>} : vector<16x128xf32>, vector<128x32xf32>, vector<16x32xf32> -> vector<16x32xf32>
    %c0_79 = arith.constant 0 : index
    %c0_80 = arith.constant 0 : index
    %198 = vector.load %arg14[%c0_79, %c0_80] : memref<1x32xf32, #tpu.memory_space<vmem>>, vector<1x32xf32>
    %199 = vector.shape_cast %198 : vector<1x32xf32> to vector<32xf32>
    %200 = vector.shape_cast %199 : vector<32xf32> to vector<1x32xf32>
    %201 = vector.broadcast %200 : vector<1x32xf32> to vector<16x32xf32>
    %202 = arith.addf %197, %201 : vector<16x32xf32>
    %203 = arith.addf %202, %152 : vector<16x32xf32>
    %204 = vector.shape_cast %203 : vector<16x32xf32> to vector<2x8x32xf32>
    %c0_81 = arith.constant 0 : index
    %c0_82 = arith.constant 0 : index
    %c0_83 = arith.constant 0 : index
    %205 = vector.load %arg15[%c0_81, %c0_82, %c0_83] : memref<2x8x32xf32, #tpu.memory_space<vmem>>, vector<2x8x32xf32>
    tpu.vector_store %arg15[%c0_81, %c0_82, %c0_83], %204 {strides = array<i32>} : memref<2x8x32xf32, #tpu.memory_space<vmem>>, vector<2x8x32xf32>,
    return
  }
  func.func @transform_0(%arg0: i32) -> (i32, i32, i32) {
    %c0_i32 = arith.constant 0 : i32
    %c0_i32_0 = arith.constant 0 : i32
    %c0_i32_1 = arith.constant 0 : i32
    return %arg0, %c0_i32, %c0_i32_0 : i32, i32, i32
  }
  func.func @transform_1(%arg0: i32) -> (i32, i32) {
    %c0_i32 = arith.constant 0 : i32
    %c0_i32_0 = arith.constant 0 : i32
    %c0_i32_1 = arith.constant 0 : i32
    return %c0_i32, %c0_i32_0 : i32, i32
  }
  func.func @transform_2(%arg0: i32) -> (i32, i32) {
    %c0_i32 = arith.constant 0 : i32
    %c0_i32_0 = arith.constant 0 : i32
    %c0_i32_1 = arith.constant 0 : i32
    return %c0_i32, %c0_i32_0 : i32, i32
  }
  func.func @transform_3(%arg0: i32) -> (i32, i32) {
    %c0_i32 = arith.constant 0 : i32
    %c0_i32_0 = arith.constant 0 : i32
    %c0_i32_1 = arith.constant 0 : i32
    return %c0_i32, %c0_i32_0 : i32, i32
  }
  func.func @transform_4(%arg0: i32) -> (i32, i32) {
    %c0_i32 = arith.constant 0 : i32
    %c0_i32_0 = arith.constant 0 : i32
    %c0_i32_1 = arith.constant 0 : i32
    return %c0_i32, %c0_i32_0 : i32, i32
  }
  func.func @transform_5(%arg0: i32) -> (i32, i32) {
    %c0_i32 = arith.constant 0 : i32
    %c0_i32_0 = arith.constant 0 : i32
    %c0_i32_1 = arith.constant 0 : i32
    return %c0_i32, %c0_i32_0 : i32, i32
  }
  func.func @transform_6(%arg0: i32) -> (i32, i32, i32) {
    %c0_i32 = arith.constant 0 : i32
    %c0_i32_0 = arith.constant 0 : i32
    %c0_i32_1 = arith.constant 0 : i32
    %c0_i32_2 = arith.constant 0 : i32
    return %c0_i32, %c0_i32_0, %c0_i32_1 : i32, i32, i32
  }
  func.func @transform_7(%arg0: i32) -> (i32, i32) {
    %c0_i32 = arith.constant 0 : i32
    %c0_i32_0 = arith.constant 0 : i32
    %c0_i32_1 = arith.constant 0 : i32
    return %c0_i32, %c0_i32_0 : i32, i32
  }
  func.func @transform_8(%arg0: i32) -> (i32, i32) {
    %c0_i32 = arith.constant 0 : i32
    %c0_i32_0 = arith.constant 0 : i32
    %c0_i32_1 = arith.constant 0 : i32
    return %c0_i32, %c0_i32_0 : i32, i32
  }
  func.func @transform_9(%arg0: i32) -> (i32, i32) {
    %c0_i32 = arith.constant 0 : i32
    %c0_i32_0 = arith.constant 0 : i32
    %c0_i32_1 = arith.constant 0 : i32
    return %c0_i32, %c0_i32_0 : i32, i32
  }
  func.func @transform_10(%arg0: i32) -> (i32, i32) {
    %c0_i32 = arith.constant 0 : i32
    %c0_i32_0 = arith.constant 0 : i32
    %c0_i32_1 = arith.constant 0 : i32
    return %c0_i32, %c0_i32_0 : i32, i32
  }
  func.func @transform_11(%arg0: i32) -> (i32, i32) {
    %c0_i32 = arith.constant 0 : i32
    %c0_i32_0 = arith.constant 0 : i32
    %c0_i32_1 = arith.constant 0 : i32
    return %c0_i32, %c0_i32_0 : i32, i32
  }
  func.func @transform_12(%arg0: i32) -> (i32, i32) {
    %c0_i32 = arith.constant 0 : i32
    %c0_i32_0 = arith.constant 0 : i32
    %c0_i32_1 = arith.constant 0 : i32
    return %c0_i32, %c0_i32_0 : i32, i32
  }
  func.func @transform_13(%arg0: i32) -> (i32, i32) {
    %c0_i32 = arith.constant 0 : i32
    %c0_i32_0 = arith.constant 0 : i32
    %c0_i32_1 = arith.constant 0 : i32
    return %c0_i32, %c0_i32_0 : i32, i32
  }
  func.func @transform_14(%arg0: i32) -> (i32, i32, i32) {
    %c0_i32 = arith.constant 0 : i32
    %c0_i32_0 = arith.constant 0 : i32
    %c0_i32_1 = arith.constant 0 : i32
    return %arg0, %c0_i32, %c0_i32_0 : i32, i32, i32
  }
}

</mosaic_0001>

<bundles_post_ra>
// kernel: tpu_custom_call.1
= control target key start
LH: loop header
LB: loop body
LE: loop exit
PB: predicated region body
PF: predicated region fallthrough
CT: control target
= control target key end

     0   :  { %vm52_vm0 = vcmask 261120   ;;  %s1714_s0 = inlined_call_operand.vmem [shape: f32[2,8,32], index: 0, kind: input, shape index: {}]   ;;  %s1715_s1 = inlined_call_operand.vmem [shape: f32[8,8], index: 1, kind: input, shape index: {}]   ;;  %s1716_s2 = inlined_call_operand.vmem [shape: f32[1,32], index: 2, kind: input, shape index: {}]   ;;  %s1717_s3 = inlined_call_operand.vmem [shape: f32[1,32], index: 3, kind: input, shape index: {}]   ;;  %s1718_s4 = inlined_call_operand.vmem [shape: f32[32,96], index: 4, kind: input, shape index: {}]   ;;  %s1719_s5 = inlined_call_operand.vmem [shape: f32[1,96], index: 5, kind: input, shape index: {}]   ;;  %s1720_s6 = inlined_call_operand.vmem [shape: f32[4,8,32], index: 6, kind: input, shape index: {}]   ;;  %s1721_s7 = inlined_call_operand.vmem [shape: f32[1,32], index: 7, kind: input, shape index: {}]   ;;  %s1722_s8 = inlined_call_operand.vmem [shape: f32[1,32], index: 8, kind: input, shape index: {}]   ;;  %s1723_s9 = inlined_call_operand.vmem [shape: f32[1,32], index: 9, kind: input, shape index: {}]   ;;  %s1724_s10 = inlined_call_operand.vmem [shape: f32[32,128], index: 10, kind: input, shape index: {}]   ;;  %s1725_s11 = inlined_call_operand.vmem [shape: f32[1,128], index: 11, kind: input, shape index: {}]   ;;  %s1726_s12 = inlined_call_operand.vmem [shape: f32[128,32], index: 12, kind: input, shape index: {}]   ;;  %s1727_s13 = inlined_call_operand.vmem [shape: f32[1,32], index: 13, kind: input, shape index: {}]   ;;  %s1728_s14 = inlined_call_operand.hbm [shape: f32[2,8,32], index: 14, kind: output, shape index: {}]  }
   0x1   :  { %v1428_v0 = vld [vmem:[%s1714_s0] sm:$0xff] }
   0x2   :  { %v53_v1 = vsel %vm52_vm0, %v1428_v0, 0.0 }
   0x3   :  { %54 = vadd.xlane.f32.xlu0 %v53_v1 }
   0x4   :  { %19 = vsyncpa [#allocation3], 0  ;;  %v1341_v2 = vmov 32.0   ;;  %v117_v14 = vld [vmem:[%s1718_s4 + $0x18] sm:$0xff]  ;;  %v116_v15 = vld [vmem:[%s1718_s4 + $0x10] sm:$0xff]  ;;  %s1342_s29 = smov 80  }
   0x5   :  { %1265 = vrcp.f32 %v1341_v2  ;;  %140 = vmatpush.msra.mxu1 %v117_v14  ;;  %1234 = vmatpush.msra.mxu2 %v117_v14  ;;  %v115_v16 = vld [vmem:[%s1718_s4 + $0x8] sm:$0xff]  ;;  %v114_v17 = vld [vmem:[%s1718_s4] sm:$0xff]  ;;  %s1345_s30 = smov 120   ;;  %vm161_vm5 = vcmask 64512   ;;  %s1346_s16 = smov 112  }
   0x6   :  { %v1452_v18 = vld [vmem:[%s1714_s0 + $0x8] sm:$0xff]  ;;  %v1257_v29 = vld [vmem:[%s1716_s2] ss:$0 sm:$0xff]  ;;  %s1343_s2 = smov 56   ;;  %s1347_s18 = smov [#allocation2]  }
   0x7   :  { %141 = vmatpush.msra.mxu1 %v116_v15  ;;  %1235 = vmatpush.msra.mxu2 %v116_v15  ;;  %v56_v19 = vsel %vm52_vm0, %v1452_v18, 0.0  ;;  %v1258_v32 = vld [vmem:[%s1717_s3] ss:$0 sm:$0xff]  ;;  %s1344_s3 = smov 104   ;;  %s1176_s19 = sshll.u32 %s1347_s18, 4  ;;  %s1177_s19 = int_to_ptr.vmem [resolvable:$true] %s1176_s19 }
   0x8   :  { %57 = vadd.xlane.f32.xlu1 %v56_v19  ;;  %v1259_v35 = vld [vmem:[%s1719_s5] ss:$0 sm:$0xff]  ;;  %s1178_s22 = sshll.u32 %s1728_s14, 4  ;;  %s1349_s23 = smov 8   ;;  %s1179_s22 = int_to_ptr.hbm [resolvable:$true] %s1178_s22 }
   0x9   :  { %142 = vmatpush.msra.mxu1 %v115_v16  ;;  %1236 = vmatpush.msra.mxu2 %v115_v16  ;;  %v1497_v63 = vld [vmem:[%s1715_s1] sm:$0xff] }
   0xb   :  { %v1266_v3 = vpop.eup %1265  ;;  %143 = vmatpush.msra.mxu1 %v114_v17  ;;  %1237 = vmatpush.msra.mxu2 %v114_v17 }
   0xc   :  { %v60_v4 = vmul.f32 32.0, %v1266_v3  ;;  %vm64_vm1 = vweird.f32 %v1266_v3 }
   0xe   :  { %v61_v5 = vsub.f32 1.0, %v60_v4 }
  0x10   :  { %v62_v6 = vmul.f32 %v1266_v3, %v61_v5 }
  0x12   :  { %v63_v7 = vadd.f32 %v1266_v3, %v62_v6 }
  0x14   :  { %v1432_v8 = vsel %vm64_vm1, %v1266_v3, %v63_v7 }
  0x76   :  { %v55_v9 = vpop.xlane.xlu0 %54 }
  0x77   :  { %v66_v10 = vmul.f32 %v1432_v8, %v55_v9 }
  0x79   :  { %v68_v11 = vsub.f32 %v1428_v0, %v66_v10 }
  0x7b   :  { %v70_v12 = vmul.f32 %v68_v11, %v68_v11  ;;  %v58_v38 = vpop.xlane.xlu1 %57 }
  0x7c   :  { %v67_v39 = vmul.f32 %v1432_v8, %v58_v38 }
  0x7d   :  { %v72_v13 = vsel %vm52_vm0, %v70_v12, 0.0 }
  0x7e   :  { %73 = vadd.xlane.f32.xlu0 %v72_v13  ;;  %v69_v40 = vsub.f32 %v1452_v18, %v67_v39 }
  0x80   :  { %v71_v41 = vmul.f32 %v69_v40, %v69_v40 }
  0x82   :  { %v75_v42 = vsel %vm52_vm0, %v71_v41, 0.0 }
  0xf1   :  { %v74_v20 = vpop.xlane.xlu0 %73 }
  0xf2   :  { %v78_v21 = vmul.f32 %v74_v20, %v1432_v8 }
  0xf4   :  { %v80_v22 = vadd.f32 1e-05, %v78_v21 }
  0xf6   :  { %1267 = vrsqrt.f32 %v80_v22  ;;  %vm88_vm3 = vweird.f32 %v80_v22 }
  0xfc   :  { %v1268_v23 = vpop.eup %1267 }
  0xfd   :  { %v83_v24 = vmul.f32 %v1268_v23, %v80_v22  ;;  %vm89_vm2 = vweird.f32 %v1268_v23 }
  0xfe   :  { %vm90_vm4 = vmor %vm88_vm3, %vm89_vm2 }
  0xff   :  { %v84_v25 = vmul.f32 %v1268_v23, %v83_v24 }
 0x101   :  { %v85_v26 = vmul.f32 0.5, %v84_v25 }
 0x103   :  { %v86_v27 = vsub.f32 1.5, %v85_v26 }
 0x105   :  { %v87_v28 = vmul.f32 %v1268_v23, %v86_v27 }
 0x107   :  { %v91_v30 = vsel %vm90_vm4, %v1268_v23, %v87_v28 }
 0x108   :  { %v102_v31 = vmul.f32 %v91_v30, %v68_v11 }
 0x10a   :  { %v107_v33 = vmul.f32 %v1257_v29, %v102_v31  ;;  %v1526_v31 = vld [vmem:[%s1720_s6 + $0x8] sm:$0xff] }
 0x10c   :  { %v112_v34 = vadd.f32 %v1258_v32, %v107_v33 }
 0x10e   :  { %1190 = vmatmul.msk.f32.vlgmr.msra.gmra.mxu1 %vm52_vm0, %v112_v34 }
 0x18b   :  { %v145_v36 = vpop.f32.mrf.mxu1 }
 0x18c   :  { %v1467_v37 = vadd.f32 %v1259_v35, %v145_v36 }
 0x18e   :  { %155 = vrot.lane.b32.xlu0 %v1467_v37, %s1342_s29  ;;  %157 = vrot.lane.b32.xlu2 %v1467_v37, %s1343_s2 }
 0x18f   :  { %153 = vrot.lane.b32.xlu1 %v1467_v37, %s1344_s3 }
 0x197   :  { %159 = vrot.lane.b32.xlu1 %v1467_v37, %s1345_s30 }
 0x1b7   :  { %76 = vadd.xlane.f32.xlu2 %v75_v42 }
 0x1e8   :  { %v158_v43 = vpop.permute.xlu2 %157 }
 0x1e9   :  { %238 = vrot.lane.b32.xlu1 %v158_v43, %s1345_s30  ;;  %v1247_v10 = vpack.i.bf16 %v158_v43, %v1467_v37 }
 0x200   :  { %v156_v45 = vpop.permute.xlu0 %155 }
 0x201   :  { %v154_v44 = vpop.permute.xlu1 %153 }
 0x202   :  { %186 = vrot.lane.b32.xlu0 %v154_v44, %s1345_s30 }
 0x209   :  { %v160_v46 = vpop.permute.xlu1 %159 }
 0x20a   :  { %212 = vrot.lane.b32.xlu0 %v156_v45, %s1345_s30  ;;  %1192 = vmatpush.xpose.msk.msrb.mxu1 %vm161_vm5, %v160_v46 }
 0x20d   :  { %1193 = vmatmul.msk.f32.vlgmr.msrb.gmra.mxu1 %vm161_vm5, %v1467_v37 }
 0x22a   :  { %v77_v47 = vpop.xlane.xlu2 %76 }
 0x22b   :  { %v79_v48 = vmul.f32 %v77_v47, %v1432_v8 }
 0x22d   :  { %v81_v49 = vadd.f32 1e-05, %v79_v48 }
 0x22f   :  { %1269 = vrsqrt.f32 %v81_v49  ;;  %vm98_vm6 = vweird.f32 %v81_v49 }
 0x235   :  { %v1270_v50 = vpop.eup %1269 }
 0x236   :  { %v93_v51 = vmul.f32 %v1270_v50, %v81_v49  ;;  %vm99_vm7 = vweird.f32 %v1270_v50  ;;  %v1209_v49 = vld [vmem:[%s1720_s6 + $0x18] sm:$0xff] }
 0x237   :  { %vm100_vm8 = vmor %vm98_vm6, %vm99_vm7 }
 0x238   :  { %v94_v52 = vmul.f32 %v1270_v50, %v93_v51 }
 0x23a   :  { %v95_v53 = vmul.f32 0.5, %v94_v52 }
 0x23c   :  { %v96_v54 = vsub.f32 1.5, %v95_v53 }
 0x23e   :  { %v97_v55 = vmul.f32 %v1270_v50, %v96_v54 }
 0x240   :  { %v101_v56 = vsel %vm100_vm8, %v1270_v50, %v97_v55  ;;  %v1557_v50 = vld [vmem:[%s1720_s6] sm:$0xff] }
 0x241   :  { %v103_v57 = vmul.f32 %v101_v56, %v69_v40  ;;  %512 = vmatpush.msra.mxu0 %v1557_v50 }
 0x243   :  { %v108_v58 = vmul.f32 %v1257_v29, %v103_v57 }
 0x245   :  { %v113_v59 = vadd.f32 %v1258_v32, %v108_v58 }
 0x247   :  { %1191 = vmatmul.msk.f32.vlgmr.msra.gmra.mxu2 %vm52_vm0, %v113_v59 }
 0x25b   :  { %v239_v60 = vpop.permute.xlu1 %238 }
 0x25c   :  { %1198 = vmatpush.xpose.msk.msra.mxu1 %vm161_vm5, %v239_v60 }
 0x25f   :  { %1199 = vmatmul.msk.f32.vlgmr.msra.gmra.mxu1 %vm161_vm5, %v158_v43 }
 0x274   :  { %v187_v61 = vpop.permute.xlu0 %186 }
 0x275   :  { %1194 = vmatpush.xpose.msk.msrb.mxu2 %vm161_vm5, %v187_v61 }
 0x278   :  { %1195 = vmatmul.msk.f32.vlgmr.msrb.gmra.mxu2 %vm161_vm5, %v154_v44 }
 0x27c   :  { %v213_v62 = vpop.permute.xlu0 %212 }
 0x27d   :  { %1196 = vmatpush.xpose.msk.msra.mxu3 %vm161_vm5, %v213_v62 }
 0x280   :  { %1197 = vmatmul.msk.f32.vlgmr.msra.gmra.mxu3 %vm161_vm5, %v156_v45 }
 0x28a   :  { %v183_v1 = vpop.f32.mrf.mxu1 }
 0x28b   :  { %v184_v2 = vadd.f32 %v183_v1, %v1497_v63 }
 0x28d   :  { %v264_v3 = vsel %vm161_vm5, %v184_v2, -inf }
 0x28e   :  { %265 = vmax.xlane.f32.xlu1 %v264_v3 }
 0x2a7   :  { %412 = vrot.lane.b32.xlu1 %v156_v45, %s1346_s16 }
 0x2ca   :  { %v148_v4 = vpop.f32.mrf.mxu2 }
 0x2cb   :  { %v1502_v5 = vadd.f32 %v1259_v35, %v148_v4 }
 0x2cd   :  { %576 = vrot.lane.b32.xlu1 %v1502_v5, %s1345_s30 }
 0x2dc   :  { %v261_v6 = vpop.f32.mrf.mxu1 }
 0x2dd   :  { %v262_v7 = vadd.f32 %v261_v6, %v1497_v63 }
 0x2df   :  { %v273_v9 = vsel %vm161_vm5, %v262_v7, -inf }
 0x2e0   :  { %274 = vmax.xlane.f32.xlu2 %v273_v9 }
 0x2f8   :  { %1248 = vrot.lane.b32.xlu2 %v1247_v10, %s1346_s16 }
 0x2fb   :  { %v209_v11 = vpop.f32.mrf.mxu2 }
 0x2fc   :  { %v210_v12 = vadd.f32 %v209_v11, %v1497_v63 }
 0x2fe   :  { %v267_v13 = vsel %vm161_vm5, %v210_v12, -inf }
 0x2ff   :  { %268 = vmax.xlane.f32.xlu0 %v267_v13 }
 0x300   :  { %386 = vrot.lane.b32.xlu2 %v154_v44, %s1346_s16 }
 0x301   :  { %v266_v14 = vpop.xlane.xlu1 %265 }
 0x302   :  { %v276_v20 = vsub.f32 %v184_v2, %v266_v14 }
 0x303   :  { %v235_v16 = vpop.f32.mrf.mxu3 }
 0x304   :  { %v236_v17 = vadd.f32 %v235_v16, %v1497_v63  ;;  %v280_v21 = vmul.f32 1.442695, %v276_v20 }
 0x306   :  { %v270_v19 = vsel %vm161_vm5, %v236_v17, -inf  ;;  %1271 = vpow2.f32 %v280_v21  ;;  %v1568_v21 = vld [vmem:[%s1720_s6 + $0x10] sm:$0xff] }
 0x30c   :  { %v1272_v28 = vpop.eup %1271 }
 0x30d   :  { %v288_v33 = vsel %vm161_vm5, %v1272_v28, 0.0 }
 0x313   :  { %574 = vrot.lane.b32.xlu0 %v1502_v5, %s1343_s2 }
 0x319   :  { %v413_v15 = vpop.permute.xlu1 %412 }
 0x31a   :  { %433 = vmatpush.msrb.mxu1 %v413_v15 }
 0x31b   :  { %570 = vrot.lane.b32.xlu0 %v1502_v5, %s1344_s3 }
 0x31c   :  { %537 = vmatpush.msra.mxu1 %v1568_v21 }
 0x329   :  { %271 = vmax.xlane.f32.xlu2 %v270_v19 }
 0x33f   :  { %v577_v38 = vpop.permute.xlu1 %576 }
 0x341   :  { %572 = vrot.lane.b32.xlu2 %v1502_v5, %s1342_s29 }
 0x353   :  { %v275_v22 = vpop.xlane.xlu2 %274 }
 0x354   :  { %v279_v23 = vsub.f32 %v262_v7, %v275_v22 }
 0x356   :  { %v286_v24 = vmul.f32 1.442695, %v279_v23 }
 0x358   :  { %1273 = vpow2.f32 %v286_v24 }
 0x35b   :  { %v1249_v25 = vpop.permute.xlu2 %1248 }
 0x35c   :  { %v1251_v26 = vunpack.i.h.bf16 %v1249_v25  ;;  %v1250_v27 = vunpack.i.l.bf16 %v1249_v25 }
 0x35e   :  { %v1274_v29 = vpop.eup %1273  ;;  %381 = vmatpush.msra.mxu2 %v1250_v27 }
 0x35f   :  { %1200 = vmatmul.msk.f32.vlgmr.msra.gmra.mxu2 %vm161_vm5, %v1272_v28  ;;  %v297_v30 = vsel %vm161_vm5, %v1274_v29, 0.0 }
 0x360   :  { %459 = vmatpush.msrb.mxu2 %v1251_v26  ;;  %298 = vadd.xlane.f32.xlu1 %v297_v30 }
 0x362   :  { %563 = vmatpush.msra.mxu2 %v1209_v49 }
 0x363   :  { %v387_v32 = vpop.permute.xlu2 %386 }
 0x364   :  { %407 = vmatpush.msrb.mxu3 %v387_v32 }
 0x366   :  { %489 = vmatpush.msra.mxu3 %v1526_v31 }
 0x367   :  { %1203 = vmatmul.msk.f32.vlgmr.msrb.gmra.mxu2 %vm161_vm5, %v1274_v29 }
 0x36a   :  { %289 = vadd.xlane.f32.xlu2 %v288_v33 }
 0x372   :  { %v269_v34 = vpop.xlane.xlu0 %268 }
 0x373   :  { %v277_v35 = vsub.f32 %v210_v12, %v269_v34 }
 0x375   :  { %v282_v36 = vmul.f32 1.442695, %v277_v35 }
 0x377   :  { %1275 = vpow2.f32 %v282_v36 }
 0x37d   :  { %v1276_v37 = vpop.eup %1275 }
 0x37e   :  { %1201 = vmatmul.msk.f32.vlgmr.msrb.gmra.mxu3 %vm161_vm5, %v1276_v37  ;;  %v291_v46 = vsel %vm161_vm5, %v1276_v37, 0.0 }
 0x37f   :  { %1211 = vmatpush.xpose.msk.msrb.mxu3 %vm161_vm5, %v577_v38 }
 0x385   :  { %v1533_v39 = vpop.permute.xlu0 %574 }
 0x386   :  { %v1252_v40 = vpack.i.bf16 %v1502_v5, %v1533_v39  ;;  %654 = vrot.lane.b32.xlu0 %v1533_v39, %s1345_s30 }
 0x388   :  { %1253 = vrot.lane.b32.xlu2 %v1252_v40, %s1346_s16 }
 0x38d   :  { %v1547_v48 = vpop.permute.xlu0 %570 }
 0x39c   :  { %v272_v41 = vpop.xlane.xlu2 %271 }
 0x39d   :  { %v278_v42 = vsub.f32 %v236_v17, %v272_v41 }
 0x39f   :  { %v284_v43 = vmul.f32 1.442695, %v278_v42 }
 0x3a1   :  { %1277 = vpow2.f32 %v284_v43 }
 0x3a4   :  { %v1543_v47 = vpop.permute.xlu2 %572 }
 0x3a7   :  { %v1278_v44 = vpop.eup %1277 }
 0x3a8   :  { %1202 = vmatmul.msk.f32.vlgmr.msrb.gmra.mxu1 %vm161_vm5, %v1278_v44  ;;  %v294_v45 = vsel %vm161_vm5, %v1278_v44, 0.0 }
 0x3a9   :  { %295 = vadd.xlane.f32.xlu1 %v294_v45 }
 0x3b0   :  { %292 = vadd.xlane.f32.xlu0 %v291_v46 }
 0x3c2   :  { %628 = vrot.lane.b32.xlu1 %v1543_v47, %s1345_s30 }
 0x3c4   :  { %602 = vrot.lane.b32.xlu0 %v1547_v48, %s1345_s30 }
 0x3d3   :  { %v299_v51 = vpop.xlane.xlu1 %298 }
 0x3d4   :  { %1279 = vrcp.f32 %v299_v51  ;;  %v356_v60 = vand.u32 2147483648, %v299_v51  ;;  %vm350_vm10 = vweird.f32 %v299_v51  ;;  %v354_v62 = vand.u32 2147483647, %v299_v51 }
 0x3d6   :  { %v357_v4 = vor.u32 1.1754944e-38, %v356_v60  ;;  %vm355_vm13 = vcmp.eq.f32.partialorder %v354_v62, 8.507059e+37 }
 0x3da   :  { %v1280_v52 = vpop.eup %1279 }
 0x3db   :  { %v346_v53 = vmul.f32 %v1280_v52, %v299_v51  ;;  %vm351_vm9 = vweird.f32 %v1280_v52 }
 0x3dc   :  { %vm352_vm11 = vmor %vm350_vm10, %vm351_vm9 }
 0x3dd   :  { %v347_v54 = vsub.f32 1.0, %v346_v53  ;;  %v290_v55 = vpop.xlane.xlu2 %289 }
 0x3de   :  { %1281 = vrcp.f32 %v290_v55  ;;  %v311_v3 = vand.u32 2147483648, %v290_v55  ;;  %v309_v7 = vand.u32 2147483647, %v290_v55  ;;  %vm305_vm14 = vweird.f32 %v290_v55 }
 0x3df   :  { %v348_v56 = vmul.f32 %v1280_v52, %v347_v54 }
 0x3e0   :  { %v312_v13 = vor.u32 1.1754944e-38, %v311_v3  ;;  %vm310_vm1 = vcmp.eq.f32.partialorder %v309_v7, 8.507059e+37 }
 0x3e1   :  { %v349_v58 = vadd.f32 %v1280_v52, %v348_v56 }
 0x3e2   :  { %v383_v57 = vpop.f32.mrf.mxu2 }
 0x3e3   :  { %v353_v2 = vsel %vm352_vm11, %v1280_v52, %v349_v58 }
 0x3e4   :  { %v1282_v59 = vpop.eup %1281  ;;  %v358_v9 = vsel %vm355_vm13, %v357_v4, %v353_v2 }
 0x3e5   :  { %v301_v61 = vmul.f32 %v1282_v59, %v290_v55  ;;  %vm306_vm12 = vweird.f32 %v1282_v59  ;;  %v1254_v17 = vpop.permute.xlu2 %1253 }
 0x3e6   :  { %vm307_vm15 = vmor %vm305_vm14, %vm306_vm12  ;;  %v1255_v19 = vunpack.i.l.bf16 %v1254_v17  ;;  %v1256_v53 = vunpack.i.h.bf16 %v1254_v17 }
 0x3e7   :  { %v302_v1 = vsub.f32 1.0, %v301_v61 }
 0x3e9   :  { %v303_v6 = vmul.f32 %v1282_v59, %v302_v1 }
 0x3ea   :  { %v461_v10 = vpop.f32.mrf.mxu2 }
 0x3eb   :  { %v304_v11 = vadd.f32 %v1282_v59, %v303_v6  ;;  %v467_v12 = vmul.f32 %v461_v10, %v358_v9 }
 0x3ed   :  { %v308_v14 = vsel %vm307_vm15, %v1282_v59, %v304_v11  ;;  %1210 = vmatmul.msk.f32.vlgmr.msra.gmra.mxu2 %vm161_vm5, %v467_v12 }
 0x3ee   :  { %v313_v15 = vsel %vm310_vm1, %v312_v13, %v308_v14 }
 0x3ef   :  { %v464_v16 = vmul.f32 %v383_v57, %v313_v15 }
 0x3f1   :  { %1206 = vmatmul.msk.f32.vlgmr.msra.gmra.mxu0 %vm161_vm5, %v464_v16 }
 0x3f8   :  { %v655_v20 = vpop.permute.xlu0 %654 }
 0x3f9   :  { %1217 = vmatpush.xpose.msk.msrb.mxu2 %vm161_vm5, %v655_v20 }
 0x3fc   :  { %1218 = vmatmul.msk.f32.vlgmr.msrb.gmra.mxu2 %vm161_vm5, %v1533_v39 }
 0x3fd   :  { %875 = vmatpush.msra.mxu2 %v1255_v19 }
 0x3ff   :  { %976 = vmatpush.msrb.mxu2 %v1209_v49 }
 0x401   :  { %v409_v46 = vpop.f32.mrf.mxu3 }
 0x41c   :  { %v296_v22 = vpop.xlane.xlu1 %295 }
 0x41d   :  { %1283 = vrcp.f32 %v296_v22  ;;  %v341_v27 = vand.u32 2147483648, %v296_v22  ;;  %v339_v29 = vand.u32 2147483647, %v296_v22  ;;  %vm335_vm3 = vweird.f32 %v296_v22 }
 0x41f   :  { %v342_v34 = vor.u32 1.1754944e-38, %v341_v27  ;;  %vm340_vm6 = vcmp.eq.f32.partialorder %v339_v29, 8.507059e+37  ;;  %v1603_v29 = vld [vmem:[%s1721_s7] ss:$0 sm:$0xff] }
 0x423   :  { %v1284_v23 = vpop.eup %1283  ;;  %v293_v24 = vpop.xlane.xlu0 %292 }
 0x424   :  { %v331_v25 = vmul.f32 %v1284_v23, %v296_v22  ;;  %1285 = vrcp.f32 %v293_v24  ;;  %vm336_vm2 = vweird.f32 %v1284_v23  ;;  %v326_v39 = vand.u32 2147483648, %v293_v24 }
 0x425   :  { %vm337_vm4 = vmor %vm335_vm3, %vm336_vm2  ;;  %v435_v38 = vpop.f32.mrf.mxu1  ;;  %v324_v42 = vand.u32 2147483647, %v293_v24  ;;  %vm320_vm8 = vweird.f32 %v293_v24 }
 0x426   :  { %v332_v26 = vsub.f32 1.0, %v331_v25  ;;  %v327_v44 = vor.u32 1.1754944e-38, %v326_v39 }
 0x427   :  { %vm325_vm10 = vcmp.eq.f32.partialorder %v324_v42, 8.507059e+37 }
 0x428   :  { %v333_v28 = vmul.f32 %v1284_v23, %v332_v26 }
 0x42a   :  { %v1286_v30 = vpop.eup %1285  ;;  %v334_v32 = vadd.f32 %v1284_v23, %v333_v28 }
 0x42b   :  { %v316_v33 = vmul.f32 %v1286_v30, %v293_v24  ;;  %vm321_vm7 = vweird.f32 %v1286_v30 }
 0x42c   :  { %v338_v35 = vsel %vm337_vm4, %v1284_v23, %v334_v32  ;;  %vm322_vm9 = vmor %vm320_vm8, %vm321_vm7 }
 0x42d   :  { %v317_v36 = vsub.f32 1.0, %v316_v33  ;;  %v343_v37 = vsel %vm340_vm6, %v342_v34, %v338_v35 }
 0x42e   :  { %v466_v40 = vmul.f32 %v435_v38, %v343_v37 }
 0x42f   :  { %v318_v41 = vmul.f32 %v1286_v30, %v317_v36 }
 0x430   :  { %1208 = vmatmul.msk.f32.vlgmr.msra.gmra.mxu1 %vm161_vm5, %v466_v40 }
 0x431   :  { %v319_v43 = vadd.f32 %v1286_v30, %v318_v41 }
 0x433   :  { %v323_v45 = vsel %vm322_vm9, %v1286_v30, %v319_v43 }
 0x434   :  { %v328_v49 = vsel %vm325_vm10, %v327_v44, %v323_v45  ;;  %v629_v51 = vpop.permute.xlu1 %628 }
 0x435   :  { %1215 = vmatpush.xpose.msk.msrb.mxu1 %vm161_vm5, %v629_v51  ;;  %v465_v52 = vmul.f32 %v409_v46, %v328_v49 }
 0x436   :  { %v603_v54 = vpop.permute.xlu0 %602 }
 0x437   :  { %1205 = vmatmul.msk.f32.vlgmr.msra.gmra.mxu3 %vm161_vm5, %v465_v52  ;;  %1213 = vmatpush.xpose.msk.msrb.mxu0 %vm161_vm5, %v603_v54 }
 0x438   :  { %797 = vmatpush.msra.mxu3 %v1256_v53  ;;  %1216 = vmatmul.msk.f32.vlgmr.msrb.gmra.mxu1 %vm161_vm5, %v1543_v47 }
 0x43a   :  { %1214 = vmatmul.msk.f32.vlgmr.msrb.gmra.mxu0 %vm161_vm5, %v1547_v48 }
 0x43f   :  { %1212 = vmatmul.msk.f32.vlgmr.msrb.gmra.mxu3 %vm161_vm5, %v1502_v5 }
 0x440   :  { %904 = vmatpush.msrb.mxu3 %v1526_v31 }
 0x46e   :  { %v514_v60 = vpop.f32.mrf.mxu0 }
 0x470   :  { %v565_v55 = vpop.f32.mrf.mxu2 }
 0x47f   :  { %v677_v56 = vpop.f32.mrf.mxu2 }
 0x480   :  { %v678_v57 = vadd.f32 %v677_v56, %v1497_v63 }
 0x482   :  { %v689_v58 = vsel %vm161_vm5, %v678_v57, -inf }
 0x483   :  { %690 = vmax.xlane.f32.xlu0 %v689_v58 }
 0x497   :  { %802 = vrot.lane.b32.xlu0 %v1547_v48, %s1346_s16 }
 0x4ad   :  { %v539_v59 = vpop.f32.mrf.mxu1 }
 0x4b5   :  { %v651_v61 = vpop.f32.mrf.mxu1 }
 0x4b6   :  { %v652_v62 = vadd.f32 %v651_v61, %v1497_v63 }
 0x4b7   :  { %v625_v1 = vpop.f32.mrf.mxu0 }
 0x4b8   :  { %v626_v5 = vadd.f32 %v625_v1, %v1497_v63  ;;  %v686_v31 = vsel %vm161_vm5, %v652_v62, -inf }
 0x4b9   :  { %687 = vmax.xlane.f32.xlu2 %v686_v31 }
 0x4ba   :  { %v491_v2 = vpop.f32.mrf.mxu3  ;;  %v683_v3 = vsel %vm161_vm5, %v626_v5, -inf }
 0x4bb   :  { %v515_v4 = vadd.f32 %v514_v60, %v491_v2  ;;  %684 = vmax.xlane.f32.xlu1 %v683_v3 }
 0x4bd   :  { %v542_v6 = vadd.f32 %v539_v59, %v515_v4 }
 0x4bf   :  { %v568_v7 = vadd.f32 %v565_v55, %v542_v6 }
 0x4c1   :  { %v986_v33 = vadd.f32 %v1603_v29, %v568_v7 }
 0x4c2   :  { %v599_v9 = vpop.f32.mrf.mxu3 }
 0x4c3   :  { %v600_v48 = vadd.f32 %v599_v9, %v1497_v63  ;;  %v1611_v35 = vadd.f32 %v986_v33, %v1428_v0 }
 0x4c5   :  { %v680_v10 = vsel %vm161_vm5, %v600_v48, -inf  ;;  %v992_v36 = vsel %vm52_vm0, %v1611_v35, 0.0 }
 0x4c6   :  { %681 = vmax.xlane.f32.xlu2 %v680_v10 }
 0x4de   :  { %828 = vrot.lane.b32.xlu2 %v1543_v47, %s1346_s16 }
 0x4f6   :  { %v691_v11 = vpop.xlane.xlu0 %690 }
 0x4f7   :  { %v695_v12 = vsub.f32 %v678_v57, %v691_v11 }
 0x4f9   :  { %v702_v13 = vmul.f32 1.442695, %v695_v12 }
 0x4fb   :  { %1287 = vpow2.f32 %v702_v13 }
 0x501   :  { %v1288_v14 = vpop.eup %1287 }
 0x502   :  { %1222 = vmatmul.msk.f32.vlgmr.msra.gmra.mxu2 %vm161_vm5, %v1288_v14  ;;  %v713_v15 = vsel %vm161_vm5, %v1288_v14, 0.0 }
 0x507   :  { %714 = vadd.xlane.f32.xlu2 %v713_v15 }
 0x509   :  { %v803_v16 = vpop.permute.xlu0 %802 }
 0x50a   :  { %823 = vmatpush.msra.mxu0 %v803_v16 }
 0x50c   :  { %927 = vmatpush.msrb.mxu0 %v1557_v50 }
 0x52c   :  { %v688_v63 = vpop.xlane.xlu2 %687 }
 0x52d   :  { %v694_v17 = vsub.f32 %v652_v62, %v688_v63 }
 0x52e   :  { %v685_v19 = vpop.xlane.xlu1 %684 }
 0x52f   :  { %v700_v20 = vmul.f32 1.442695, %v694_v17  ;;  %v693_v22 = vsub.f32 %v626_v5, %v685_v19 }
 0x531   :  { %1289 = vpow2.f32 %v700_v20  ;;  %v698_v47 = vmul.f32 1.442695, %v693_v22 }
 0x533   :  { %1291 = vpow2.f32 %v698_v47 }
 0x537   :  { %v1290_v23 = vpop.eup %1289 }
 0x538   :  { %v710_v24 = vsel %vm161_vm5, %v1290_v23, 0.0 }
 0x539   :  { %v1292_v25 = vpop.eup %1291  ;;  %v682_v26 = vpop.xlane.xlu2 %681  ;;  %711 = vadd.xlane.f32.xlu0 %v710_v24 }
 0x53a   :  { %v692_v27 = vsub.f32 %v600_v48, %v682_v26  ;;  %1220 = vmatmul.msk.f32.vlgmr.msra.gmra.mxu0 %vm161_vm5, %v1292_v25  ;;  %v707_v28 = vsel %vm161_vm5, %v1292_v25, 0.0 }
 0x53b   :  { %708 = vadd.xlane.f32.xlu1 %v707_v28 }
 0x53c   :  { %v696_v50 = vmul.f32 1.442695, %v692_v27 }
 0x53e   :  { %1293 = vpow2.f32 %v696_v50 }
 0x541   :  { %v829_v30 = vpop.permute.xlu2 %828 }
 0x542   :  { %849 = vmatpush.msra.mxu1 %v829_v30 }
 0x543   :  { %1221 = vmatmul.msk.f32.vlgmr.msra.gmra.mxu1 %vm161_vm5, %v1290_v23 }
 0x544   :  { %v1294_v32 = vpop.eup %1293  ;;  %951 = vmatpush.msrb.mxu1 %v1568_v21 }
 0x545   :  { %1219 = vmatmul.msk.f32.vlgmr.msra.gmra.mxu3 %vm161_vm5, %v1294_v32  ;;  %v704_v34 = vsel %vm161_vm5, %v1294_v32, 0.0 }
 0x546   :  { %705 = vadd.xlane.f32.xlu1 %v704_v34 }
 0x54e   :  { %993 = vadd.xlane.f32.xlu1 %v992_v36 }
 0x57a   :  { %v715_v37 = vpop.xlane.xlu2 %714 }
 0x57b   :  { %1295 = vrcp.f32 %v715_v37  ;;  %v772_v21 = vand.u32 2147483648, %v715_v37  ;;  %v770_v42 = vand.u32 2147483647, %v715_v37  ;;  %vm766_vm12 = vweird.f32 %v715_v37 }
 0x57d   :  { %v773_v44 = vor.u32 1.1754944e-38, %v772_v21  ;;  %vm771_vm14 = vcmp.eq.f32.partialorder %v770_v42, 8.507059e+37 }
 0x581   :  { %v1296_v38 = vpop.eup %1295 }
 0x582   :  { %v762_v39 = vmul.f32 %v1296_v38, %v715_v37  ;;  %vm767_vm11 = vweird.f32 %v1296_v38 }
 0x583   :  { %vm768_vm13 = vmor %vm766_vm12, %vm767_vm11 }
 0x584   :  { %v763_v40 = vsub.f32 1.0, %v762_v39 }
 0x585   :  { %v877_v46 = vpop.f32.mrf.mxu2 }
 0x586   :  { %v764_v41 = vmul.f32 %v1296_v38, %v763_v40 }
 0x588   :  { %v765_v43 = vadd.f32 %v1296_v38, %v764_v41 }
 0x58a   :  { %v769_v45 = vsel %vm768_vm13, %v1296_v38, %v765_v43  ;;  %v1049_v43 = vld [vmem:[%s1724_s10 + $0x18] sm:$0xff] }
 0x58b   :  { %v774_v0 = vsel %vm771_vm14, %v773_v44, %v769_v45  ;;  %1072 = vmatpush.msra.mxu3 %v1049_v43  ;;  %v1047_v45 = vld [vmem:[%s1724_s10 + $0x8] sm:$0xff] }
 0x58c   :  { %v883_v49 = vmul.f32 %v877_v46, %v774_v0  ;;  %v1046_v0 = vld [vmem:[%s1724_s10] sm:$0xff] }
 0x58e   :  { %1229 = vmatmul.msk.f32.vlgmr.msrb.gmra.mxu2 %vm161_vm5, %v883_v49 }
 0x5ac   :  { %v712_v51 = vpop.xlane.xlu0 %711 }
 0x5ad   :  { %1297 = vrcp.f32 %v712_v51  ;;  %v757_v60 = vand.u32 2147483648, %v712_v51  ;;  %vm751_vm2 = vweird.f32 %v712_v51  ;;  %v755_v2 = vand.u32 2147483647, %v712_v51 }
 0x5ae   :  { %v709_v52 = vpop.xlane.xlu1 %708 }
 0x5af   :  { %1299 = vrcp.f32 %v709_v52  ;;  %v740_v61 = vand.u32 2147483647, %v709_v52  ;;  %v742_v62 = vand.u32 2147483648, %v709_v52  ;;  %vm736_vm3 = vweird.f32 %v709_v52 }
 0x5b0   :  { %v758_v9 = vor.u32 1.1754944e-38, %v757_v60  ;;  %vm756_vm8 = vcmp.eq.f32.partialorder %v755_v2, 8.507059e+37 }
 0x5b1   :  { %v743_v4 = vor.u32 1.1754944e-38, %v742_v62  ;;  %vm741_vm7 = vcmp.eq.f32.partialorder %v740_v61, 8.507059e+37  ;;  %v1261_v61 = vld [vmem:[%s1722_s8] ss:$0 sm:$0xff] }
 0x5b3   :  { %v1298_v53 = vpop.eup %1297 }
 0x5b4   :  { %v747_v54 = vmul.f32 %v1298_v53, %v712_v51  ;;  %vm752_vm15 = vweird.f32 %v1298_v53 }
 0x5b5   :  { %v1300_v55 = vpop.eup %1299  ;;  %vm753_vm4 = vmor %vm751_vm2, %vm752_vm15 }
 0x5b6   :  { %v748_v56 = vsub.f32 1.0, %v747_v54  ;;  %v732_v57 = vmul.f32 %v1300_v55, %v709_v52  ;;  %vm737_vm1 = vweird.f32 %v1300_v55 }
 0x5b7   :  { %vm738_vm6 = vmor %vm736_vm3, %vm737_vm1  ;;  %v825_v10 = vpop.f32.mrf.mxu0 }
 0x5b8   :  { %v749_v58 = vmul.f32 %v1298_v53, %v748_v56  ;;  %v733_v59 = vsub.f32 1.0, %v732_v57 }
 0x5b9   :  { %v706_v1 = vpop.xlane.xlu1 %705 }
 0x5ba   :  { %v734_v5 = vmul.f32 %v1300_v55, %v733_v59  ;;  %1301 = vrcp.f32 %v706_v1  ;;  %v750_v31 = vadd.f32 %v1298_v53, %v749_v58  ;;  %v727_v17 = vand.u32 2147483648, %v706_v1 }
 0x5bb   :  { %v725_v20 = vand.u32 2147483647, %v706_v1  ;;  %vm721_vm10 = vweird.f32 %v706_v1 }
 0x5bc   :  { %v735_v3 = vadd.f32 %v1300_v55, %v734_v5  ;;  %v754_v6 = vsel %vm753_vm4, %v1298_v53, %v750_v31  ;;  %v728_v47 = vor.u32 1.1754944e-38, %v727_v17  ;;  %v1262_v5 = vld [vmem:[%s1723_s9] ss:$0 sm:$0xff] }
 0x5bd   :  { %v759_v13 = vsel %vm756_vm8, %v758_v9, %v754_v6  ;;  %vm726_vm12 = vcmp.eq.f32.partialorder %v725_v20, 8.507059e+37 }
 0x5be   :  { %v739_v7 = vsel %vm738_vm6, %v1300_v55, %v735_v3 }
 0x5bf   :  { %v744_v48 = vsel %vm741_vm7, %v743_v4, %v739_v7 }
 0x5c0   :  { %v1302_v11 = vpop.eup %1301  ;;  %v881_v12 = vmul.f32 %v825_v10, %v744_v48  ;;  %v851_v14 = vpop.f32.mrf.mxu1 }
 0x5c1   :  { %v717_v15 = vmul.f32 %v1302_v11, %v706_v1  ;;  %v882_v16 = vmul.f32 %v851_v14, %v759_v13  ;;  %vm722_vm9 = vweird.f32 %v1302_v11  ;;  %v994_v33 = vpop.xlane.xlu1 %993  ;;  %v1139_v13 = vld [vmem:[%s1726_s12 + $0x70] sm:$0xff] }
 0x5c2   :  { %1224 = vmatmul.msk.f32.vlgmr.msrb.gmra.mxu3 %vm161_vm5, %v881_v12  ;;  %vm723_vm11 = vmor %vm721_vm10, %vm722_vm9  ;;  %v998_v37 = vmul.f32 %v994_v33, %v1432_v8  ;;  %v1126_v33 = vld [vmem:[%s1726_s12 + $0x8] sm:$0xff] }
 0x5c3   :  { %v718_v63 = vsub.f32 1.0, %v717_v15  ;;  %1227 = vmatmul.msk.f32.vlgmr.msrb.gmra.mxu1 %vm161_vm5, %v882_v16 }
 0x5c4   :  { %v1000_v40 = vsub.f32 %v1611_v35, %v998_v37 }
 0x5c5   :  { %v719_v19 = vmul.f32 %v1302_v11, %v718_v63  ;;  %v1137_v63 = vld [vmem:[%s1726_s12 + $0x60] sm:$0xff] }
 0x5c6   :  { %v1002_v41 = vmul.f32 %v1000_v40, %v1000_v40 }
 0x5c7   :  { %v720_v22 = vadd.f32 %v1302_v11, %v719_v19  ;;  %v1136_v19 = vld [vmem:[%s1726_s12 + $0x58] sm:$0xff] }
 0x5c8   :  { %v799_v25 = vpop.f32.mrf.mxu3  ;;  %v1004_v42 = vsel %vm52_vm0, %v1002_v41, 0.0 }
 0x5c9   :  { %v724_v23 = vsel %vm723_vm11, %v1302_v11, %v720_v22  ;;  %v1140_v11 = vld [vmem:[%s1726_s12 + $0x78] sm:$0xff]  ;;  %v1135_v22 = vld [vmem:[%s1726_s12 + $0x50] sm:$0xff] }
 0x5ca   :  { %v729_v24 = vsel %vm726_vm12, %v728_v47, %v724_v23  ;;  %1145 = vmatpush.msra.mxu0 %v1140_v11  ;;  %v1134_v47 = vld [vmem:[%s1726_s12 + $0x48] sm:$0xff]  ;;  %v1133_v23 = vld [vmem:[%s1726_s12 + $0x40] sm:$0xff] }
 0x5cb   :  { %v880_v26 = vmul.f32 %v799_v25, %v729_v24  ;;  %v1132_v24 = vld [vmem:[%s1726_s12 + $0x38] sm:$0xff]  ;;  %v1131_v25 = vld [vmem:[%s1726_s12 + $0x30] sm:$0xff] }
 0x5cc   :  { %1146 = vmatpush.msra.mxu0 %v1139_v13 }
 0x5cd   :  { %1225 = vmatmul.msk.f32.vlgmr.msrb.gmra.mxu0 %vm161_vm5, %v880_v26  ;;  %v1130_v26 = vld [vmem:[%s1726_s12 + $0x28] sm:$0xff] }
 0x611   :  { %v978_v34 = vpop.f32.mrf.mxu2 }
 0x640   :  { %v953_v30 = vpop.f32.mrf.mxu1 }
 0x645   :  { %v906_v27 = vpop.f32.mrf.mxu3 }
 0x64a   :  { %v929_v28 = vpop.f32.mrf.mxu0 }
 0x64b   :  { %v930_v50 = vadd.f32 %v929_v28, %v906_v27  ;;  %v1129_v27 = vld [vmem:[%s1726_s12 + $0x20] sm:$0xff]  ;;  %v1128_v28 = vld [vmem:[%s1726_s12 + $0x18] sm:$0xff] }
 0x64d   :  { %v956_v32 = vadd.f32 %v953_v30, %v930_v50  ;;  %v1263_v50 = vld [vmem:[%s1725_s11] ss:$0 sm:$0xff]  ;;  %v1127_v30 = vld [vmem:[%s1726_s12 + $0x10] sm:$0xff] }
 0x64f   :  { %v981_v36 = vadd.f32 %v978_v34, %v956_v32 }
 0x651   :  { %v987_v38 = vadd.f32 %v1603_v29, %v981_v36  ;;  %v1125_v36 = vld [vmem:[%s1726_s12] sm:$0xff] }
 0x653   :  { %v1622_v39 = vadd.f32 %v987_v38, %v1452_v18  ;;  %v1048_v18 = vld [vmem:[%s1724_s10 + $0x10] sm:$0xff] }
 0x654   :  { %1073 = vmatpush.msra.mxu3 %v1048_v18 }
 0x655   :  { %v995_v21 = vsel %vm52_vm0, %v1622_v39, 0.0 }
 0x656   :  { %996 = vadd.xlane.f32.xlu1 %v995_v21  ;;  %1074 = vmatpush.msra.mxu3 %v1047_v45 }
 0x658   :  { %1075 = vmatpush.msra.mxu3 %v1046_v0 }
 0x65e   :  { %1005 = vadd.xlane.f32.xlu1 %v1004_v42 }
 0x6c9   :  { %v997_v44 = vpop.xlane.xlu1 %996 }
 0x6ca   :  { %v999_v29 = vmul.f32 %v997_v44, %v1432_v8 }
 0x6cc   :  { %v1001_v46 = vsub.f32 %v1622_v39, %v999_v29 }
 0x6ce   :  { %v1003_v49 = vmul.f32 %v1001_v46, %v1001_v46 }
 0x6d0   :  { %v1007_v51 = vsel %vm52_vm0, %v1003_v49, 0.0 }
 0x6d1   :  { %1008 = vadd.xlane.f32.xlu1 %v1007_v51  ;;  %v1006_v52 = vpop.xlane.xlu1 %1005 }
 0x6d2   :  { %v1010_v53 = vmul.f32 %v1006_v52, %v1432_v8 }
 0x6d4   :  { %v1012_v54 = vadd.f32 1e-05, %v1010_v53 }
 0x6d6   :  { %1303 = vrsqrt.f32 %v1012_v54  ;;  %vm1020_vm13 = vweird.f32 %v1012_v54 }
 0x6dc   :  { %v1304_v55 = vpop.eup %1303 }
 0x6dd   :  { %v1015_v56 = vmul.f32 %v1304_v55, %v1012_v54  ;;  %vm1021_vm5 = vweird.f32 %v1304_v55 }
 0x6de   :  { %vm1022_vm14 = vmor %vm1020_vm13, %vm1021_vm5 }
 0x6df   :  { %v1016_v57 = vmul.f32 %v1304_v55, %v1015_v56 }
 0x6e1   :  { %v1017_v58 = vmul.f32 0.5, %v1016_v57 }
 0x6e3   :  { %v1018_v59 = vsub.f32 1.5, %v1017_v58 }
 0x6e5   :  { %v1019_v60 = vmul.f32 %v1304_v55, %v1018_v59 }
 0x6e7   :  { %v1023_v62 = vsel %vm1022_vm14, %v1304_v55, %v1019_v60 }
 0x6e8   :  { %v1034_v1 = vmul.f32 %v1023_v62, %v1000_v40 }
 0x6ea   :  { %v1039_v31 = vmul.f32 %v1261_v61, %v1034_v1 }
 0x6ec   :  { %v1044_v2 = vadd.f32 %v1262_v5, %v1039_v31 }
 0x6ee   :  { %1230 = vmatmul.msk.f32.vlgmr.msra.gmra.mxu3 %vm52_vm0, %v1044_v2 }
 0x744   :  { %v1009_v3 = vpop.xlane.xlu1 %1008 }
 0x745   :  { %v1011_v4 = vmul.f32 %v1009_v3, %v1432_v8  ;;  %v1138_v8 = vld [vmem:[%s1726_s12 + $0x68] sm:$0xff] }
 0x746   :  { %1147 = vmatpush.msra.mxu0 %v1138_v8 }
 0x747   :  { %v1013_v6 = vadd.f32 1e-05, %v1011_v4 }
 0x748   :  { %1148 = vmatpush.msra.mxu0 %v1137_v63 }
 0x749   :  { %1305 = vrsqrt.f32 %v1013_v6  ;;  %vm1030_vm1 = vweird.f32 %v1013_v6 }
 0x74a   :  { %1149 = vmatpush.msra.mxu0 %v1136_v19 }
 0x74c   :  { %1150 = vmatpush.msra.mxu0 %v1135_v22 }
 0x74e   :  { %1151 = vmatpush.msra.mxu0 %v1134_v47 }
 0x74f   :  { %v1306_v7 = vpop.eup %1305 }
 0x750   :  { %v1025_v9 = vmul.f32 %v1306_v7, %v1013_v6  ;;  %vm1031_vm15 = vweird.f32 %v1306_v7  ;;  %1152 = vmatpush.msra.mxu0 %v1133_v23  ;;  %v1264_v6 = vld [vmem:[%s1727_s13] ss:$0 sm:$0xff]  ;;  %s1348_s13 = smov 128  }
 0x751   :  { %vm1032_vm2 = vmor %vm1030_vm1, %vm1031_vm15 }
 0x752   :  { %v1026_v48 = vmul.f32 %v1306_v7, %v1025_v9  ;;  %1153 = vmatpush.msra.mxu0 %v1132_v24 }
 0x754   :  { %v1027_v10 = vmul.f32 0.5, %v1026_v48  ;;  %1154 = vmatpush.msra.mxu0 %v1131_v25 }
 0x756   :  { %v1028_v12 = vsub.f32 1.5, %v1027_v10  ;;  %1155 = vmatpush.msra.mxu0 %v1130_v26 }
 0x758   :  { %v1029_v14 = vmul.f32 %v1306_v7, %v1028_v12  ;;  %1156 = vmatpush.msra.mxu0 %v1129_v27 }
 0x75a   :  { %v1033_v15 = vsel %vm1032_vm2, %v1306_v7, %v1029_v14  ;;  %1157 = vmatpush.msra.mxu0 %v1128_v28 }
 0x75b   :  { %v1035_v16 = vmul.f32 %v1033_v15, %v1001_v46 }
 0x75c   :  { %1158 = vmatpush.msra.mxu0 %v1127_v30 }
 0x75d   :  { %v1040_v17 = vmul.f32 %v1261_v61, %v1035_v16 }
 0x75e   :  { %1159 = vmatpush.msra.mxu0 %v1126_v33 }
 0x75f   :  { %v1045_v20 = vadd.f32 %v1262_v5, %v1040_v17 }
 0x760   :  { %1160 = vmatpush.msra.mxu0 %v1125_v36 }
 0x761   :  { %1231 = vmatmul.msk.f32.gmra.mxu3 %vm52_vm0, %v1045_v20 }
 0x771   :  { %v1077_v32 = vpop.f32.mrf.mxu3 }
 0x772   :  { %v1078_v34 = vadd.f32 %v1263_v50, %v1077_v32 }
 0x774   :  { %v1232_v37 = vmul.f32 -1.702, %v1078_v34 }
 0x776   :  { %v1087_v38 = vmul.f32 1.442695, %v1232_v37 }
 0x778   :  { %1307 = vpow2.f32 %v1087_v38 }
 0x77e   :  { %v1308_v40 = vpop.eup %1307 }
 0x77f   :  { %v1091_v21 = vadd.f32 1.0, %v1308_v40 }
 0x781   :  { %1309 = vrcp.f32 %v1091_v21  ;;  %v1104_v44 = vand.u32 2147483648, %v1091_v21  ;;  %v1102_v29 = vand.u32 2147483647, %v1091_v21  ;;  %vm1098_vm4 = vweird.f32 %v1091_v21 }
 0x783   :  { %v1105_v0 = vor.u32 1.1754944e-38, %v1104_v44  ;;  %vm1103_vm7 = vcmp.eq.f32.partialorder %v1102_v29, 8.507059e+37 }
 0x787   :  { %v1310_v41 = vpop.eup %1309 }
 0x788   :  { %v1094_v42 = vmul.f32 %v1310_v41, %v1091_v21  ;;  %vm1099_vm3 = vweird.f32 %v1310_v41 }
 0x789   :  { %vm1100_vm6 = vmor %vm1098_vm4, %vm1099_vm3 }
 0x78a   :  { %v1095_v43 = vsub.f32 1.0, %v1094_v42 }
 0x78c   :  { %v1096_v18 = vmul.f32 %v1310_v41, %v1095_v43 }
 0x78e   :  { %v1097_v45 = vadd.f32 %v1310_v41, %v1096_v18 }
 0x790   :  { %v1101_v46 = vsel %vm1100_vm6, %v1310_v41, %v1097_v45 }
 0x791   :  { %v1106_v49 = vsel %vm1103_vm7, %v1105_v0, %v1101_v46 }
 0x792   :  { %v1123_v51 = vmul.f32 %v1106_v49, %v1078_v34 }
 0x794   :  { %1161 = vmatmul.f32.vlgmr.msra.gmra.mxu0 %v1123_v51 }
 0x7e4   :  { %v1080_v52 = vpop.f32.mrf.mxu3 }
 0x7e5   :  { %v1081_v53 = vadd.f32 %v1263_v50, %v1080_v52 }
 0x7e7   :  { %v1233_v54 = vmul.f32 -1.702, %v1081_v53 }
 0x7e9   :  { %v1089_v55 = vmul.f32 1.442695, %v1233_v54 }
 0x7eb   :  { %1311 = vpow2.f32 %v1089_v55 }
 0x7f1   :  { %v1312_v56 = vpop.eup %1311 }
 0x7f2   :  { %v1092_v57 = vadd.f32 1.0, %v1312_v56 }
 0x7f4   :  { %1313 = vrcp.f32 %v1092_v57  ;;  %v1119_v61 = vand.u32 2147483648, %v1092_v57  ;;  %v1117_v1 = vand.u32 2147483647, %v1092_v57  ;;  %vm1113_vm9 = vweird.f32 %v1092_v57 }
 0x7f6   :  { %v1120_v31 = vor.u32 1.1754944e-38, %v1119_v61  ;;  %vm1118_vm11 = vcmp.eq.f32.partialorder %v1117_v1, 8.507059e+37 }
 0x7fa   :  { %v1314_v58 = vpop.eup %1313 }
 0x7fb   :  { %v1109_v59 = vmul.f32 %v1314_v58, %v1092_v57  ;;  %vm1114_vm8 = vweird.f32 %v1314_v58 }
 0x7fc   :  { %vm1115_vm10 = vmor %vm1113_vm9, %vm1114_vm8 }
 0x7fd   :  { %v1110_v60 = vsub.f32 1.0, %v1109_v59 }
 0x7ff   :  { %v1111_v62 = vmul.f32 %v1314_v58, %v1110_v60 }
 0x801   :  { %v1112_v5 = vadd.f32 %v1314_v58, %v1111_v62 }
 0x803   :  { %v1116_v2 = vsel %vm1115_vm10, %v1314_v58, %v1112_v5 }
 0x804   :  { %v1121_v3 = vsel %vm1118_vm11, %v1120_v31, %v1116_v2 }
 0x805   :  { %v1124_v4 = vmul.f32 %v1121_v3, %v1081_v53 }
 0x807   :  { %1164 = vmatmul.f32.gmra.mxu0 %v1124_v4 }
 0x811   :  { %v1162_v7 = vpop.f32.mrf.mxu0 }
 0x812   :  { %v1163_v9 = vadd.f32 %v1264_v6, %v1162_v7 }
 0x814   :  { %v1168_v48 = vadd.f32 %v1163_v9, %v1611_v35 }
 0x816   :  { %1170 = vst.msk [vmem:[#allocation2] sm:$0xff] %vm52_vm0, %v1168_v48 }
 0x884   :  { %v1165_v10 = vpop.f32.mrf.mxu0 }
 0x885   :  { %v1166_v11 = vadd.f32 %v1264_v6, %v1165_v10 }
 0x887   :  { %v1169_v12 = vadd.f32 %v1166_v11, %v1622_v39 }
 0x889   :  { %1171 = vst.msk [vmem:[#allocation2 + $0x8] sm:$0xff] %vm52_vm0, %v1169_v12 }
 0x88a   :  { %1184 = dma.vmem_to_hbm [thread:$0]  %s1177_s19, 256, %s1179_s22, [#allocation3], %s1348_s13, %s1348_s13, %s1349_s23  }
 0x88b   :  { %1339 = dma.done.wait [#allocation3], 256  }
 0x88c   :  { %1340 = vsyncadd [#allocation3], 4294967040 }
 0x88d   :  { %1189 = vsyncpa [#allocation3], 1 }

// kernel: tpu_custom_call.1
= control target key start
LH: loop header
LB: loop body
LE: loop exit
PB: predicated region body
PF: predicated region fallthrough
CT: control target
= control target key end

     0   :  { %vm52_vm0 = vcmask 261120   ;;  %s1714_s0 = inlined_call_operand.vmem [shape: f32[2,8,32], index: 0, kind: input, shape index: {}]   ;;  %s1715_s1 = inlined_call_operand.vmem [shape: f32[8,8], index: 1, kind: input, shape index: {}]   ;;  %s1716_s2 = inlined_call_operand.vmem [shape: f32[1,32], index: 2, kind: input, shape index: {}]   ;;  %s1717_s3 = inlined_call_operand.vmem [shape: f32[1,32], index: 3, kind: input, shape index: {}]   ;;  %s1718_s4 = inlined_call_operand.vmem [shape: f32[32,96], index: 4, kind: input, shape index: {}]   ;;  %s1719_s5 = inlined_call_operand.vmem [shape: f32[1,96], index: 5, kind: input, shape index: {}]   ;;  %s1720_s6 = inlined_call_operand.vmem [shape: f32[4,8,32], index: 6, kind: input, shape index: {}]   ;;  %s1721_s7 = inlined_call_operand.vmem [shape: f32[1,32], index: 7, kind: input, shape index: {}]   ;;  %s1722_s8 = inlined_call_operand.vmem [shape: f32[1,32], index: 8, kind: input, shape index: {}]   ;;  %s1723_s9 = inlined_call_operand.vmem [shape: f32[1,32], index: 9, kind: input, shape index: {}]   ;;  %s1724_s10 = inlined_call_operand.vmem [shape: f32[32,128], index: 10, kind: input, shape index: {}]   ;;  %s1725_s11 = inlined_call_operand.vmem [shape: f32[1,128], index: 11, kind: input, shape index: {}]   ;;  %s1726_s12 = inlined_call_operand.vmem [shape: f32[128,32], index: 12, kind: input, shape index: {}]   ;;  %s1727_s13 = inlined_call_operand.vmem [shape: f32[1,32], index: 13, kind: input, shape index: {}]   ;;  %s1728_s14 = inlined_call_operand.hbm [shape: f32[2,8,32], index: 14, kind: output, shape index: {}]  }
   0x1   :  { %v1428_v0 = vld [vmem:[%s1714_s0] sm:$0xff] }
   0x2   :  { %v53_v1 = vsel %vm52_vm0, %v1428_v0, 0.0 }
   0x3   :  { %54 = vadd.xlane.f32.xlu0 %v53_v1 }
   0x4   :  { %19 = vsyncpa [#allocation3], 0  ;;  %v1341_v2 = vmov 32.0   ;;  %v117_v14 = vld [vmem:[%s1718_s4 + $0x18] sm:$0xff]  ;;  %v116_v15 = vld [vmem:[%s1718_s4 + $0x10] sm:$0xff]  ;;  %s1342_s29 = smov 80  }
   0x5   :  { %1265 = vrcp.f32 %v1341_v2  ;;  %140 = vmatpush.msra.mxu1 %v117_v14  ;;  %1234 = vmatpush.msra.mxu2 %v117_v14  ;;  %v115_v16 = vld [vmem:[%s1718_s4 + $0x8] sm:$0xff]  ;;  %v114_v17 = vld [vmem:[%s1718_s4] sm:$0xff]  ;;  %s1345_s30 = smov 120   ;;  %vm161_vm5 = vcmask 64512   ;;  %s1346_s16 = smov 112  }
   0x6   :  { %v1452_v18 = vld [vmem:[%s1714_s0 + $0x8] sm:$0xff]  ;;  %v1257_v29 = vld [vmem:[%s1716_s2] ss:$0 sm:$0xff]  ;;  %s1343_s2 = smov 56   ;;  %s1347_s18 = smov [#allocation2]  }
   0x7   :  { %141 = vmatpush.msra.mxu1 %v116_v15  ;;  %1235 = vmatpush.msra.mxu2 %v116_v15  ;;  %v56_v19 = vsel %vm52_vm0, %v1452_v18, 0.0  ;;  %v1258_v32 = vld [vmem:[%s1717_s3] ss:$0 sm:$0xff]  ;;  %s1344_s3 = smov 104   ;;  %s1176_s19 = sshll.u32 %s1347_s18, 4  ;;  %s1177_s19 = int_to_ptr.vmem [resolvable:$true] %s1176_s19 }
   0x8   :  { %57 = vadd.xlane.f32.xlu1 %v56_v19  ;;  %v1259_v35 = vld [vmem:[%s1719_s5] ss:$0 sm:$0xff]  ;;  %s1178_s22 = sshll.u32 %s1728_s14, 4  ;;  %s1349_s23 = smov 8   ;;  %s1179_s22 = int_to_ptr.hbm [resolvable:$true] %s1178_s22 }
   0x9   :  { %142 = vmatpush.msra.mxu1 %v115_v16  ;;  %1236 = vmatpush.msra.mxu2 %v115_v16  ;;  %v1497_v63 = vld [vmem:[%s1715_s1] sm:$0xff] }
   0xb   :  { %v1266_v3 = vpop.eup %1265  ;;  %143 = vmatpush.msra.mxu1 %v114_v17  ;;  %1237 = vmatpush.msra.mxu2 %v114_v17 }
   0xc   :  { %v60_v4 = vmul.f32 32.0, %v1266_v3  ;;  %vm64_vm1 = vweird.f32 %v1266_v3 }
   0xe   :  { %v61_v5 = vsub.f32 1.0, %v60_v4 }
  0x10   :  { %v62_v6 = vmul.f32 %v1266_v3, %v61_v5 }
  0x12   :  { %v63_v7 = vadd.f32 %v1266_v3, %v62_v6 }
  0x14   :  { %v1432_v8 = vsel %vm64_vm1, %v1266_v3, %v63_v7 }
  0x76   :  { %v55_v9 = vpop.xlane.xlu0 %54 }
  0x77   :  { %v66_v10 = vmul.f32 %v1432_v8, %v55_v9 }
  0x79   :  { %v68_v11 = vsub.f32 %v1428_v0, %v66_v10 }
  0x7b   :  { %v70_v12 = vmul.f32 %v68_v11, %v68_v11  ;;  %v58_v38 = vpop.xlane.xlu1 %57 }
  0x7c   :  { %v67_v39 = vmul.f32 %v1432_v8, %v58_v38 }
  0x7d   :  { %v72_v13 = vsel %vm52_vm0, %v70_v12, 0.0 }
  0x7e   :  { %73 = vadd.xlane.f32.xlu0 %v72_v13  ;;  %v69_v40 = vsub.f32 %v1452_v18, %v67_v39 }
  0x80   :  { %v71_v41 = vmul.f32 %v69_v40, %v69_v40 }
  0x82   :  { %v75_v42 = vsel %vm52_vm0, %v71_v41, 0.0 }
  0xf1   :  { %v74_v20 = vpop.xlane.xlu0 %73 }
  0xf2   :  { %v78_v21 = vmul.f32 %v74_v20, %v1432_v8 }
  0xf4   :  { %v80_v22 = vadd.f32 1e-05, %v78_v21 }
  0xf6   :  { %1267 = vrsqrt.f32 %v80_v22  ;;  %vm88_vm3 = vweird.f32 %v80_v22 }
  0xfc   :  { %v1268_v23 = vpop.eup %1267 }
  0xfd   :  { %v83_v24 = vmul.f32 %v1268_v23, %v80_v22  ;;  %vm89_vm2 = vweird.f32 %v1268_v23 }
  0xfe   :  { %vm90_vm4 = vmor %vm88_vm3, %vm89_vm2 }
  0xff   :  { %v84_v25 = vmul.f32 %v1268_v23, %v83_v24 }
 0x101   :  { %v85_v26 = vmul.f32 0.5, %v84_v25 }
 0x103   :  { %v86_v27 = vsub.f32 1.5, %v85_v26 }
 0x105   :  { %v87_v28 = vmul.f32 %v1268_v23, %v86_v27 }
 0x107   :  { %v91_v30 = vsel %vm90_vm4, %v1268_v23, %v87_v28 }
 0x108   :  { %v102_v31 = vmul.f32 %v91_v30, %v68_v11 }
 0x10a   :  { %v107_v33 = vmul.f32 %v1257_v29, %v102_v31  ;;  %v1526_v31 = vld [vmem:[%s1720_s6 + $0x8] sm:$0xff] }
 0x10c   :  { %v112_v34 = vadd.f32 %v1258_v32, %v107_v33 }
 0x10e   :  { %1190 = vmatmul.msk.f32.vlgmr.msra.gmra.mxu1 %vm52_vm0, %v112_v34 }
 0x18b   :  { %v145_v36 = vpop.f32.mrf.mxu1 }
 0x18c   :  { %v1467_v37 = vadd.f32 %v1259_v35, %v145_v36 }
 0x18e   :  { %155 = vrot.lane.b32.xlu0 %v1467_v37, %s1342_s29  ;;  %157 = vrot.lane.b32.xlu2 %v1467_v37, %s1343_s2 }
 0x18f   :  { %153 = vrot.lane.b32.xlu1 %v1467_v37, %s1344_s3 }
 0x197   :  { %159 = vrot.lane.b32.xlu1 %v1467_v37, %s1345_s30 }
 0x1b7   :  { %76 = vadd.xlane.f32.xlu2 %v75_v42 }
 0x1e8   :  { %v158_v43 = vpop.permute.xlu2 %157 }
 0x1e9   :  { %238 = vrot.lane.b32.xlu1 %v158_v43, %s1345_s30  ;;  %v1247_v10 = vpack.i.bf16 %v158_v43, %v1467_v37 }
 0x200   :  { %v156_v45 = vpop.permute.xlu0 %155 }
 0x201   :  { %v154_v44 = vpop.permute.xlu1 %153 }
 0x202   :  { %186 = vrot.lane.b32.xlu0 %v154_v44, %s1345_s30 }
 0x209   :  { %v160_v46 = vpop.permute.xlu1 %159 }
 0x20a   :  { %212 = vrot.lane.b32.xlu0 %v156_v45, %s1345_s30  ;;  %1192 = vmatpush.xpose.msk.msrb.mxu1 %vm161_vm5, %v160_v46 }
 0x20d   :  { %1193 = vmatmul.msk.f32.vlgmr.msrb.gmra.mxu1 %vm161_vm5, %v1467_v37 }
 0x22a   :  { %v77_v47 = vpop.xlane.xlu2 %76 }
 0x22b   :  { %v79_v48 = vmul.f32 %v77_v47, %v1432_v8 }
 0x22d   :  { %v81_v49 = vadd.f32 1e-05, %v79_v48 }
 0x22f   :  { %1269 = vrsqrt.f32 %v81_v49  ;;  %vm98_vm6 = vweird.f32 %v81_v49 }
 0x235   :  { %v1270_v50 = vpop.eup %1269 }
 0x236   :  { %v93_v51 = vmul.f32 %v1270_v50, %v81_v49  ;;  %vm99_vm7 = vweird.f32 %v1270_v50  ;;  %v1209_v49 = vld [vmem:[%s1720_s6 + $0x18] sm:$0xff] }
 0x237   :  { %vm100_vm8 = vmor %vm98_vm6, %vm99_vm7 }
 0x238   :  { %v94_v52 = vmul.f32 %v1270_v50, %v93_v51 }
 0x23a   :  { %v95_v53 = vmul.f32 0.5, %v94_v52 }
 0x23c   :  { %v96_v54 = vsub.f32 1.5, %v95_v53 }
 0x23e   :  { %v97_v55 = vmul.f32 %v1270_v50, %v96_v54 }
 0x240   :  { %v101_v56 = vsel %vm100_vm8, %v1270_v50, %v97_v55  ;;  %v1557_v50 = vld [vmem:[%s1720_s6] sm:$0xff] }
 0x241   :  { %v103_v57 = vmul.f32 %v101_v56, %v69_v40  ;;  %512 = vmatpush.msra.mxu0 %v1557_v50 }
 0x243   :  { %v108_v58 = vmul.f32 %v1257_v29, %v103_v57 }
 0x245   :  { %v113_v59 = vadd.f32 %v1258_v32, %v108_v58 }
 0x247   :  { %1191 = vmatmul.msk.f32.vlgmr.msra.gmra.mxu2 %vm52_vm0, %v113_v59 }
 0x25b   :  { %v239_v60 = vpop.permute.xlu1 %238 }
 0x25c   :  { %1198 = vmatpush.xpose.msk.msra.mxu1 %vm161_vm5, %v239_v60 }
 0x25f   :  { %1199 = vmatmul.msk.f32.vlgmr.msra.gmra.mxu1 %vm161_vm5, %v158_v43 }
 0x274   :  { %v187_v61 = vpop.permute.xlu0 %186 }
 0x275   :  { %1194 = vmatpush.xpose.msk.msrb.mxu2 %vm161_vm5, %v187_v61 }
 0x278   :  { %1195 = vmatmul.msk.f32.vlgmr.msrb.gmra.mxu2 %vm161_vm5, %v154_v44 }
 0x27c   :  { %v213_v62 = vpop.permute.xlu0 %212 }
 0x27d   :  { %1196 = vmatpush.xpose.msk.msra.mxu3 %vm161_vm5, %v213_v62 }
 0x280   :  { %1197 = vmatmul.msk.f32.vlgmr.msra.gmra.mxu3 %vm161_vm5, %v156_v45 }
 0x28a   :  { %v183_v1 = vpop.f32.mrf.mxu1 }
 0x28b   :  { %v184_v2 = vadd.f32 %v183_v1, %v1497_v63 }
 0x28d   :  { %v264_v3 = vsel %vm161_vm5, %v184_v2, -inf }
 0x28e   :  { %265 = vmax.xlane.f32.xlu1 %v264_v3 }
 0x2a7   :  { %412 = vrot.lane.b32.xlu1 %v156_v45, %s1346_s16 }
 0x2ca   :  { %v148_v4 = vpop.f32.mrf.mxu2 }
 0x2cb   :  { %v1502_v5 = vadd.f32 %v1259_v35, %v148_v4 }
 0x2cd   :  { %576 = vrot.lane.b32.xlu1 %v1502_v5, %s1345_s30 }
 0x2dc   :  { %v261_v6 = vpop.f32.mrf.mxu1 }
 0x2dd   :  { %v262_v7 = vadd.f32 %v261_v6, %v1497_v63 }
 0x2df   :  { %v273_v9 = vsel %vm161_vm5, %v262_v7, -inf }
 0x2e0   :  { %274 = vmax.xlane.f32.xlu2 %v273_v9 }
 0x2f8   :  { %1248 = vrot.lane.b32.xlu2 %v1247_v10, %s1346_s16 }
 0x2fb   :  { %v209_v11 = vpop.f32.mrf.mxu2 }
 0x2fc   :  { %v210_v12 = vadd.f32 %v209_v11, %v1497_v63 }
 0x2fe   :  { %v267_v13 = vsel %vm161_vm5, %v210_v12, -inf }
 0x2ff   :  { %268 = vmax.xlane.f32.xlu0 %v267_v13 }
 0x300   :  { %386 = vrot.lane.b32.xlu2 %v154_v44, %s1346_s16 }
 0x301   :  { %v266_v14 = vpop.xlane.xlu1 %265 }
 0x302   :  { %v276_v20 = vsub.f32 %v184_v2, %v266_v14 }
 0x303   :  { %v235_v16 = vpop.f32.mrf.mxu3 }
 0x304   :  { %v236_v17 = vadd.f32 %v235_v16, %v1497_v63  ;;  %v280_v21 = vmul.f32 1.442695, %v276_v20 }
 0x306   :  { %v270_v19 = vsel %vm161_vm5, %v236_v17, -inf  ;;  %1271 = vpow2.f32 %v280_v21  ;;  %v1568_v21 = vld [vmem:[%s1720_s6 + $0x10] sm:$0xff] }
 0x30c   :  { %v1272_v28 = vpop.eup %1271 }
 0x30d   :  { %v288_v33 = vsel %vm161_vm5, %v1272_v28, 0.0 }
 0x313   :  { %574 = vrot.lane.b32.xlu0 %v1502_v5, %s1343_s2 }
 0x319   :  { %v413_v15 = vpop.permute.xlu1 %412 }
 0x31a   :  { %433 = vmatpush.msrb.mxu1 %v413_v15 }
 0x31b   :  { %570 = vrot.lane.b32.xlu0 %v1502_v5, %s1344_s3 }
 0x31c   :  { %537 = vmatpush.msra.mxu1 %v1568_v21 }
 0x329   :  { %271 = vmax.xlane.f32.xlu2 %v270_v19 }
 0x33f   :  { %v577_v38 = vpop.permute.xlu1 %576 }
 0x341   :  { %572 = vrot.lane.b32.xlu2 %v1502_v5, %s1342_s29 }
 0x353   :  { %v275_v22 = vpop.xlane.xlu2 %274 }
 0x354   :  { %v279_v23 = vsub.f32 %v262_v7, %v275_v22 }
 0x356   :  { %v286_v24 = vmul.f32 1.442695, %v279_v23 }
 0x358   :  { %1273 = vpow2.f32 %v286_v24 }
 0x35b   :  { %v1249_v25 = vpop.permute.xlu2 %1248 }
 0x35c   :  { %v1251_v26 = vunpack.i.h.bf16 %v1249_v25  ;;  %v1250_v27 = vunpack.i.l.bf16 %v1249_v25 }
 0x35e   :  { %v1274_v29 = vpop.eup %1273  ;;  %381 = vmatpush.msra.mxu2 %v1250_v27 }
 0x35f   :  { %1200 = vmatmul.msk.f32.vlgmr.msra.gmra.mxu2 %vm161_vm5, %v1272_v28  ;;  %v297_v30 = vsel %vm161_vm5, %v1274_v29, 0.0 }
 0x360   :  { %459 = vmatpush.msrb.mxu2 %v1251_v26  ;;  %298 = vadd.xlane.f32.xlu1 %v297_v30 }
 0x362   :  { %563 = vmatpush.msra.mxu2 %v1209_v49 }
 0x363   :  { %v387_v32 = vpop.permute.xlu2 %386 }
 0x364   :  { %407 = vmatpush.msrb.mxu3 %v387_v32 }
 0x366   :  { %489 = vmatpush.msra.mxu3 %v1526_v31 }
 0x367   :  { %1203 = vmatmul.msk.f32.vlgmr.msrb.gmra.mxu2 %vm161_vm5, %v1274_v29 }
 0x36a   :  { %289 = vadd.xlane.f32.xlu2 %v288_v33 }
 0x372   :  { %v269_v34 = vpop.xlane.xlu0 %268 }
 0x373   :  { %v277_v35 = vsub.f32 %v210_v12, %v269_v34 }
 0x375   :  { %v282_v36 = vmul.f32 1.442695, %v277_v35 }
 0x377   :  { %1275 = vpow2.f32 %v282_v36 }
 0x37d   :  { %v1276_v37 = vpop.eup %1275 }
 0x37e   :  { %1201 = vmatmul.msk.f32.vlgmr.msrb.gmra.mxu3 %vm161_vm5, %v1276_v37  ;;  %v291_v46 = vsel %vm161_vm5, %v1276_v37, 0.0 }
 0x37f   :  { %1211 = vmatpush.xpose.msk.msrb.mxu3 %vm161_vm5, %v577_v38 }
 0x385   :  { %v1533_v39 = vpop.permute.xlu0 %574 }
 0x386   :  { %v1252_v40 = vpack.i.bf16 %v1502_v5, %v1533_v39  ;;  %654 = vrot.lane.b32.xlu0 %v1533_v39, %s1345_s30 }
 0x388   :  { %1253 = vrot.lane.b32.xlu2 %v1252_v40, %s1346_s16 }
 0x38d   :  { %v1547_v48 = vpop.permute.xlu0 %570 }
 0x39c   :  { %v272_v41 = vpop.xlane.xlu2 %271 }
 0x39d   :  { %v278_v42 = vsub.f32 %v236_v17, %v272_v41 }
 0x39f   :  { %v284_v43 = vmul.f32 1.442695, %v278_v42 }
 0x3a1   :  { %1277 = vpow2.f32 %v284_v43 }
 0x3a4   :  { %v1543_v47 = vpop.permute.xlu2 %572 }
 0x3a7   :  { %v1278_v44 = vpop.eup %1277 }
 0x3a8   :  { %1202 = vmatmul.msk.f32.vlgmr.msrb.gmra.mxu1 %vm161_vm5, %v1278_v44  ;;  %v294_v45 = vsel %vm161_vm5, %v1278_v44, 0.0 }
 0x3a9   :  { %295 = vadd.xlane.f32.xlu1 %v294_v45 }
 0x3b0   :  { %292 = vadd.xlane.f32.xlu0 %v291_v46 }
 0x3c2   :  { %628 = vrot.lane.b32.xlu1 %v1543_v47, %s1345_s30 }
 0x3c4   :  { %602 = vrot.lane.b32.xlu0 %v1547_v48, %s1345_s30 }
 0x3d3   :  { %v299_v51 = vpop.xlane.xlu1 %298 }
 0x3d4   :  { %1279 = vrcp.f32 %v299_v51  ;;  %v356_v60 = vand.u32 2147483648, %v299_v51  ;;  %vm350_vm10 = vweird.f32 %v299_v51  ;;  %v354_v62 = vand.u32 2147483647, %v299_v51 }
 0x3d6   :  { %v357_v4 = vor.u32 1.1754944e-38, %v356_v60  ;;  %vm355_vm13 = vcmp.eq.f32.partialorder %v354_v62, 8.507059e+37 }
 0x3da   :  { %v1280_v52 = vpop.eup %1279 }
 0x3db   :  { %v346_v53 = vmul.f32 %v1280_v52, %v299_v51  ;;  %vm351_vm9 = vweird.f32 %v1280_v52 }
 0x3dc   :  { %vm352_vm11 = vmor %vm350_vm10, %vm351_vm9 }
 0x3dd   :  { %v347_v54 = vsub.f32 1.0, %v346_v53  ;;  %v290_v55 = vpop.xlane.xlu2 %289 }
 0x3de   :  { %1281 = vrcp.f32 %v290_v55  ;;  %v311_v3 = vand.u32 2147483648, %v290_v55  ;;  %v309_v7 = vand.u32 2147483647, %v290_v55  ;;  %vm305_vm14 = vweird.f32 %v290_v55 }
 0x3df   :  { %v348_v56 = vmul.f32 %v1280_v52, %v347_v54 }
 0x3e0   :  { %v312_v13 = vor.u32 1.1754944e-38, %v311_v3  ;;  %vm310_vm1 = vcmp.eq.f32.partialorder %v309_v7, 8.507059e+37 }
 0x3e1   :  { %v349_v58 = vadd.f32 %v1280_v52, %v348_v56 }
 0x3e2   :  { %v383_v57 = vpop.f32.mrf.mxu2 }
 0x3e3   :  { %v353_v2 = vsel %vm352_vm11, %v1280_v52, %v349_v58 }
 0x3e4   :  { %v1282_v59 = vpop.eup %1281  ;;  %v358_v9 = vsel %vm355_vm13, %v357_v4, %v353_v2 }
 0x3e5   :  { %v301_v61 = vmul.f32 %v1282_v59, %v290_v55  ;;  %vm306_vm12 = vweird.f32 %v1282_v59  ;;  %v1254_v17 = vpop.permute.xlu2 %1253 }
 0x3e6   :  { %vm307_vm15 = vmor %vm305_vm14, %vm306_vm12  ;;  %v1255_v19 = vunpack.i.l.bf16 %v1254_v17  ;;  %v1256_v53 = vunpack.i.h.bf16 %v1254_v17 }
 0x3e7   :  { %v302_v1 = vsub.f32 1.0, %v301_v61 }
 0x3e9   :  { %v303_v6 = vmul.f32 %v1282_v59, %v302_v1 }
 0x3ea   :  { %v461_v10 = vpop.f32.mrf.mxu2 }
 0x3eb   :  { %v304_v11 = vadd.f32 %v1282_v59, %v303_v6  ;;  %v467_v12 = vmul.f32 %v461_v10, %v358_v9 }
 0x3ed   :  { %v308_v14 = vsel %vm307_vm15, %v1282_v59, %v304_v11  ;;  %1210 = vmatmul.msk.f32.vlgmr.msra.gmra.mxu2 %vm161_vm5, %v467_v12 }
 0x3ee   :  { %v313_v15 = vsel %vm310_vm1, %v312_v13, %v308_v14 }
 0x3ef   :  { %v464_v16 = vmul.f32 %v383_v57, %v313_v15 }
 0x3f1   :  { %1206 = vmatmul.msk.f32.vlgmr.msra.gmra.mxu0 %vm161_vm5, %v464_v16 }
 0x3f8   :  { %v655_v20 = vpop.permute.xlu0 %654 }
 0x3f9   :  { %1217 = vmatpush.xpose.msk.msrb.mxu2 %vm161_vm5, %v655_v20 }
 0x3fc   :  { %1218 = vmatmul.msk.f32.vlgmr.msrb.gmra.mxu2 %vm161_vm5, %v1533_v39 }
 0x3fd   :  { %875 = vmatpush.msra.mxu2 %v1255_v19 }
 0x3ff   :  { %976 = vmatpush.msrb.mxu2 %v1209_v49 }
 0x401   :  { %v409_v46 = vpop.f32.mrf.mxu3 }
 0x41c   :  { %v296_v22 = vpop.xlane.xlu1 %295 }
 0x41d   :  { %1283 = vrcp.f32 %v296_v22  ;;  %v341_v27 = vand.u32 2147483648, %v296_v22  ;;  %v339_v29 = vand.u32 2147483647, %v296_v22  ;;  %vm335_vm3 = vweird.f32 %v296_v22 }
 0x41f   :  { %v342_v34 = vor.u32 1.1754944e-38, %v341_v27  ;;  %vm340_vm6 = vcmp.eq.f32.partialorder %v339_v29, 8.507059e+37  ;;  %v1603_v29 = vld [vmem:[%s1721_s7] ss:$0 sm:$0xff] }
 0x423   :  { %v1284_v23 = vpop.eup %1283  ;;  %v293_v24 = vpop.xlane.xlu0 %292 }
 0x424   :  { %v331_v25 = vmul.f32 %v1284_v23, %v296_v22  ;;  %1285 = vrcp.f32 %v293_v24  ;;  %vm336_vm2 = vweird.f32 %v1284_v23  ;;  %v326_v39 = vand.u32 2147483648, %v293_v24 }
 0x425   :  { %vm337_vm4 = vmor %vm335_vm3, %vm336_vm2  ;;  %v435_v38 = vpop.f32.mrf.mxu1  ;;  %v324_v42 = vand.u32 2147483647, %v293_v24  ;;  %vm320_vm8 = vweird.f32 %v293_v24 }
 0x426   :  { %v332_v26 = vsub.f32 1.0, %v331_v25  ;;  %v327_v44 = vor.u32 1.1754944e-38, %v326_v39 }
 0x427   :  { %vm325_vm10 = vcmp.eq.f32.partialorder %v324_v42, 8.507059e+37 }
 0x428   :  { %v333_v28 = vmul.f32 %v1284_v23, %v332_v26 }
 0x42a   :  { %v1286_v30 = vpop.eup %1285  ;;  %v334_v32 = vadd.f32 %v1284_v23, %v333_v28 }
 0x42b   :  { %v316_v33 = vmul.f32 %v1286_v30, %v293_v24  ;;  %vm321_vm7 = vweird.f32 %v1286_v30 }
 0x42c   :  { %v338_v35 = vsel %vm337_vm4, %v1284_v23, %v334_v32  ;;  %vm322_vm9 = vmor %vm320_vm8, %vm321_vm7 }
 0x42d   :  { %v317_v36 = vsub.f32 1.0, %v316_v33  ;;  %v343_v37 = vsel %vm340_vm6, %v342_v34, %v338_v35 }
 0x42e   :  { %v466_v40 = vmul.f32 %v435_v38, %v343_v37 }
 0x42f   :  { %v318_v41 = vmul.f32 %v1286_v30, %v317_v36 }
 0x430   :  { %1208 = vmatmul.msk.f32.vlgmr.msra.gmra.mxu1 %vm161_vm5, %v466_v40 }
 0x431   :  { %v319_v43 = vadd.f32 %v1286_v30, %v318_v41 }
 0x433   :  { %v323_v45 = vsel %vm322_vm9, %v1286_v30, %v319_v43 }
 0x434   :  { %v328_v49 = vsel %vm325_vm10, %v327_v44, %v323_v45  ;;  %v629_v51 = vpop.permute.xlu1 %628 }
 0x435   :  { %1215 = vmatpush.xpose.msk.msrb.mxu1 %vm161_vm5, %v629_v51  ;;  %v465_v52 = vmul.f32 %v409_v46, %v328_v49 }
 0x436   :  { %v603_v54 = vpop.permute.xlu0 %602 }
 0x437   :  { %1205 = vmatmul.msk.f32.vlgmr.msra.gmra.mxu3 %vm161_vm5, %v465_v52  ;;  %1213 = vmatpush.xpose.msk.msrb.mxu0 %vm161_vm5, %v603_v54 }
 0x438   :  { %797 = vmatpush.msra.mxu3 %v1256_v53  ;;  %1216 = vmatmul.msk.f32.vlgmr.msrb.gmra.mxu1 %vm161_vm5, %v1543_v47 }
 0x43a   :  { %1214 = vmatmul.msk.f32.vlgmr.msrb.gmra.mxu0 %vm161_vm5, %v1547_v48 }
 0x43f   :  { %1212 = vmatmul.msk.f32.vlgmr.msrb.gmra.mxu3 %vm161_vm5, %v1502_v5 }
 0x440   :  { %904 = vmatpush.msrb.mxu3 %v1526_v31 }
 0x46e   :  { %v514_v60 = vpop.f32.mrf.mxu0 }
 0x470   :  { %v565_v55 = vpop.f32.mrf.mxu2 }
 0x47f   :  { %v677_v56 = vpop.f32.mrf.mxu2 }
 0x480   :  { %v678_v57 = vadd.f32 %v677_v56, %v1497_v63 }
 0x482   :  { %v689_v58 = vsel %vm161_vm5, %v678_v57, -inf }
 0x483   :  { %690 = vmax.xlane.f32.xlu0 %v689_v58 }
 0x497   :  { %802 = vrot.lane.b32.xlu0 %v1547_v48, %s1346_s16 }
 0x4ad   :  { %v539_v59 = vpop.f32.mrf.mxu1 }
 0x4b5   :  { %v651_v61 = vpop.f32.mrf.mxu1 }
 0x4b6   :  { %v652_v62 = vadd.f32 %v651_v61, %v1497_v63 }
 0x4b7   :  { %v625_v1 = vpop.f32.mrf.mxu0 }
 0x4b8   :  { %v626_v5 = vadd.f32 %v625_v1, %v1497_v63  ;;  %v686_v31 = vsel %vm161_vm5, %v652_v62, -inf }
 0x4b9   :  { %687 = vmax.xlane.f32.xlu2 %v686_v31 }
 0x4ba   :  { %v491_v2 = vpop.f32.mrf.mxu3  ;;  %v683_v3 = vsel %vm161_vm5, %v626_v5, -inf }
 0x4bb   :  { %v515_v4 = vadd.f32 %v514_v60, %v491_v2  ;;  %684 = vmax.xlane.f32.xlu1 %v683_v3 }
 0x4bd   :  { %v542_v6 = vadd.f32 %v539_v59, %v515_v4 }
 0x4bf   :  { %v568_v7 = vadd.f32 %v565_v55, %v542_v6 }
 0x4c1   :  { %v986_v33 = vadd.f32 %v1603_v29, %v568_v7 }
 0x4c2   :  { %v599_v9 = vpop.f32.mrf.mxu3 }
 0x4c3   :  { %v600_v48 = vadd.f32 %v599_v9, %v1497_v63  ;;  %v1611_v35 = vadd.f32 %v986_v33, %v1428_v0 }
 0x4c5   :  { %v680_v10 = vsel %vm161_vm5, %v600_v48, -inf  ;;  %v992_v36 = vsel %vm52_vm0, %v1611_v35, 0.0 }
 0x4c6   :  { %681 = vmax.xlane.f32.xlu2 %v680_v10 }
 0x4de   :  { %828 = vrot.lane.b32.xlu2 %v1543_v47, %s1346_s16 }
 0x4f6   :  { %v691_v11 = vpop.xlane.xlu0 %690 }
 0x4f7   :  { %v695_v12 = vsub.f32 %v678_v57, %v691_v11 }
 0x4f9   :  { %v702_v13 = vmul.f32 1.442695, %v695_v12 }
 0x4fb   :  { %1287 = vpow2.f32 %v702_v13 }
 0x501   :  { %v1288_v14 = vpop.eup %1287 }
 0x502   :  { %1222 = vmatmul.msk.f32.vlgmr.msra.gmra.mxu2 %vm161_vm5, %v1288_v14  ;;  %v713_v15 = vsel %vm161_vm5, %v1288_v14, 0.0 }
 0x507   :  { %714 = vadd.xlane.f32.xlu2 %v713_v15 }
 0x509   :  { %v803_v16 = vpop.permute.xlu0 %802 }
 0x50a   :  { %823 = vmatpush.msra.mxu0 %v803_v16 }
 0x50c   :  { %927 = vmatpush.msrb.mxu0 %v1557_v50 }
 0x52c   :  { %v688_v63 = vpop.xlane.xlu2 %687 }
 0x52d   :  { %v694_v17 = vsub.f32 %v652_v62, %v688_v63 }
 0x52e   :  { %v685_v19 = vpop.xlane.xlu1 %684 }
 0x52f   :  { %v700_v20 = vmul.f32 1.442695, %v694_v17  ;;  %v693_v22 = vsub.f32 %v626_v5, %v685_v19 }
 0x531   :  { %1289 = vpow2.f32 %v700_v20  ;;  %v698_v47 = vmul.f32 1.442695, %v693_v22 }
 0x533   :  { %1291 = vpow2.f32 %v698_v47 }
 0x537   :  { %v1290_v23 = vpop.eup %1289 }
 0x538   :  { %v710_v24 = vsel %vm161_vm5, %v1290_v23, 0.0 }
 0x539   :  { %v1292_v25 = vpop.eup %1291  ;;  %v682_v26 = vpop.xlane.xlu2 %681  ;;  %711 = vadd.xlane.f32.xlu0 %v710_v24 }
 0x53a   :  { %v692_v27 = vsub.f32 %v600_v48, %v682_v26  ;;  %1220 = vmatmul.msk.f32.vlgmr.msra.gmra.mxu0 %vm161_vm5, %v1292_v25  ;;  %v707_v28 = vsel %vm161_vm5, %v1292_v25, 0.0 }
 0x53b   :  { %708 = vadd.xlane.f32.xlu1 %v707_v28 }
 0x53c   :  { %v696_v50 = vmul.f32 1.442695, %v692_v27 }
 0x53e   :  { %1293 = vpow2.f32 %v696_v50 }
 0x541   :  { %v829_v30 = vpop.permute.xlu2 %828 }
 0x542   :  { %849 = vmatpush.msra.mxu1 %v829_v30 }
 0x543   :  { %1221 = vmatmul.msk.f32.vlgmr.msra.gmra.mxu1 %vm161_vm5, %v1290_v23 }
 0x544   :  { %v1294_v32 = vpop.eup %1293  ;;  %951 = vmatpush.msrb.mxu1 %v1568_v21 }
 0x545   :  { %1219 = vmatmul.msk.f32.vlgmr.msra.gmra.mxu3 %vm161_vm5, %v1294_v32  ;;  %v704_v34 = vsel %vm161_vm5, %v1294_v32, 0.0 }
 0x546   :  { %705 = vadd.xlane.f32.xlu1 %v704_v34 }
 0x54e   :  { %993 = vadd.xlane.f32.xlu1 %v992_v36 }
 0x57a   :  { %v715_v37 = vpop.xlane.xlu2 %714 }
 0x57b   :  { %1295 = vrcp.f32 %v715_v37  ;;  %v772_v21 = vand.u32 2147483648, %v715_v37  ;;  %v770_v42 = vand.u32 2147483647, %v715_v37  ;;  %vm766_vm12 = vweird.f32 %v715_v37 }
 0x57d   :  { %v773_v44 = vor.u32 1.1754944e-38, %v772_v21  ;;  %vm771_vm14 = vcmp.eq.f32.partialorder %v770_v42, 8.507059e+37 }
 0x581   :  { %v1296_v38 = vpop.eup %1295 }
 0x582   :  { %v762_v39 = vmul.f32 %v1296_v38, %v715_v37  ;;  %vm767_vm11 = vweird.f32 %v1296_v38 }
 0x583   :  { %vm768_vm13 = vmor %vm766_vm12, %vm767_vm11 }
 0x584   :  { %v763_v40 = vsub.f32 1.0, %v762_v39 }
 0x585   :  { %v877_v46 = vpop.f32.mrf.mxu2 }
 0x586   :  { %v764_v41 = vmul.f32 %v1296_v38, %v763_v40 }
 0x588   :  { %v765_v43 = vadd.f32 %v1296_v38, %v764_v41 }
 0x58a   :  { %v769_v45 = vsel %vm768_vm13, %v1296_v38, %v765_v43  ;;  %v1049_v43 = vld [vmem:[%s1724_s10 + $0x18] sm:$0xff] }
 0x58b   :  { %v774_v0 = vsel %vm771_vm14, %v773_v44, %v769_v45  ;;  %1072 = vmatpush.msra.mxu3 %v1049_v43  ;;  %v1047_v45 = vld [vmem:[%s1724_s10 + $0x8] sm:$0xff] }
 0x58c   :  { %v883_v49 = vmul.f32 %v877_v46, %v774_v0  ;;  %v1046_v0 = vld [vmem:[%s1724_s10] sm:$0xff] }
 0x58e   :  { %1229 = vmatmul.msk.f32.vlgmr.msrb.gmra.mxu2 %vm161_vm5, %v883_v49 }
 0x5ac   :  { %v712_v51 = vpop.xlane.xlu0 %711 }
 0x5ad   :  { %1297 = vrcp.f32 %v712_v51  ;;  %v757_v60 = vand.u32 2147483648, %v712_v51  ;;  %vm751_vm2 = vweird.f32 %v712_v51  ;;  %v755_v2 = vand.u32 2147483647, %v712_v51 }
 0x5ae   :  { %v709_v52 = vpop.xlane.xlu1 %708 }
 0x5af   :  { %1299 = vrcp.f32 %v709_v52  ;;  %v740_v61 = vand.u32 2147483647, %v709_v52  ;;  %v742_v62 = vand.u32 2147483648, %v709_v52  ;;  %vm736_vm3 = vweird.f32 %v709_v52 }
 0x5b0   :  { %v758_v9 = vor.u32 1.1754944e-38, %v757_v60  ;;  %vm756_vm8 = vcmp.eq.f32.partialorder %v755_v2, 8.507059e+37 }
 0x5b1   :  { %v743_v4 = vor.u32 1.1754944e-38, %v742_v62  ;;  %vm741_vm7 = vcmp.eq.f32.partialorder %v740_v61, 8.507059e+37  ;;  %v1261_v61 = vld [vmem:[%s1722_s8] ss:$0 sm:$0xff] }
 0x5b3   :  { %v1298_v53 = vpop.eup %1297 }
 0x5b4   :  { %v747_v54 = vmul.f32 %v1298_v53, %v712_v51  ;;  %vm752_vm15 = vweird.f32 %v1298_v53 }
 0x5b5   :  { %v1300_v55 = vpop.eup %1299  ;;  %vm753_vm4 = vmor %vm751_vm2, %vm752_vm15 }
 0x5b6   :  { %v748_v56 = vsub.f32 1.0, %v747_v54  ;;  %v732_v57 = vmul.f32 %v1300_v55, %v709_v52  ;;  %vm737_vm1 = vweird.f32 %v1300_v55 }
 0x5b7   :  { %vm738_vm6 = vmor %vm736_vm3, %vm737_vm1  ;;  %v825_v10 = vpop.f32.mrf.mxu0 }
 0x5b8   :  { %v749_v58 = vmul.f32 %v1298_v53, %v748_v56  ;;  %v733_v59 = vsub.f32 1.0, %v732_v57 }
 0x5b9   :  { %v706_v1 = vpop.xlane.xlu1 %705 }
 0x5ba   :  { %v734_v5 = vmul.f32 %v1300_v55, %v733_v59  ;;  %1301 = vrcp.f32 %v706_v1  ;;  %v750_v31 = vadd.f32 %v1298_v53, %v749_v58  ;;  %v727_v17 = vand.u32 2147483648, %v706_v1 }
 0x5bb   :  { %v725_v20 = vand.u32 2147483647, %v706_v1  ;;  %vm721_vm10 = vweird.f32 %v706_v1 }
 0x5bc   :  { %v735_v3 = vadd.f32 %v1300_v55, %v734_v5  ;;  %v754_v6 = vsel %vm753_vm4, %v1298_v53, %v750_v31  ;;  %v728_v47 = vor.u32 1.1754944e-38, %v727_v17  ;;  %v1262_v5 = vld [vmem:[%s1723_s9] ss:$0 sm:$0xff] }
 0x5bd   :  { %v759_v13 = vsel %vm756_vm8, %v758_v9, %v754_v6  ;;  %vm726_vm12 = vcmp.eq.f32.partialorder %v725_v20, 8.507059e+37 }
 0x5be   :  { %v739_v7 = vsel %vm738_vm6, %v1300_v55, %v735_v3 }
 0x5bf   :  { %v744_v48 = vsel %vm741_vm7, %v743_v4, %v739_v7 }
 0x5c0   :  { %v1302_v11 = vpop.eup %1301  ;;  %v881_v12 = vmul.f32 %v825_v10, %v744_v48  ;;  %v851_v14 = vpop.f32.mrf.mxu1 }
 0x5c1   :  { %v717_v15 = vmul.f32 %v1302_v11, %v706_v1  ;;  %v882_v16 = vmul.f32 %v851_v14, %v759_v13  ;;  %vm722_vm9 = vweird.f32 %v1302_v11  ;;  %v994_v33 = vpop.xlane.xlu1 %993  ;;  %v1139_v13 = vld [vmem:[%s1726_s12 + $0x70] sm:$0xff] }
 0x5c2   :  { %1224 = vmatmul.msk.f32.vlgmr.msrb.gmra.mxu3 %vm161_vm5, %v881_v12  ;;  %vm723_vm11 = vmor %vm721_vm10, %vm722_vm9  ;;  %v998_v37 = vmul.f32 %v994_v33, %v1432_v8  ;;  %v1126_v33 = vld [vmem:[%s1726_s12 + $0x8] sm:$0xff] }
 0x5c3   :  { %v718_v63 = vsub.f32 1.0, %v717_v15  ;;  %1227 = vmatmul.msk.f32.vlgmr.msrb.gmra.mxu1 %vm161_vm5, %v882_v16 }
 0x5c4   :  { %v1000_v40 = vsub.f32 %v1611_v35, %v998_v37 }
 0x5c5   :  { %v719_v19 = vmul.f32 %v1302_v11, %v718_v63  ;;  %v1137_v63 = vld [vmem:[%s1726_s12 + $0x60] sm:$0xff] }
 0x5c6   :  { %v1002_v41 = vmul.f32 %v1000_v40, %v1000_v40 }
 0x5c7   :  { %v720_v22 = vadd.f32 %v1302_v11, %v719_v19  ;;  %v1136_v19 = vld [vmem:[%s1726_s12 + $0x58] sm:$0xff] }
 0x5c8   :  { %v799_v25 = vpop.f32.mrf.mxu3  ;;  %v1004_v42 = vsel %vm52_vm0, %v1002_v41, 0.0 }
 0x5c9   :  { %v724_v23 = vsel %vm723_vm11, %v1302_v11, %v720_v22  ;;  %v1140_v11 = vld [vmem:[%s1726_s12 + $0x78] sm:$0xff]  ;;  %v1135_v22 = vld [vmem:[%s1726_s12 + $0x50] sm:$0xff] }
 0x5ca   :  { %v729_v24 = vsel %vm726_vm12, %v728_v47, %v724_v23  ;;  %1145 = vmatpush.msra.mxu0 %v1140_v11  ;;  %v1134_v47 = vld [vmem:[%s1726_s12 + $0x48] sm:$0xff]  ;;  %v1133_v23 = vld [vmem:[%s1726_s12 + $0x40] sm:$0xff] }
 0x5cb   :  { %v880_v26 = vmul.f32 %v799_v25, %v729_v24  ;;  %v1132_v24 = vld [vmem:[%s1726_s12 + $0x38] sm:$0xff]  ;;  %v1131_v25 = vld [vmem:[%s1726_s12 + $0x30] sm:$0xff] }
 0x5cc   :  { %1146 = vmatpush.msra.mxu0 %v1139_v13 }
 0x5cd   :  { %1225 = vmatmul.msk.f32.vlgmr.msrb.gmra.mxu0 %vm161_vm5, %v880_v26  ;;  %v1130_v26 = vld [vmem:[%s1726_s12 + $0x28] sm:$0xff] }
 0x611   :  { %v978_v34 = vpop.f32.mrf.mxu2 }
 0x640   :  { %v953_v30 = vpop.f32.mrf.mxu1 }
 0x645   :  { %v906_v27 = vpop.f32.mrf.mxu3 }
 0x64a   :  { %v929_v28 = vpop.f32.mrf.mxu0 }
 0x64b   :  { %v930_v50 = vadd.f32 %v929_v28, %v906_v27  ;;  %v1129_v27 = vld [vmem:[%s1726_s12 + $0x20] sm:$0xff]  ;;  %v1128_v28 = vld [vmem:[%s1726_s12 + $0x18] sm:$0xff] }
 0x64d   :  { %v956_v32 = vadd.f32 %v953_v30, %v930_v50  ;;  %v1263_v50 = vld [vmem:[%s1725_s11] ss:$0 sm:$0xff]  ;;  %v1127_v30 = vld [vmem:[%s1726_s12 + $0x10] sm:$0xff] }
 0x64f   :  { %v981_v36 = vadd.f32 %v978_v34, %v956_v32 }
 0x651   :  { %v987_v38 = vadd.f32 %v1603_v29, %v981_v36  ;;  %v1125_v36 = vld [vmem:[%s1726_s12] sm:$0xff] }
 0x653   :  { %v1622_v39 = vadd.f32 %v987_v38, %v1452_v18  ;;  %v1048_v18 = vld [vmem:[%s1724_s10 + $0x10] sm:$0xff] }
 0x654   :  { %1073 = vmatpush.msra.mxu3 %v1048_v18 }
 0x655   :  { %v995_v21 = vsel %vm52_vm0, %v1622_v39, 0.0 }
 0x656   :  { %996 = vadd.xlane.f32.xlu1 %v995_v21  ;;  %1074 = vmatpush.msra.mxu3 %v1047_v45 }
 0x658   :  { %1075 = vmatpush.msra.mxu3 %v1046_v0 }
 0x65e   :  { %1005 = vadd.xlane.f32.xlu1 %v1004_v42 }
 0x6c9   :  { %v997_v44 = vpop.xlane.xlu1 %996 }
 0x6ca   :  { %v999_v29 = vmul.f32 %v997_v44, %v1432_v8 }
 0x6cc   :  { %v1001_v46 = vsub.f32 %v1622_v39, %v999_v29 }
 0x6ce   :  { %v1003_v49 = vmul.f32 %v1001_v46, %v1001_v46 }
 0x6d0   :  { %v1007_v51 = vsel %vm52_vm0, %v1003_v49, 0.0 }
 0x6d1   :  { %1008 = vadd.xlane.f32.xlu1 %v1007_v51  ;;  %v1006_v52 = vpop.xlane.xlu1 %1005 }
 0x6d2   :  { %v1010_v53 = vmul.f32 %v1006_v52, %v1432_v8 }
 0x6d4   :  { %v1012_v54 = vadd.f32 1e-05, %v1010_v53 }
 0x6d6   :  { %1303 = vrsqrt.f32 %v1012_v54  ;;  %vm1020_vm13 = vweird.f32 %v1012_v54 }
 0x6dc   :  { %v1304_v55 = vpop.eup %1303 }
 0x6dd   :  { %v1015_v56 = vmul.f32 %v1304_v55, %v1012_v54  ;;  %vm1021_vm5 = vweird.f32 %v1304_v55 }
 0x6de   :  { %vm1022_vm14 = vmor %vm1020_vm13, %vm1021_vm5 }
 0x6df   :  { %v1016_v57 = vmul.f32 %v1304_v55, %v1015_v56 }
 0x6e1   :  { %v1017_v58 = vmul.f32 0.5, %v1016_v57 }
 0x6e3   :  { %v1018_v59 = vsub.f32 1.5, %v1017_v58 }
 0x6e5   :  { %v1019_v60 = vmul.f32 %v1304_v55, %v1018_v59 }
 0x6e7   :  { %v1023_v62 = vsel %vm1022_vm14, %v1304_v55, %v1019_v60 }
 0x6e8   :  { %v1034_v1 = vmul.f32 %v1023_v62, %v1000_v40 }
 0x6ea   :  { %v1039_v31 = vmul.f32 %v1261_v61, %v1034_v1 }
 0x6ec   :  { %v1044_v2 = vadd.f32 %v1262_v5, %v1039_v31 }
 0x6ee   :  { %1230 = vmatmul.msk.f32.vlgmr.msra.gmra.mxu3 %vm52_vm0, %v1044_v2 }
 0x744   :  { %v1009_v3 = vpop.xlane.xlu1 %1008 }
 0x745   :  { %v1011_v4 = vmul.f32 %v1009_v3, %v1432_v8  ;;  %v1138_v8 = vld [vmem:[%s1726_s12 + $0x68] sm:$0xff] }
 0x746   :  { %1147 = vmatpush.msra.mxu0 %v1138_v8 }
 0x747   :  { %v1013_v6 = vadd.f32 1e-05, %v1011_v4 }
 0x748   :  { %1148 = vmatpush.msra.mxu0 %v1137_v63 }
 0x749   :  { %1305 = vrsqrt.f32 %v1013_v6  ;;  %vm1030_vm1 = vweird.f32 %v1013_v6 }
 0x74a   :  { %1149 = vmatpush.msra.mxu0 %v1136_v19 }
 0x74c   :  { %1150 = vmatpush.msra.mxu0 %v1135_v22 }
 0x74e   :  { %1151 = vmatpush.msra.mxu0 %v1134_v47 }
 0x74f   :  { %v1306_v7 = vpop.eup %1305 }
 0x750   :  { %v1025_v9 = vmul.f32 %v1306_v7, %v1013_v6  ;;  %vm1031_vm15 = vweird.f32 %v1306_v7  ;;  %1152 = vmatpush.msra.mxu0 %v1133_v23  ;;  %v1264_v6 = vld [vmem:[%s1727_s13] ss:$0 sm:$0xff]  ;;  %s1348_s13 = smov 128  }
 0x751   :  { %vm1032_vm2 = vmor %vm1030_vm1, %vm1031_vm15 }
 0x752   :  { %v1026_v48 = vmul.f32 %v1306_v7, %v1025_v9  ;;  %1153 = vmatpush.msra.mxu0 %v1132_v24 }
 0x754   :  { %v1027_v10 = vmul.f32 0.5, %v1026_v48  ;;  %1154 = vmatpush.msra.mxu0 %v1131_v25 }
 0x756   :  { %v1028_v12 = vsub.f32 1.5, %v1027_v10  ;;  %1155 = vmatpush.msra.mxu0 %v1130_v26 }
 0x758   :  { %v1029_v14 = vmul.f32 %v1306_v7, %v1028_v12  ;;  %1156 = vmatpush.msra.mxu0 %v1129_v27 }
 0x75a   :  { %v1033_v15 = vsel %vm1032_vm2, %v1306_v7, %v1029_v14  ;;  %1157 = vmatpush.msra.mxu0 %v1128_v28 }
 0x75b   :  { %v1035_v16 = vmul.f32 %v1033_v15, %v1001_v46 }
 0x75c   :  { %1158 = vmatpush.msra.mxu0 %v1127_v30 }
 0x75d   :  { %v1040_v17 = vmul.f32 %v1261_v61, %v1035_v16 }
 0x75e   :  { %1159 = vmatpush.msra.mxu0 %v1126_v33 }
 0x75f   :  { %v1045_v20 = vadd.f32 %v1262_v5, %v1040_v17 }
 0x760   :  { %1160 = vmatpush.msra.mxu0 %v1125_v36 }
 0x761   :  { %1231 = vmatmul.msk.f32.gmra.mxu3 %vm52_vm0, %v1045_v20 }
 0x771   :  { %v1077_v32 = vpop.f32.mrf.mxu3 }
 0x772   :  { %v1078_v34 = vadd.f32 %v1263_v50, %v1077_v32 }
 0x774   :  { %v1232_v37 = vmul.f32 -1.702, %v1078_v34 }
 0x776   :  { %v1087_v38 = vmul.f32 1.442695, %v1232_v37 }
 0x778   :  { %1307 = vpow2.f32 %v1087_v38 }
 0x77e   :  { %v1308_v40 = vpop.eup %1307 }
 0x77f   :  { %v1091_v21 = vadd.f32 1.0, %v1308_v40 }
 0x781   :  { %1309 = vrcp.f32 %v1091_v21  ;;  %v1104_v44 = vand.u32 2147483648, %v1091_v21  ;;  %v1102_v29 = vand.u32 2147483647, %v1091_v21  ;;  %vm1098_vm4 = vweird.f32 %v1091_v21 }
 0x783   :  { %v1105_v0 = vor.u32 1.1754944e-38, %v1104_v44  ;;  %vm1103_vm7 = vcmp.eq.f32.partialorder %v1102_v29, 8.507059e+37 }
 0x787   :  { %v1310_v41 = vpop.eup %1309 }
 0x788   :  { %v1094_v42 = vmul.f32 %v1310_v41, %v1091_v21  ;;  %vm1099_vm3 = vweird.f32 %v1310_v41 }
 0x789   :  { %vm1100_vm6 = vmor %vm1098_vm4, %vm1099_vm3 }
 0x78a   :  { %v1095_v43 = vsub.f32 1.0, %v1094_v42 }
 0x78c   :  { %v1096_v18 = vmul.f32 %v1310_v41, %v1095_v43 }
 0x78e   :  { %v1097_v45 = vadd.f32 %v1310_v41, %v1096_v18 }
 0x790   :  { %v1101_v46 = vsel %vm1100_vm6, %v1310_v41, %v1097_v45 }
 0x791   :  { %v1106_v49 = vsel %vm1103_vm7, %v1105_v0, %v1101_v46 }
 0x792   :  { %v1123_v51 = vmul.f32 %v1106_v49, %v1078_v34 }
 0x794   :  { %1161 = vmatmul.f32.vlgmr.msra.gmra.mxu0 %v1123_v51 }
 0x7e4   :  { %v1080_v52 = vpop.f32.mrf.mxu3 }
 0x7e5   :  { %v1081_v53 = vadd.f32 %v1263_v50, %v1080_v52 }
 0x7e7   :  { %v1233_v54 = vmul.f32 -1.702, %v1081_v53 }
 0x7e9   :  { %v1089_v55 = vmul.f32 1.442695, %v1233_v54 }
 0x7eb   :  { %1311 = vpow2.f32 %v1089_v55 }
 0x7f1   :  { %v1312_v56 = vpop.eup %1311 }
 0x7f2   :  { %v1092_v57 = vadd.f32 1.0, %v1312_v56 }
 0x7f4   :  { %1313 = vrcp.f32 %v1092_v57  ;;  %v1119_v61 = vand.u32 2147483648, %v1092_v57  ;;  %v1117_v1 = vand.u32 2147483647, %v1092_v57  ;;  %vm1113_vm9 = vweird.f32 %v1092_v57 }
 0x7f6   :  { %v1120_v31 = vor.u32 1.1754944e-38, %v1119_v61  ;;  %vm1118_vm11 = vcmp.eq.f32.partialorder %v1117_v1, 8.507059e+37 }
 0x7fa   :  { %v1314_v58 = vpop.eup %1313 }
 0x7fb   :  { %v1109_v59 = vmul.f32 %v1314_v58, %v1092_v57  ;;  %vm1114_vm8 = vweird.f32 %v1314_v58 }
 0x7fc   :  { %vm1115_vm10 = vmor %vm1113_vm9, %vm1114_vm8 }
 0x7fd   :  { %v1110_v60 = vsub.f32 1.0, %v1109_v59 }
 0x7ff   :  { %v1111_v62 = vmul.f32 %v1314_v58, %v1110_v60 }
 0x801   :  { %v1112_v5 = vadd.f32 %v1314_v58, %v1111_v62 }
 0x803   :  { %v1116_v2 = vsel %vm1115_vm10, %v1314_v58, %v1112_v5 }
 0x804   :  { %v1121_v3 = vsel %vm1118_vm11, %v1120_v31, %v1116_v2 }
 0x805   :  { %v1124_v4 = vmul.f32 %v1121_v3, %v1081_v53 }
 0x807   :  { %1164 = vmatmul.f32.gmra.mxu0 %v1124_v4 }
 0x811   :  { %v1162_v7 = vpop.f32.mrf.mxu0 }
 0x812   :  { %v1163_v9 = vadd.f32 %v1264_v6, %v1162_v7 }
 0x814   :  { %v1168_v48 = vadd.f32 %v1163_v9, %v1611_v35 }
 0x816   :  { %1170 = vst.msk [vmem:[#allocation2] sm:$0xff] %vm52_vm0, %v1168_v48 }
 0x884   :  { %v1165_v10 = vpop.f32.mrf.mxu0 }
 0x885   :  { %v1166_v11 = vadd.f32 %v1264_v6, %v1165_v10 }
 0x887   :  { %v1169_v12 = vadd.f32 %v1166_v11, %v1622_v39 }
 0x889   :  { %1171 = vst.msk [vmem:[#allocation2 + $0x8] sm:$0xff] %vm52_vm0, %v1169_v12 }
 0x88a   :  { %1184 = dma.vmem_to_hbm [thread:$0]  %s1177_s19, 256, %s1179_s22, [#allocation3], %s1348_s13, %s1348_s13, %s1349_s23  }
 0x88b   :  { %1339 = dma.done.wait [#allocation3], 256  }
 0x88c   :  { %1340 = vsyncadd [#allocation3], 4294967040 }
 0x88d   :  { %1189 = vsyncpa [#allocation3], 1 }

</bundles_post_ra>
